<compile_context>
chip_gen: v7x
topology: tpu7x:2x2x1
jax: 0.10.0
libtpu: 0.0.40
codegen_flags: <defaults>
</compile_context>

<pallas_src>
import functools

import jax
import jax.numpy as jnp
from jax.experimental import pallas as pl
from jax.experimental.pallas import tpu as pltpu

HIDDEN_SIZE = 256
LATENT_SIZE = 64
INPUT_SIZE = LATENT_SIZE
_HEAD_OUT = 2 * LATENT_SIZE      # fused mean|log_var head -> 128 lanes
_XHAT_PAD = 128                  # padded decoder output width (lane-dense)


def _round_up(n, m):
    return (n + m - 1) // m * m


def _vae_kernel(
    x_ref, eps_ref,
    w1_ref, b1_ref, w2_ref, b2_ref,        # encoder
    wml_ref, bml_ref,                      # fused mean|log_var head (N=128)
    wd1_ref, bd1_ref, wd2_ref, bd2_ref,    # decoder hidden layers
    wd3_ref, bd3_ref,                      # decoder output layer (padded to N=128)
    xhat_ref, ml_ref,
):
    f32 = jnp.float32
    bf16 = jnp.bfloat16
    x = x_ref[...]                                           # [tile, 64] f32

    # --- encoder: Linear -> ReLU -> Linear -> Sigmoid (bf16 MXU, f32 accum) ---
    h = jnp.dot(x.astype(bf16), w1_ref[...], preferred_element_type=f32) + b1_ref[...]
    h = jnp.maximum(h, 0.0)
    h = jnp.dot(h.astype(bf16), w2_ref[...], preferred_element_type=f32) + b2_ref[...]
    h = jax.nn.sigmoid(h)

    # --- fused latent heads: one N=128 matmul, lane-dense store ---
    ml = jnp.dot(h.astype(bf16), wml_ref[...], preferred_element_type=f32) + bml_ref[...]
    mean = ml[:, :LATENT_SIZE]
    log_var = ml[:, LATENT_SIZE:]

    # --- reparameterize: z = mean + eps * exp(0.5 * log_var)  (kept in f32) ---
    std = jnp.exp(0.5 * log_var)
    z = mean + eps_ref[...] * std

    # --- decoder: Linear -> ReLU -> Linear -> ReLU -> Linear(pad N=128) -> Sigmoid ---
    d = jnp.dot(z.astype(bf16), wd1_ref[...], preferred_element_type=f32) + bd1_ref[...]
    d = jnp.maximum(d, 0.0)
    d = jnp.dot(d.astype(bf16), wd2_ref[...], preferred_element_type=f32) + bd2_ref[...]
    d = jnp.maximum(d, 0.0)
    d = jnp.dot(d.astype(bf16), wd3_ref[...], preferred_element_type=f32) + bd3_ref[...]
    x_hat = jax.nn.sigmoid(d)                                # [tile, 128] (last 64 = pad)

    xhat_ref[...] = x_hat.astype(xhat_ref.dtype)
    ml_ref[...] = ml.astype(ml_ref.dtype)


@functools.partial(jax.jit, static_argnames=("batch_tile",))
def vae_forward(x, eps, params, *, batch_tile=256):
    """Fused VAE forward pass.

    x:   [B, INPUT_SIZE]  float32
    eps: [B, LATENT_SIZE] float32 (standard-normal noise for reparameterize)
    params: dict of f32 weights [in, out] and biases [1, out]
    Returns (x_hat, mean, log_var), each f32.
    """
    B, in_dim = x.shape
    assert in_dim == INPUT_SIZE

    # Batch tile: big (MXU-friendly), multiple of 8, never larger than padded B.
    tile = min(batch_tile, _round_up(B, 8))
    Bp = _round_up(B, tile)
    if Bp != B:
        pad = Bp - B
        x = jnp.pad(x, ((0, pad), (0, 0)))
        eps = jnp.pad(eps, ((0, pad), (0, 0)))

    bf16 = jnp.bfloat16
    # One-time (inside jit, outside the grid loop) weight prep:
    #   * fuse mean|log_var heads into one [256, 128] weight / [1, 128] bias
    #   * zero-pad the last decoder layer to N=128 for lane-dense stores
    #   * cast all matmul weights to bf16 (biases stay f32).
    wml = jnp.concatenate([params["wm"], params["wv"]], axis=1).astype(bf16)
    bml = jnp.concatenate([params["bm"], params["bv"]], axis=1)
    wd3p = jnp.pad(params["wd3"], ((0, 0), (0, _XHAT_PAD - INPUT_SIZE))).astype(bf16)
    bd3p = jnp.pad(params["bd3"], ((0, 0), (0, _XHAT_PAD - INPUT_SIZE)))

    weight_args = (
        params["w1"].astype(bf16), params["b1"],
        params["w2"].astype(bf16), params["b2"],
        wml, bml,
        params["wd1"].astype(bf16), params["bd1"],
        params["wd2"].astype(bf16), params["bd2"],
        wd3p, bd3p,
    )

    act_spec = lambda d: pl.BlockSpec((tile, d), lambda i: (i, 0))
    # Replicated weights: constant block index -> Pallas does not re-DMA per step.
    # TODO(synk): pipeline_mode=pl.Buffered(1) would halve the (already <0.5 MiB)
    # weight VMEM footprint; omitted to keep compilation maximally portable.
    rep_spec = lambda a: pl.BlockSpec(a.shape, lambda i: (0, 0))

    in_specs = [act_spec(INPUT_SIZE), act_spec(LATENT_SIZE)] + [
        rep_spec(a) for a in weight_args
    ]
    out_specs = [
        act_spec(_XHAT_PAD),     # x_hat (padded to 128 lanes)
        act_spec(_HEAD_OUT),     # mean | log_var (128 lanes)
    ]
    out_shapes = [
        jax.ShapeDtypeStruct((Bp, _XHAT_PAD), jnp.float32),
        jax.ShapeDtypeStruct((Bp, _HEAD_OUT), jnp.float32),
    ]

    grid_spec = pltpu.PrefetchScalarGridSpec(
        num_scalar_prefetch=0,
        grid=(Bp // tile,),
        in_specs=in_specs,
        out_specs=out_specs,
    )

    fn = pl.pallas_call(
        _vae_kernel,
        out_shape=out_shapes,
        grid_spec=grid_spec,
        compiler_params=pltpu.CompilerParams(
            dimension_semantics=("parallel",),
            vmem_limit_bytes=32 * 1024 * 1024,
        ),
    )
    xhat_pad, ml = fn(x, eps, *weight_args)

    x_hat = xhat_pad[:B, :INPUT_SIZE]
    mean = ml[:B, :LATENT_SIZE]
    log_var = ml[:B, LATENT_SIZE:]
    return x_hat, mean, log_var


def init_vae_params(key):
    """Deterministic init mimicking nn.Linear's default U(-1/sqrt(fan_in), +...)."""
    def linear(key, fan_in, fan_out):
        kw, kb = jax.random.split(key)
        bound = 1.0 / jnp.sqrt(fan_in)
        w = jax.random.uniform(kw, (fan_in, fan_out), jnp.float32, -bound, bound)
        b = jax.random.uniform(kb, (1, fan_out), jnp.float32, -bound, bound)
        return w, b

    keys = jax.random.split(key, 7)
    p = {}
    p["w1"], p["b1"] = linear(keys[0], INPUT_SIZE, HIDDEN_SIZE)
    p["w2"], p["b2"] = linear(keys[1], HIDDEN_SIZE, HIDDEN_SIZE)
    p["wm"], p["bm"] = linear(keys[2], HIDDEN_SIZE, LATENT_SIZE)
    p["wv"], p["bv"] = linear(keys[3], HIDDEN_SIZE, LATENT_SIZE)
    p["wd1"], p["bd1"] = linear(keys[4], LATENT_SIZE, HIDDEN_SIZE)
    p["wd2"], p["bd2"] = linear(keys[5], HIDDEN_SIZE, HIDDEN_SIZE)
    p["wd3"], p["bd3"] = linear(keys[6], HIDDEN_SIZE, INPUT_SIZE)
    return p


def _reference_forward(x, eps, p):
    """Pure-JAX reference emulating the kernel's bf16-weight / f32-accum matmuls."""
    bf16 = jnp.bfloat16
    dot = lambda a, w: jnp.dot(a.astype(bf16), w.astype(bf16),
                               preferred_element_type=jnp.float32)
    h = jnp.maximum(dot(x, p["w1"]) + p["b1"], 0.0)
    h = jax.nn.sigmoid(dot(h, p["w2"]) + p["b2"])
    mean = dot(h, p["wm"]) + p["bm"]
    log_var = dot(h, p["wv"]) + p["bv"]
    z = mean + eps * jnp.exp(0.5 * log_var)
    d = jnp.maximum(dot(z, p["wd1"]) + p["bd1"], 0.0)
    d = jnp.maximum(dot(d, p["wd2"]) + p["bd2"], 0.0)
    x_hat = jax.nn.sigmoid(dot(d, p["wd3"]) + p["bd3"])
    return x_hat, mean, log_var


if __name__ == "__main__":
    key = jax.random.PRNGKey(0)
    k_params, k_x, k_eps = jax.random.split(key, 3)

    # B=512 with batch_tile=256 -> 2 parallel grid steps (keeps both v7x TCs busy).
    B = 512
    params = init_vae_params(k_params)
    x = jax.random.normal(k_x, (B, INPUT_SIZE), jnp.float32)
    eps = jax.random.normal(k_eps, (B, LATENT_SIZE), jnp.float32)

    x_hat, mean, log_var = vae_forward(x, eps, params, batch_tile=256)
    jax.block_until_ready((x_hat, mean, log_var))

    # Sanity check against a bf16-emulating pure-JAX reference.
    r_xhat, r_mean, r_logvar = _reference_forward(x, eps, params)
    assert x_hat.shape == (B, INPUT_SIZE)
    assert mean.shape == (B, LATENT_SIZE) and log_var.shape == (B, LATENT_SIZE)
    assert jnp.allclose(x_hat, r_xhat, atol=1e-2, rtol=1e-2), "x_hat mismatch"
    assert jnp.allclose(mean, r_mean, atol=1e-2, rtol=1e-2), "mean mismatch"
    assert jnp.allclose(log_var, r_logvar, atol=1e-2, rtol=1e-2), "log_var mismatch"

    print("KERNEL_OK")
</pallas_src>

<mosaic_0001>
module attributes {stable_mosaic.version = 11 : i64} {
  func.func @_vae_kernel(%arg0: i32, %arg1: memref<256x64xf32, #tpu.memory_space<vmem>>, %arg2: memref<256x64xf32, #tpu.memory_space<vmem>>, %arg3: memref<64x256xbf16, #tpu.memory_space<vmem>>, %arg4: memref<1x256xf32, #tpu.memory_space<vmem>>, %arg5: memref<256x256xbf16, #tpu.memory_space<vmem>>, %arg6: memref<1x256xf32, #tpu.memory_space<vmem>>, %arg7: memref<256x128xbf16, #tpu.memory_space<vmem>>, %arg8: memref<1x128xf32, #tpu.memory_space<vmem>>, %arg9: memref<64x256xbf16, #tpu.memory_space<vmem>>, %arg10: memref<1x256xf32, #tpu.memory_space<vmem>>, %arg11: memref<256x256xbf16, #tpu.memory_space<vmem>>, %arg12: memref<1x256xf32, #tpu.memory_space<vmem>>, %arg13: memref<256x128xbf16, #tpu.memory_space<vmem>>, %arg14: memref<1x128xf32, #tpu.memory_space<vmem>>, %arg15: memref<256x128xf32, #tpu.memory_space<vmem>>, %arg16: memref<256x128xf32, #tpu.memory_space<vmem>>) attributes {dimension_semantics = [#tpu.dimension_semantics<parallel>], iteration_bounds = array<i64: 2>, scalar_prefetch = 0 : i64, scratch_operands = 0 : i64, tpu.core_type = #tpu.core_type<tc>, window_params = [{transform_indices = @transform_0, window_bounds = array<i64: 256, 64>}, {transform_indices = @transform_1, window_bounds = array<i64: 256, 64>}, {pipeline_mode = #tpu.pipeline_mode<synchronous>, transform_indices = @transform_2, window_bounds = array<i64: 64, 256>}, {pipeline_mode = #tpu.pipeline_mode<synchronous>, transform_indices = @transform_3, window_bounds = array<i64: 1, 256>}, {pipeline_mode = #tpu.pipeline_mode<synchronous>, transform_indices = @transform_4, window_bounds = array<i64: 256, 256>}, {pipeline_mode = #tpu.pipeline_mode<synchronous>, transform_indices = @transform_5, window_bounds = array<i64: 1, 256>}, {pipeline_mode = #tpu.pipeline_mode<synchronous>, transform_indices = @transform_6, window_bounds = array<i64: 256, 128>}, {pipeline_mode = #tpu.pipeline_mode<synchronous>, transform_indices = @transform_7, window_bounds = array<i64: 1, 128>}, {pipeline_mode = #tpu.pipeline_mode<synchronous>, transform_indices = @transform_8, window_bounds = array<i64: 64, 256>}, {pipeline_mode = #tpu.pipeline_mode<synchronous>, transform_indices = @transform_9, window_bounds = array<i64: 1, 256>}, {pipeline_mode = #tpu.pipeline_mode<synchronous>, transform_indices = @transform_10, window_bounds = array<i64: 256, 256>}, {pipeline_mode = #tpu.pipeline_mode<synchronous>, transform_indices = @transform_11, window_bounds = array<i64: 1, 256>}, {pipeline_mode = #tpu.pipeline_mode<synchronous>, transform_indices = @transform_12, window_bounds = array<i64: 256, 128>}, {pipeline_mode = #tpu.pipeline_mode<synchronous>, transform_indices = @transform_13, window_bounds = array<i64: 1, 128>}, {transform_indices = @transform_14, window_bounds = array<i64: 256, 128>}, {transform_indices = @transform_15, window_bounds = array<i64: 256, 128>}]} {
    %c0 = arith.constant 0 : index
    %c0_0 = arith.constant 0 : index
    %0 = vector.load %arg1[%c0, %c0_0] : memref<256x64xf32, #tpu.memory_space<vmem>>, vector<256x64xf32>
    %1 = arith.truncf %0 : vector<256x64xf32> to vector<256x64xbf16>
    %c0_1 = arith.constant 0 : index
    %c0_2 = arith.constant 0 : index
    %2 = vector.load %arg3[%c0_1, %c0_2] : memref<64x256xbf16, #tpu.memory_space<vmem>>, vector<64x256xbf16>
    %cst = arith.constant dense<0.000000e+00> : vector<256x256xf32>
    %3 = tpu.matmul %1, %2, %cst {dimension_numbers = #tpu.dot_dimension_numbers<[1], [0], [0], [1], [0, 0, 1, 1], [], []>} : vector<256x64xbf16>, vector<64x256xbf16>, vector<256x256xf32> -> vector<256x256xf32>
    %c0_3 = arith.constant 0 : index
    %c0_4 = arith.constant 0 : index
    %4 = vector.load %arg4[%c0_3, %c0_4] : memref<1x256xf32, #tpu.memory_space<vmem>>, vector<1x256xf32>
    %5 = vector.broadcast %4 : vector<1x256xf32> to vector<256x256xf32>
    %6 = arith.addf %3, %5 : vector<256x256xf32>
    %cst_5 = arith.constant 0.000000e+00 : f32
    %7 = vector.broadcast %cst_5 : f32 to vector<256x256xf32>
    %8 = arith.maximumf %6, %7 : vector<256x256xf32>
    %9 = arith.truncf %8 : vector<256x256xf32> to vector<256x256xbf16>
    %c0_6 = arith.constant 0 : index
    %c0_7 = arith.constant 0 : index
    %10 = vector.load %arg5[%c0_6, %c0_7] : memref<256x256xbf16, #tpu.memory_space<vmem>>, vector<256x256xbf16>
    %cst_8 = arith.constant dense<0.000000e+00> : vector<256x256xf32>
    %11 = tpu.matmul %9, %10, %cst_8 {dimension_numbers = #tpu.dot_dimension_numbers<[1], [0], [0], [1], [0, 0, 1, 1], [], []>} : vector<256x256xbf16>, vector<256x256xbf16>, vector<256x256xf32> -> vector<256x256xf32>
    %c0_9 = arith.constant 0 : index
    %c0_10 = arith.constant 0 : index
    %12 = vector.load %arg6[%c0_9, %c0_10] : memref<1x256xf32, #tpu.memory_space<vmem>>, vector<1x256xf32>
    %13 = vector.broadcast %12 : vector<1x256xf32> to vector<256x256xf32>
    %14 = arith.addf %11, %13 : vector<256x256xf32>
    %15 = arith.negf %14 : vector<256x256xf32>
    %16 = math.exp %15 : vector<256x256xf32>
    %cst_11 = arith.constant 1.000000e+00 : f32
    %17 = vector.broadcast %cst_11 : f32 to vector<256x256xf32>
    %18 = arith.addf %17, %16 : vector<256x256xf32>
    %19 = arith.divf %17, %18 : vector<256x256xf32>
    %20 = arith.truncf %19 : vector<256x256xf32> to vector<256x256xbf16>
    %c0_12 = arith.constant 0 : index
    %c0_13 = arith.constant 0 : index
    %21 = vector.load %arg7[%c0_12, %c0_13] : memref<256x128xbf16, #tpu.memory_space<vmem>>, vector<256x128xbf16>
    %cst_14 = arith.constant dense<0.000000e+00> : vector<256x128xf32>
    %22 = tpu.matmul %20, %21, %cst_14 {dimension_numbers = #tpu.dot_dimension_numbers<[1], [0], [0], [1], [0, 0, 1, 1], [], []>} : vector<256x256xbf16>, vector<256x128xbf16>, vector<256x128xf32> -> vector<256x128xf32>
    %c0_15 = arith.constant 0 : index
    %c0_16 = arith.constant 0 : index
    %23 = vector.load %arg8[%c0_15, %c0_16] : memref<1x128xf32, #tpu.memory_space<vmem>>, vector<1x128xf32>
    %24 = vector.broadcast %23 : vector<1x128xf32> to vector<256x128xf32>
    %25 = arith.addf %22, %24 : vector<256x128xf32>
    %26 = vector.extract_strided_slice %25 {offsets = [0, 0], sizes = [256, 64], strides = [1, 1]} : vector<256x128xf32> to vector<256x64xf32>
    %27 = vector.extract_strided_slice %25 {offsets = [0, 64], sizes = [256, 64], strides = [1, 1]} : vector<256x128xf32> to vector<256x64xf32>
    %cst_17 = arith.constant 5.000000e-01 : f32
    %28 = vector.broadcast %cst_17 : f32 to vector<256x64xf32>
    %29 = arith.mulf %28, %27 : vector<256x64xf32>
    %30 = math.exp %29 : vector<256x64xf32>
    %c0_18 = arith.constant 0 : index
    %c0_19 = arith.constant 0 : index
    %31 = vector.load %arg2[%c0_18, %c0_19] : memref<256x64xf32, #tpu.memory_space<vmem>>, vector<256x64xf32>
    %32 = arith.mulf %31, %30 : vector<256x64xf32>
    %33 = arith.addf %26, %32 : vector<256x64xf32>
    %34 = arith.truncf %33 : vector<256x64xf32> to vector<256x64xbf16>
    %c0_20 = arith.constant 0 : index
    %c0_21 = arith.constant 0 : index
    %35 = vector.load %arg9[%c0_20, %c0_21] : memref<64x256xbf16, #tpu.memory_space<vmem>>, vector<64x256xbf16>
    %cst_22 = arith.constant dense<0.000000e+00> : vector<256x256xf32>
    %36 = tpu.matmul %34, %35, %cst_22 {dimension_numbers = #tpu.dot_dimension_numbers<[1], [0], [0], [1], [0, 0, 1, 1], [], []>} : vector<256x64xbf16>, vector<64x256xbf16>, vector<256x256xf32> -> vector<256x256xf32>
    %c0_23 = arith.constant 0 : index
    %c0_24 = arith.constant 0 : index
    %37 = vector.load %arg10[%c0_23, %c0_24] : memref<1x256xf32, #tpu.memory_space<vmem>>, vector<1x256xf32>
    %38 = vector.broadcast %37 : vector<1x256xf32> to vector<256x256xf32>
    %39 = arith.addf %36, %38 : vector<256x256xf32>
    %cst_25 = arith.constant 0.000000e+00 : f32
    %40 = vector.broadcast %cst_25 : f32 to vector<256x256xf32>
    %41 = arith.maximumf %39, %40 : vector<256x256xf32>
    %42 = arith.truncf %41 : vector<256x256xf32> to vector<256x256xbf16>
    %c0_26 = arith.constant 0 : index
    %c0_27 = arith.constant 0 : index
    %43 = vector.load %arg11[%c0_26, %c0_27] : memref<256x256xbf16, #tpu.memory_space<vmem>>, vector<256x256xbf16>
    %cst_28 = arith.constant dense<0.000000e+00> : vector<256x256xf32>
    %44 = tpu.matmul %42, %43, %cst_28 {dimension_numbers = #tpu.dot_dimension_numbers<[1], [0], [0], [1], [0, 0, 1, 1], [], []>} : vector<256x256xbf16>, vector<256x256xbf16>, vector<256x256xf32> -> vector<256x256xf32>
    %c0_29 = arith.constant 0 : index
    %c0_30 = arith.constant 0 : index
    %45 = vector.load %arg12[%c0_29, %c0_30] : memref<1x256xf32, #tpu.memory_space<vmem>>, vector<1x256xf32>
    %46 = vector.broadcast %45 : vector<1x256xf32> to vector<256x256xf32>
    %47 = arith.addf %44, %46 : vector<256x256xf32>
    %cst_31 = arith.constant 0.000000e+00 : f32
    %48 = vector.broadcast %cst_31 : f32 to vector<256x256xf32>
    %49 = arith.maximumf %47, %48 : vector<256x256xf32>
    %50 = arith.truncf %49 : vector<256x256xf32> to vector<256x256xbf16>
    %c0_32 = arith.constant 0 : index
    %c0_33 = arith.constant 0 : index
    %51 = vector.load %arg13[%c0_32, %c0_33] : memref<256x128xbf16, #tpu.memory_space<vmem>>, vector<256x128xbf16>
    %cst_34 = arith.constant dense<0.000000e+00> : vector<256x128xf32>
    %52 = tpu.matmul %50, %51, %cst_34 {dimension_numbers = #tpu.dot_dimension_numbers<[1], [0], [0], [1], [0, 0, 1, 1], [], []>} : vector<256x256xbf16>, vector<256x128xbf16>, vector<256x128xf32> -> vector<256x128xf32>
    %c0_35 = arith.constant 0 : index
    %c0_36 = arith.constant 0 : index
    %53 = vector.load %arg14[%c0_35, %c0_36] : memref<1x128xf32, #tpu.memory_space<vmem>>, vector<1x128xf32>
    %54 = vector.broadcast %53 : vector<1x128xf32> to vector<256x128xf32>
    %55 = arith.addf %52, %54 : vector<256x128xf32>
    %56 = arith.negf %55 : vector<256x128xf32>
    %57 = math.exp %56 : vector<256x128xf32>
    %cst_37 = arith.constant 1.000000e+00 : f32
    %58 = vector.broadcast %cst_37 : f32 to vector<256x128xf32>
    %59 = arith.addf %58, %57 : vector<256x128xf32>
    %60 = arith.divf %58, %59 : vector<256x128xf32>
    %c0_38 = arith.constant 0 : index
    %c0_39 = arith.constant 0 : index
    %61 = vector.load %arg15[%c0_38, %c0_39] : memref<256x128xf32, #tpu.memory_space<vmem>>, vector<256x128xf32>
    tpu.vector_store %arg15[%c0_38, %c0_39], %60 {strides = array<i32>} : memref<256x128xf32, #tpu.memory_space<vmem>>, vector<256x128xf32>,
    %c0_40 = arith.constant 0 : index
    %c0_41 = arith.constant 0 : index
    %62 = vector.load %arg16[%c0_40, %c0_41] : memref<256x128xf32, #tpu.memory_space<vmem>>, vector<256x128xf32>
    tpu.vector_store %arg16[%c0_40, %c0_41], %25 {strides = array<i32>} : memref<256x128xf32, #tpu.memory_space<vmem>>, vector<256x128xf32>,
    return
  }
  func.func @transform_0(%arg0: i32) -> (i32, i32) {
    %c0_i32 = arith.constant 0 : i32
    %c0_i32_0 = arith.constant 0 : i32
    return %arg0, %c0_i32 : i32, i32
  }
  func.func @transform_1(%arg0: i32) -> (i32, i32) {
    %c0_i32 = arith.constant 0 : i32
    %c0_i32_0 = arith.constant 0 : i32
    return %arg0, %c0_i32 : i32, i32
  }
  func.func @transform_2(%arg0: i32) -> (i32, i32) {
    %c0_i32 = arith.constant 0 : i32
    %c0_i32_0 = arith.constant 0 : i32
    %c0_i32_1 = arith.constant 0 : i32
    return %c0_i32, %c0_i32_0 : i32, i32
  }
  func.func @transform_3(%arg0: i32) -> (i32, i32) {
    %c0_i32 = arith.constant 0 : i32
    %c0_i32_0 = arith.constant 0 : i32
    %c0_i32_1 = arith.constant 0 : i32
    return %c0_i32, %c0_i32_0 : i32, i32
  }
  func.func @transform_4(%arg0: i32) -> (i32, i32) {
    %c0_i32 = arith.constant 0 : i32
    %c0_i32_0 = arith.constant 0 : i32
    %c0_i32_1 = arith.constant 0 : i32
    return %c0_i32, %c0_i32_0 : i32, i32
  }
  func.func @transform_5(%arg0: i32) -> (i32, i32) {
    %c0_i32 = arith.constant 0 : i32
    %c0_i32_0 = arith.constant 0 : i32
    %c0_i32_1 = arith.constant 0 : i32
    return %c0_i32, %c0_i32_0 : i32, i32
  }
  func.func @transform_6(%arg0: i32) -> (i32, i32) {
    %c0_i32 = arith.constant 0 : i32
    %c0_i32_0 = arith.constant 0 : i32
    %c0_i32_1 = arith.constant 0 : i32
    return %c0_i32, %c0_i32_0 : i32, i32
  }
  func.func @transform_7(%arg0: i32) -> (i32, i32) {
    %c0_i32 = arith.constant 0 : i32
    %c0_i32_0 = arith.constant 0 : i32
    %c0_i32_1 = arith.constant 0 : i32
    return %c0_i32, %c0_i32_0 : i32, i32
  }
  func.func @transform_8(%arg0: i32) -> (i32, i32) {
    %c0_i32 = arith.constant 0 : i32
    %c0_i32_0 = arith.constant 0 : i32
    %c0_i32_1 = arith.constant 0 : i32
    return %c0_i32, %c0_i32_0 : i32, i32
  }
  func.func @transform_9(%arg0: i32) -> (i32, i32) {
    %c0_i32 = arith.constant 0 : i32
    %c0_i32_0 = arith.constant 0 : i32
    %c0_i32_1 = arith.constant 0 : i32
    return %c0_i32, %c0_i32_0 : i32, i32
  }
  func.func @transform_10(%arg0: i32) -> (i32, i32) {
    %c0_i32 = arith.constant 0 : i32
    %c0_i32_0 = arith.constant 0 : i32
    %c0_i32_1 = arith.constant 0 : i32
    return %c0_i32, %c0_i32_0 : i32, i32
  }
  func.func @transform_11(%arg0: i32) -> (i32, i32) {
    %c0_i32 = arith.constant 0 : i32
    %c0_i32_0 = arith.constant 0 : i32
    %c0_i32_1 = arith.constant 0 : i32
    return %c0_i32, %c0_i32_0 : i32, i32
  }
  func.func @transform_12(%arg0: i32) -> (i32, i32) {
    %c0_i32 = arith.constant 0 : i32
    %c0_i32_0 = arith.constant 0 : i32
    %c0_i32_1 = arith.constant 0 : i32
    return %c0_i32, %c0_i32_0 : i32, i32
  }
  func.func @transform_13(%arg0: i32) -> (i32, i32) {
    %c0_i32 = arith.constant 0 : i32
    %c0_i32_0 = arith.constant 0 : i32
    %c0_i32_1 = arith.constant 0 : i32
    return %c0_i32, %c0_i32_0 : i32, i32
  }
  func.func @transform_14(%arg0: i32) -> (i32, i32) {
    %c0_i32 = arith.constant 0 : i32
    %c0_i32_0 = arith.constant 0 : i32
    return %arg0, %c0_i32 : i32, i32
  }
  func.func @transform_15(%arg0: i32) -> (i32, i32) {
    %c0_i32 = arith.constant 0 : i32
    %c0_i32_0 = arith.constant 0 : i32
    return %arg0, %c0_i32 : i32, i32
  }
}

</mosaic_0001>

<bundles_post_ra>
// kernel: vae_forward.1
= control target key start
LH: loop header
LB: loop body
LE: loop exit
PB: predicated region body
PF: predicated region fallthrough
CT: control target
= control target key end

     0   :  { %s5167_s18 = smov 0   ;;  %s6294_s0 = inlined_call_operand.vmem [shape: f32[512,64], index: 0, kind: input, shape index: {}]   ;;  %s6295_s1 = inlined_call_operand.vmem [shape: f32[512,64], index: 1, kind: input, shape index: {}]   ;;  %s6296_s2 = inlined_call_operand.vmem [shape: bf16[64,256], index: 2, kind: input, shape index: {}]   ;;  %s6297_s3 = inlined_call_operand.vmem [shape: f32[1,256], index: 3, kind: input, shape index: {}]   ;;  %s6298_s4 = inlined_call_operand.vmem [shape: bf16[256,256], index: 4, kind: input, shape index: {}]   ;;  %s6299_s5 = inlined_call_operand.vmem [shape: f32[1,256], index: 5, kind: input, shape index: {}]   ;;  %s6300_s6 = inlined_call_operand.vmem [shape: bf16[256,128], index: 6, kind: input, shape index: {}]   ;;  %s6301_s7 = inlined_call_operand.vmem [shape: f32[1,128], index: 7, kind: input, shape index: {}]   ;;  %s6302_s8 = inlined_call_operand.vmem [shape: bf16[64,256], index: 8, kind: input, shape index: {}]   ;;  %s6303_s9 = inlined_call_operand.vmem [shape: f32[1,256], index: 9, kind: input, shape index: {}]   ;;  %s6304_s10 = inlined_call_operand.vmem [shape: bf16[256,256], index: 10, kind: input, shape index: {}]   ;;  %s6305_s11 = inlined_call_operand.vmem [shape: f32[1,256], index: 11, kind: input, shape index: {}]   ;;  %s6306_s12 = inlined_call_operand.vmem [shape: bf16[256,128], index: 12, kind: input, shape index: {}]   ;;  %s6307_s13 = inlined_call_operand.vmem [shape: f32[1,128], index: 13, kind: input, shape index: {}]   ;;  %s6308_s14 = inlined_call_operand.vmem [shape: f32[512,128], index: 14, kind: output, shape index: {0}]   ;;  %s6309_s15 = inlined_call_operand.vmem [shape: f32[512,128], index: 15, kind: output, shape index: {1}]  }
   0x1 LB: > { %s3970_s19 = sadd.s32 4294967295, %s5083_s18   ;;  %p3974_p0 = scmp.ge.s32.totalorder %s5083_s18, 1  ;;  %s5083_s18 = sphi %s5167_s18, %s26_s18  }
   0x2   : > { %p452_p1 = scmp.lt.s32.totalorder %s5083_s18, 3 }
   0x4   : > { %p453_p2 = pnand %p3974_p0, %p452_p1 }
   0x5   : > { %v4477_v0 = vld [vmem:[%s6296_s2 + $0x4] ss:$8 sps:$4 sm:$0xff] (!%p453_p2)   ;;  %s3975_s22 = sshll.u32 (!%p453_p2), %s3970_s19, 5  ;;  %v4479_v1 = vld [vmem:[%s6296_s2] ss:$8 sps:$4 sm:$0xff] (!%p453_p2)   ;;  %v5085_v2 = vmov (!%p453_p2), 0  }
   0x6   : > { %456 = sbr.rel (%p453_p2) target bundleno = 1661 (0x67d), region = 76  ;;  %724 = vmatprep.mubr.bf16.mxu0 (!%p453_p2), %v5085_v2  ;;  %p511_p3 = scmp.lt.s32.totalorder (!%p453_p2), %s3975_s22, 63  ;;  %692 = vmatprep.subr.bf16.mxu0 (!%p453_p2), %v4477_v0  ;;  %v4480_v3 = vld [vmem:[%s6296_s2 + $0x14] ss:$8 sps:$4 sm:$0xff] (!%p453_p2)   ;;  %v4482_v4 = vld [vmem:[%s6296_s2 + $0x10] ss:$8 sps:$4 sm:$0xff] (!%p453_p2)  }
   0x7   : > { %693 = vmatpush1.bf16.msra.mxu0 (!%p453_p2), %v4479_v1  ;;  %v4483_v5 = vld [vmem:[%s6296_s2 + $0x24] ss:$8 sps:$4 sm:$0xff] (!%p453_p2)   ;;  %v4485_v6 = vld [vmem:[%s6296_s2 + $0x20] ss:$8 sps:$4 sm:$0xff] (!%p453_p2)   ;;  %v4486_v7 = vld [vmem:[%s6296_s2 + $0x34] ss:$8 sps:$4 sm:$0xff] (!%p453_p2)  }
   0x8   : > { %694 = vmatprep.subr.bf16.mxu0 (!%p453_p2), %v4480_v3  ;;  %v4488_v8 = vld [vmem:[%s6296_s2 + $0x30] ss:$8 sps:$4 sm:$0xff] (!%p453_p2)   ;;  %vm643_vm0 = vcmask (!%p453_p2), 523264   ;;  %v4489_v12 = vld [vmem:[%s6298_s4 + $0x4] ss:$8 sps:$4 sm:$0xff] (!%p453_p2)   ;;  %s5086_s23 = smov (!%p453_p2), 64  }
   0x9   : > { %v4491_v13 = vld [vmem:[%s6298_s4] ss:$8 sps:$4 sm:$0xff] (!%p453_p2)   ;;  %v4492_v14 = vld [vmem:[%s6298_s4 + $0x14] ss:$8 sps:$4 sm:$0xff] (!%p453_p2)   ;;  %1185 = vmatprep.subr.bf16.mxu1 (!%p453_p2), %v4489_v12  ;;  %v4494_v17 = vld [vmem:[%s6298_s4 + $0x10] ss:$8 sps:$4 sm:$0xff] (!%p453_p2)  }
   0xa   : > { %1186 = vmatpush1.bf16.msra.mxu1 (!%p453_p2), %v4491_v13  ;;  %v4495_v18 = vld [vmem:[%s6298_s4 + $0x24] ss:$8 sps:$4 sm:$0xff] (!%p453_p2)   ;;  %v4497_v20 = vld [vmem:[%s6298_s4 + $0x20] ss:$8 sps:$4 sm:$0xff] (!%p453_p2)   ;;  %v4498_v21 = vld [vmem:[%s6298_s4 + $0x34] ss:$8 sps:$4 sm:$0xff] (!%p453_p2)  }
   0xb   : > { %695 = vmatpush1.bf16.msra.mxu0 (!%p453_p2), %v4482_v4  ;;  %1187 = vmatprep.subr.bf16.mxu1 (!%p453_p2), %v4492_v14  ;;  %v4500_v24 = vld [vmem:[%s6298_s4 + $0x30] ss:$8 sps:$4 sm:$0xff] (!%p453_p2)   ;;  %v4501_v25 = vld [vmem:[%s6298_s4 + $0x44] ss:$8 sps:$4 sm:$0xff] (!%p453_p2)   ;;  %v4503_v27 = vld [vmem:[%s6298_s4 + $0x40] ss:$8 sps:$4 sm:$0xff] (!%p453_p2)  }
   0xc   : > { %696 = vmatprep.subr.bf16.mxu0 (!%p453_p2), %v4483_v5  ;;  %v4504_v29 = vld [vmem:[%s6298_s4 + $0x54] ss:$8 sps:$4 sm:$0xff] (!%p453_p2)   ;;  %v4506_v31 = vld [vmem:[%s6298_s4 + $0x50] ss:$8 sps:$4 sm:$0xff] (!%p453_p2)   ;;  %v4507_v32 = vld [vmem:[%s6298_s4 + $0x64] ss:$8 sps:$4 sm:$0xff] (!%p453_p2)  }
   0xd   : > { %s6311_s22 = smov (!%p511_p3, %s3975_s22), 63  ;;  %v4509_v34 = vld [vmem:[%s6298_s4 + $0x60] ss:$8 sps:$4 sm:$0xff]   ;;  %v4510_v35 = vld [vmem:[%s6298_s4 + $0x74] ss:$8 sps:$4 sm:$0xff]  }
   0xe   : > { %s5191_s16 = sshll.u32 %s6311_s22, 3  ;;  %1188 = vmatpush1.bf16.msra.mxu1 %v4494_v17  ;;  %v4512_v38 = vld [vmem:[%s6298_s4 + $0x70] ss:$8 sps:$4 sm:$0xff]   ;;  %v4513_v39 = vld [vmem:[%s6298_s4 + $0x84] ss:$8 sps:$4 sm:$0xff]  }
   0xf   : > { %s5203_s25 = scalar_lea.vmem %s6294_s0, %s5191_s16  ;;  %697 = vmatpush1.bf16.msra.mxu0 %v4485_v6  ;;  %1189 = vmatprep.subr.bf16.mxu1 %v4495_v18  ;;  %v4515_v41 = vld [vmem:[%s6298_s4 + $0x80] ss:$8 sps:$4 sm:$0xff]   ;;  %v4516_v42 = vld [vmem:[%s6298_s4 + $0x94] ss:$8 sps:$4 sm:$0xff]   ;;  %v4518_v45 = vld [vmem:[%s6298_s4 + $0x90] ss:$8 sps:$4 sm:$0xff]   ;;  %s5599_s21 = scalar_lea.vmem %s6309_s15, %s5191_s16 }
  0x10   : > { %v535_v9 = vld [vmem:[%s5203_s25] sm:$0xff]  ;;  %v536_v10 = vld [vmem:[%s5203_s25 + $0x8] sm:$0xff]  ;;  %698 = vmatprep.subr.bf16.mxu0 %v4486_v7  ;;  %v537_v15 = vld [vmem:[%s5203_s25 + $0x10] sm:$0xff]  ;;  %s5834_s20 = scalar_lea.vmem %s6295_s1, %s5191_s16  ;;  %s6232_s19 = scalar_lea.vmem %s6308_s14, %s5191_s16 }
  0x11   : > { %v567_v11 = vpack.c.bf16 %v536_v10, %v535_v9  ;;  %v538_v16 = vld [vmem:[%s5203_s25 + $0x18] sm:$0xff]  ;;  %v539_v22 = vld [vmem:[%s5203_s25 + $0x20] sm:$0xff]  ;;  %v540_v23 = vld [vmem:[%s5203_s25 + $0x28] sm:$0xff] }
  0x12   : > { %v568_v19 = vpack.c.bf16 %v538_v16, %v537_v15  ;;  %1190 = vmatpush1.bf16.msra.mxu1 %v4497_v20  ;;  %v569_v26 = vpack.c.bf16 %v540_v23, %v539_v22  ;;  %v541_v28 = vld [vmem:[%s5203_s25 + $0x30] sm:$0xff]  ;;  %v542_v30 = vld [vmem:[%s5203_s25 + $0x38] sm:$0xff]  ;;  %v543_v36 = vld [vmem:[%s5203_s25 + $0x40] sm:$0xff] }
  0x13   : > { %699 = vmatpush1.bf16.msra.mxu0 %v4488_v8  ;;  %1191 = vmatprep.subr.bf16.mxu1 %v4498_v21  ;;  %v570_v33 = vpack.c.bf16 %v542_v30, %v541_v28  ;;  %v544_v37 = vld [vmem:[%s5203_s25 + $0x48] sm:$0xff]  ;;  %v545_v43 = vld [vmem:[%s5203_s25 + $0x50] sm:$0xff]  ;;  %v546_v44 = vld [vmem:[%s5203_s25 + $0x58] sm:$0xff] }
  0x14   : > { %v571_v40 = vpack.c.bf16 %v544_v37, %v543_v36  ;;  %v4519_v46 = vld [vmem:[%s6298_s4 + $0xa4] ss:$8 sps:$4 sm:$0xff]   ;;  %v572_v47 = vpack.c.bf16 %v546_v44, %v545_v43  ;;  %v4521_v48 = vld [vmem:[%s6298_s4 + $0xa0] ss:$8 sps:$4 sm:$0xff]   ;;  %v4522_v49 = vld [vmem:[%s6298_s4 + $0xb4] ss:$8 sps:$4 sm:$0xff]  }
  0x15   : > { %v547_v50 = vld [vmem:[%s5203_s25 + $0x60] sm:$0xff]  ;;  %v548_v51 = vld [vmem:[%s5203_s25 + $0x68] sm:$0xff]  ;;  %v4524_v52 = vld [vmem:[%s6298_s4 + $0xb0] ss:$8 sps:$4 sm:$0xff]  }
  0x16   : > { %3991 = vmatmul.mubr.msk.bf16.vlgmr.msra.gmra.mrb[0].mxu0 %vm643_vm0, %v567_v11  ;;  %1192 = vmatpush1.bf16.msra.mxu1 %v4500_v24  ;;  %v4525_v53 = vld [vmem:[%s6298_s4 + $0xc4] ss:$8 sps:$4 sm:$0xff]   ;;  %v573_v54 = vpack.c.bf16 %v548_v51, %v547_v50  ;;  %v4527_v55 = vld [vmem:[%s6298_s4 + $0xc0] ss:$8 sps:$4 sm:$0xff]   ;;  %v4528_v56 = vld [vmem:[%s6298_s4 + $0xd4] ss:$8 sps:$4 sm:$0xff]  }
  0x17   : > { %734 = vmatprep.mubr.bf16.mxu0 %v5085_v2  ;;  %1193 = vmatprep.subr.bf16.mxu1 %v4501_v25  ;;  %v549_v57 = vld [vmem:[%s5203_s25 + $0x70] sm:$0xff]  ;;  %v550_v58 = vld [vmem:[%s5203_s25 + $0x78] sm:$0xff]  ;;  %v551_v60 = vld [vmem:[%s5203_s25 + $0x80] sm:$0xff] }
  0x18   : > { %v574_v59 = vpack.c.bf16 %v550_v58, %v549_v57  ;;  %v552_v61 = vld [vmem:[%s5203_s25 + $0x88] sm:$0xff]  ;;  %v553_v63 = vld [vmem:[%s5203_s25 + $0x90] sm:$0xff]  ;;  %v554_v0 = vld [vmem:[%s5203_s25 + $0x98] sm:$0xff] }
  0x19   : > { %v575_v62 = vpack.c.bf16 %v552_v61, %v551_v60  ;;  %v576_v1 = vpack.c.bf16 %v554_v0, %v553_v63  ;;  %v555_v3 = vld [vmem:[%s5203_s25 + $0xa0] sm:$0xff]  ;;  %v556_v4 = vld [vmem:[%s5203_s25 + $0xa8] sm:$0xff]  ;;  %v557_v6 = vld [vmem:[%s5203_s25 + $0xb0] sm:$0xff] }
  0x1a   : > { %1194 = vmatpush1.bf16.msra.mxu1 %v4503_v27  ;;  %v577_v5 = vpack.c.bf16 %v556_v4, %v555_v3  ;;  %v558_v7 = vld [vmem:[%s5203_s25 + $0xb8] sm:$0xff]  ;;  %v4531_v10 = vld [vmem:[%s6298_s4 + $0xe4] ss:$8 sps:$4 sm:$0xff]   ;;  %v4533_v11 = vld [vmem:[%s6298_s4 + $0xe0] ss:$8 sps:$4 sm:$0xff]  }
  0x1b   : > { %1195 = vmatprep.subr.bf16.mxu1 %v4504_v29  ;;  %v4530_v8 = vld [vmem:[%s6298_s4 + $0xd0] ss:$8 sps:$4 sm:$0xff]   ;;  %v578_v9 = vpack.c.bf16 %v558_v7, %v557_v6  ;;  %v4534_v12 = vld [vmem:[%s6298_s4 + $0xf4] ss:$8 sps:$4 sm:$0xff]   ;;  %v559_v13 = vld [vmem:[%s5203_s25 + $0xc0] sm:$0xff] }
  0x1c   : > { %v560_v14 = vld [vmem:[%s5203_s25 + $0xc8] sm:$0xff]  ;;  %v4536_v15 = vld [vmem:[%s6298_s4 + $0xf0] ss:$8 sps:$4 sm:$0xff]   ;;  %v563_v20 = vld [vmem:[%s5203_s25 + $0xe0] sm:$0xff] }
  0x1d   : > { %v579_v16 = vpack.c.bf16 %v560_v14, %v559_v13  ;;  %v561_v17 = vld [vmem:[%s5203_s25 + $0xd0] sm:$0xff]  ;;  %v562_v18 = vld [vmem:[%s5203_s25 + $0xd8] sm:$0xff]  ;;  %v564_v21 = vld [vmem:[%s5203_s25 + $0xe8] sm:$0xff] }
  0x1e   : > { %3992 = vmatmul.mubr.msk.bf16.gmra.mrb[4].mxu0 %vm643_vm0, %v568_v19  ;;  %1196 = vmatpush1.bf16.msra.mxu1 %v4506_v31  ;;  %v580_v19 = vpack.c.bf16 %v562_v18, %v561_v17  ;;  %v581_v22 = vpack.c.bf16 %v564_v21, %v563_v20  ;;  %v565_v23 = vld [vmem:[%s5203_s25 + $0xf0] sm:$0xff]  ;;  %v566_v24 = vld [vmem:[%s5203_s25 + $0xf8] sm:$0xff]  ;;  %v591_v29 = vld [vmem:[%s6297_s3] sm:$0x3] }
  0x1f   : > { %744 = vmatprep.mubr.bf16.mxu0 %v5085_v2  ;;  %1197 = vmatprep.subr.bf16.mxu1 %v4507_v32  ;;  %v582_v25 = vpack.c.bf16 %v566_v24, %v565_v23  ;;  %v4540_v43 = vld [vmem:[%s6300_s6 + $0x8] sm:$0xff]   ;;  %v4542_v51 = vld [vmem:[%s6300_s6 + $0x10] sm:$0xff]   ;;  %v4544_v61 = vld [vmem:[%s6300_s6 + $0x18] sm:$0xff]  }
  0x20   : > { %v4545_v63 = vld [vmem:[%s6300_s6 + $0x60] sm:$0xff]   ;;  %v4548_v17 = vld [vmem:[%s6300_s6 + $0x28] sm:$0xff]  }
  0x21   : > { %v4546_v6 = vld [vmem:[%s6300_s6 + $0x20] sm:$0xff]  }
  0x22   : > { %1198 = vmatpush1.bf16.msra.mxu1 %v4509_v34  ;;  %v4537_v34 = vld [vmem:[%s6300_s6 + $0x40] sm:$0xff]  }
  0x23   : > { %1199 = vmatprep.subr.bf16.mxu1 %v4510_v35  ;;  %v4538_v35 = vld [vmem:[%s6300_s6] sm:$0xff]   ;;  %4227 = vmatprep.subr.bf16.mxu0 %v4537_v34 }
  0x24   : > { %4228 = vmatpush3.bf16.msra.mxu0 %v4538_v35 }
  0x26   : > { %3993 = vmatmul.mubr.msk.bf16.gmra.mrb[8].mxu0 %vm643_vm0, %v569_v26  ;;  %1200 = vmatpush1.bf16.msra.mxu1 %v4512_v38  ;;  %v593_v26 = vlaneseq }
  0x27   : > { %754 = vmatprep.mubr.bf16.mxu0 %v5085_v2  ;;  %1201 = vmatprep.subr.bf16.mxu1 %v4513_v39 }
  0x28   : > { %v594_v27 = vshrl.u32 %v593_v26, 7 }
  0x2a   : > { %1202 = vmatpush1.bf16.msra.mxu1 %v4515_v41  ;;  %v5367_v28 = vsub.s32 0, %v594_v27  ;;  %v5372_v30 = vsub.s32 1, %v594_v27 }
  0x2b   : > { %1203 = vmatprep.subr.bf16.mxu1 %v4516_v42  ;;  %v4539_v42 = vld [vmem:[%s6300_s6 + $0x48] sm:$0xff]  }
  0x2c   : > { %v5375_v31 = vrot.slane %v591_v29, %v5367_v28  ;;  %v5378_v32 = vrot.slane %v591_v29, %v5372_v30  ;;  %4229 = vmatprep.subr.bf16.mxu0 %v4539_v42 }
  0x2d   : > { %4230 = vmatpush3.bf16.msra.mxu0 %v4540_v43 }
  0x2e   : > { %3994 = vmatmul.mubr.msk.bf16.gmra.mrb[12].mxu0 %vm643_vm0, %v570_v33  ;;  %1204 = vmatpush1.bf16.msra.mxu1 %v4518_v45  ;;  %v4541_v45 = vld [vmem:[%s6300_s6 + $0x50] sm:$0xff]  }
  0x2f   : > { %764 = vmatprep.mubr.bf16.mxu0 %v5085_v2  ;;  %1205 = vmatprep.subr.bf16.mxu1 %v4519_v46 }
  0x30   : > { %4231 = vmatprep.subr.bf16.mxu0 %v4541_v45 }
  0x31   : > { %4232 = vmatpush3.bf16.msra.mxu0 %v4542_v51 }
  0x32   : > { %1206 = vmatpush1.bf16.msra.mxu1 %v4521_v48 }
  0x33   : > { %1207 = vmatprep.subr.bf16.mxu1 %v4522_v49 }
  0x36   : > { %3995 = vmatmul.mubr.msk.bf16.gmra.mrb[16].mxu0 %vm643_vm0, %v571_v40  ;;  %1208 = vmatpush1.bf16.msra.mxu1 %v4524_v52 }
  0x37   : > { %774 = vmatprep.mubr.bf16.mxu0 %v5085_v2  ;;  %1209 = vmatprep.subr.bf16.mxu1 %v4525_v53 }
  0x3a   : > { %1210 = vmatpush1.bf16.msra.mxu1 %v4527_v55 }
  0x3b   : > { %1211 = vmatprep.subr.bf16.mxu1 %v4528_v56 }
  0x3e   : > { %3996 = vmatmul.mubr.msk.bf16.gmra.mrb[20].mxu0 %vm643_vm0, %v572_v47  ;;  %1212 = vmatpush1.bf16.msra.mxu1 %v4530_v8 }
  0x3f   : > { %784 = vmatprep.mubr.bf16.mxu0 %v5085_v2  ;;  %1213 = vmatprep.subr.bf16.mxu1 %v4531_v10 }
  0x42   : > { %1214 = vmatpush1.bf16.msra.mxu1 %v4533_v11 }
  0x43   : > { %1215 = vmatprep.subr.bf16.mxu1 %v4534_v12 }
  0x46   : > { %3997 = vmatmul.mubr.msk.bf16.gmra.mrb[24].mxu0 %vm643_vm0, %v573_v54  ;;  %1216 = vmatpush1.bf16.msra.mxu1 %v4536_v15  ;;  %v4543_v54 = vld [vmem:[%s6300_s6 + $0x58] sm:$0xff]  }
  0x47   : > { %794 = vmatprep.mubr.bf16.mxu0 %v5085_v2  ;;  %4233 = vmatprep.subr.bf16.mxu0 %v4543_v54 }
  0x48   : > { %4234 = vmatpush3.bf16.msra.mxu0 %v4544_v61 }
  0x49   : > { %4235 = vmatprep.subr.bf16.mxu0 %v4545_v63 }
  0x4c   : > { %4236 = vmatpush3.bf16.msra.mxu0 %v4546_v6 }
  0x4e   : > { %3998 = vmatmul.mubr.msk.bf16.gmra.mrb[28].mxu0 %vm643_vm0, %v574_v59 }
  0x4f   : > { %804 = vmatprep.mubr.bf16.mxu0 %v5085_v2 }
  0x56   : > { %3999 = vmatmul.mubr.msk.bf16.gmra.mrb[32].mxu0 %vm643_vm0, %v575_v62 }
  0x57   : > { %814 = vmatprep.mubr.bf16.mxu0 %v5085_v2 }
  0x5e   : > { %4000 = vmatmul.mubr.msk.bf16.gmra.mrb[36].mxu0 %vm643_vm0, %v576_v1 }
  0x5f   : > { %824 = vmatprep.mubr.bf16.mxu0 %v5085_v2 }
  0x66   : > { %4001 = vmatmul.mubr.msk.bf16.gmra.mrb[40].mxu0 %vm643_vm0, %v577_v5 }
  0x67   : > { %834 = vmatprep.mubr.bf16.mxu0 %v5085_v2 }
  0x6e   : > { %4002 = vmatmul.mubr.msk.bf16.gmra.mrb[44].mxu0 %vm643_vm0, %v578_v9  ;;  %v4547_v9 = vld [vmem:[%s6300_s6 + $0x68] sm:$0xff]  }
  0x6f   : > { %844 = vmatprep.mubr.bf16.mxu0 %v5085_v2  ;;  %4237 = vmatprep.subr.bf16.mxu0 %v4547_v9 }
  0x70   : > { %4238 = vmatpush3.bf16.msra.mxu0 %v4548_v17 }
  0x76   : > { %4003 = vmatmul.mubr.msk.bf16.gmra.mrb[48].mxu0 %vm643_vm0, %v579_v16 }
  0x77   : > { %854 = vmatprep.mubr.bf16.mxu0 %v5085_v2 }
  0x7e   : > { %4004 = vmatmul.mubr.msk.bf16.gmra.mrb[52].mxu0 %vm643_vm0, %v580_v19 }
  0x7f   : > { %864 = vmatprep.mubr.bf16.mxu0 %v5085_v2 }
  0x86   : > { %4005 = vmatmul.mubr.msk.bf16.gmra.mrb[56].mxu0 %vm643_vm0, %v581_v22 }
  0x87   : > { %874 = vmatprep.mubr.bf16.mxu0 %v5085_v2 }
  0x8e   : > { %4006 = vmatmul.mubr.msk.bf16.gmra.mrb[60].mxu0 %vm643_vm0, %v582_v25 }
  0xe9   : > { %v726_v33 = vpop.f32.mrb[0].mxu0 }
  0xea   : > { %v727_v36 = vadd.f32 %v726_v33, %v5375_v31  ;;  %v728_v37 = vpop.f32.mrb[1].mxu0 }
  0xeb   : > { %v729_v38 = vadd.f32 %v728_v37, %v5378_v32  ;;  %v730_v39 = vpop.f32.mrb[2].mxu0 }
  0xec   : > { %v731_v40 = vadd.f32 %v730_v39, %v5375_v31  ;;  %v732_v41 = vpop.f32.mrb[3].mxu0  ;;  %v885_v46 = vmax.f32 %v727_v36, 0.0 }
  0xed   : > { %v733_v44 = vadd.f32 %v732_v41, %v5378_v32  ;;  %v886_v48 = vmax.f32 %v729_v38, 0.0 }
  0xee   : > { %v887_v47 = vmax.f32 %v731_v40, 0.0 }
  0xef   : > { %v888_v49 = vmax.f32 %v733_v44, 0.0 }
  0xf0   : > { %v949_v50 = vpack.c.bf16 %v887_v47, %v885_v46 }
  0xf1   : > { %v736_v52 = vpop.f32.mrb[4].mxu0  ;;  %v950_v53 = vpack.c.bf16 %v888_v49, %v886_v48 }
  0xf2   : > { %v737_v55 = vadd.f32 %v736_v52, %v5375_v31  ;;  %v738_v56 = vpop.f32.mrb[5].mxu0 }
  0xf3   : > { %v739_v57 = vadd.f32 %v738_v56, %v5378_v32  ;;  %v740_v58 = vpop.f32.mrb[6].mxu0  ;;  %1217 = vmatprep.mubr.bf16.mxu1 %v950_v53 }
  0xf4   : > { %v741_v59 = vadd.f32 %v740_v58, %v5375_v31  ;;  %v742_v60 = vpop.f32.mrb[7].mxu0  ;;  %1218 = vmatmul.mubr.bf16.vlgmr.msra.gmra.mrb[0].mxu1 %v949_v50  ;;  %v889_v0 = vmax.f32 %v737_v55, 0.0 }
  0xf5   : > { %v743_v62 = vadd.f32 %v742_v60, %v5378_v32  ;;  %v890_v3 = vmax.f32 %v739_v57, 0.0 }
  0xf6   : > { %v891_v1 = vmax.f32 %v741_v59, 0.0 }
  0xf7   : > { %v892_v4 = vmax.f32 %v743_v62, 0.0 }
  0xf8   : > { %v951_v5 = vpack.c.bf16 %v891_v1, %v889_v0 }
  0xf9   : > { %v952_v7 = vpack.c.bf16 %v892_v4, %v890_v3  ;;  %v746_v8 = vpop.f32.mrb[8].mxu0 }
  0xfa   : > { %v747_v10 = vadd.f32 %v746_v8, %v5375_v31  ;;  %v748_v11 = vpop.f32.mrb[9].mxu0 }
  0xfb   : > { %v749_v12 = vadd.f32 %v748_v11, %v5378_v32  ;;  %v750_v13 = vpop.f32.mrb[10].mxu0  ;;  %1227 = vmatprep.mubr.bf16.mxu1 %v952_v7 }
  0xfc   : > { %v893_v14 = vmax.f32 %v747_v10, 0.0  ;;  %v751_v15 = vadd.f32 %v750_v13, %v5375_v31  ;;  %v752_v16 = vpop.f32.mrb[11].mxu0  ;;  %1228 = vmatmul.mubr.bf16.gmra.mrb[4].mxu1 %v951_v5 }
  0xfd   : > { %v894_v18 = vmax.f32 %v749_v12, 0.0  ;;  %v753_v19 = vadd.f32 %v752_v16, %v5378_v32 }
  0xfe   : > { %v895_v20 = vmax.f32 %v751_v15, 0.0 }
  0xff   : > { %v896_v21 = vmax.f32 %v753_v19, 0.0 }
 0x100   : > { %v953_v22 = vpack.c.bf16 %v895_v20, %v893_v14 }
 0x101   : > { %v954_v23 = vpack.c.bf16 %v896_v21, %v894_v18  ;;  %v756_v24 = vpop.f32.mrb[12].mxu0 }
 0x102   : > { %v757_v25 = vadd.f32 %v756_v24, %v5375_v31  ;;  %v758_v26 = vpop.f32.mrb[13].mxu0 }
 0x103   : > { %v759_v27 = vadd.f32 %v758_v26, %v5378_v32  ;;  %v760_v29 = vpop.f32.mrb[14].mxu0  ;;  %1237 = vmatprep.mubr.bf16.mxu1 %v954_v23 }
 0x104   : > { %v897_v33 = vmax.f32 %v757_v25, 0.0  ;;  %v761_v34 = vadd.f32 %v760_v29, %v5375_v31  ;;  %v762_v35 = vpop.f32.mrb[15].mxu0  ;;  %1238 = vmatmul.mubr.bf16.gmra.mrb[8].mxu1 %v953_v22 }
 0x105   : > { %v898_v36 = vmax.f32 %v759_v27, 0.0  ;;  %v763_v37 = vadd.f32 %v762_v35, %v5378_v32 }
 0x106   : > { %v899_v38 = vmax.f32 %v761_v34, 0.0 }
 0x107   : > { %v900_v39 = vmax.f32 %v763_v37, 0.0 }
 0x108   : > { %v955_v40 = vpack.c.bf16 %v899_v38, %v897_v33 }
 0x109   : > { %v956_v41 = vpack.c.bf16 %v900_v39, %v898_v36  ;;  %v766_v42 = vpop.f32.mrb[16].mxu0 }
 0x10a   : > { %v767_v43 = vadd.f32 %v766_v42, %v5375_v31  ;;  %v768_v44 = vpop.f32.mrb[17].mxu0 }
 0x10b   : > { %v769_v45 = vadd.f32 %v768_v44, %v5378_v32  ;;  %v770_v46 = vpop.f32.mrb[18].mxu0  ;;  %1247 = vmatprep.mubr.bf16.mxu1 %v956_v41 }
 0x10c   : > { %v901_v47 = vmax.f32 %v767_v43, 0.0  ;;  %v771_v48 = vadd.f32 %v770_v46, %v5375_v31  ;;  %v772_v49 = vpop.f32.mrb[19].mxu0  ;;  %1248 = vmatmul.mubr.bf16.gmra.mrb[12].mxu1 %v955_v40 }
 0x10d   : > { %v902_v50 = vmax.f32 %v769_v45, 0.0  ;;  %v773_v51 = vadd.f32 %v772_v49, %v5378_v32 }
 0x10e   : > { %v903_v52 = vmax.f32 %v771_v48, 0.0 }
 0x10f   : > { %v904_v53 = vmax.f32 %v773_v51, 0.0 }
 0x110   : > { %v957_v54 = vpack.c.bf16 %v903_v52, %v901_v47 }
 0x111   : > { %v958_v55 = vpack.c.bf16 %v904_v53, %v902_v50  ;;  %v776_v56 = vpop.f32.mrb[20].mxu0 }
 0x112   : > { %v777_v57 = vadd.f32 %v776_v56, %v5375_v31  ;;  %v778_v58 = vpop.f32.mrb[21].mxu0 }
 0x113   : > { %v779_v59 = vadd.f32 %v778_v58, %v5378_v32  ;;  %v780_v60 = vpop.f32.mrb[22].mxu0  ;;  %1257 = vmatprep.mubr.bf16.mxu1 %v958_v55 }
 0x114   : > { %v905_v61 = vmax.f32 %v777_v57, 0.0  ;;  %v781_v62 = vadd.f32 %v780_v60, %v5375_v31  ;;  %v782_v63 = vpop.f32.mrb[23].mxu0  ;;  %1258 = vmatmul.mubr.bf16.gmra.mrb[16].mxu1 %v957_v54 }
 0x115   : > { %v906_v0 = vmax.f32 %v779_v59, 0.0  ;;  %v783_v1 = vadd.f32 %v782_v63, %v5378_v32 }
 0x116   : > { %v907_v3 = vmax.f32 %v781_v62, 0.0 }
 0x117   : > { %v908_v4 = vmax.f32 %v783_v1, 0.0 }
 0x118   : > { %v959_v5 = vpack.c.bf16 %v907_v3, %v905_v61 }
 0x119   : > { %v960_v6 = vpack.c.bf16 %v908_v4, %v906_v0  ;;  %v786_v7 = vpop.f32.mrb[24].mxu0 }
 0x11a   : > { %v787_v8 = vadd.f32 %v786_v7, %v5375_v31  ;;  %v788_v9 = vpop.f32.mrb[25].mxu0 }
 0x11b   : > { %v789_v10 = vadd.f32 %v788_v9, %v5378_v32  ;;  %v790_v11 = vpop.f32.mrb[26].mxu0  ;;  %1267 = vmatprep.mubr.bf16.mxu1 %v960_v6 }
 0x11c   : > { %v909_v12 = vmax.f32 %v787_v8, 0.0  ;;  %v791_v13 = vadd.f32 %v790_v11, %v5375_v31  ;;  %v792_v14 = vpop.f32.mrb[27].mxu0  ;;  %1268 = vmatmul.mubr.bf16.gmra.mrb[20].mxu1 %v959_v5 }
 0x11d   : > { %v910_v15 = vmax.f32 %v789_v10, 0.0  ;;  %v793_v16 = vadd.f32 %v792_v14, %v5378_v32 }
 0x11e   : > { %v911_v17 = vmax.f32 %v791_v13, 0.0 }
 0x11f   : > { %v912_v18 = vmax.f32 %v793_v16, 0.0 }
 0x120   : > { %v961_v19 = vpack.c.bf16 %v911_v17, %v909_v12 }
 0x121   : > { %v962_v20 = vpack.c.bf16 %v912_v18, %v910_v15  ;;  %v796_v21 = vpop.f32.mrb[28].mxu0 }
 0x122   : > { %v797_v22 = vadd.f32 %v796_v21, %v5375_v31  ;;  %v798_v23 = vpop.f32.mrb[29].mxu0 }
 0x123   : > { %v799_v24 = vadd.f32 %v798_v23, %v5378_v32  ;;  %v800_v25 = vpop.f32.mrb[30].mxu0  ;;  %1277 = vmatprep.mubr.bf16.mxu1 %v962_v20 }
 0x124   : > { %v913_v26 = vmax.f32 %v797_v22, 0.0  ;;  %v801_v27 = vadd.f32 %v800_v25, %v5375_v31  ;;  %v802_v29 = vpop.f32.mrb[31].mxu0  ;;  %1278 = vmatmul.mubr.bf16.gmra.mrb[24].mxu1 %v961_v19 }
 0x125   : > { %v914_v33 = vmax.f32 %v799_v24, 0.0  ;;  %v803_v34 = vadd.f32 %v802_v29, %v5378_v32 }
 0x126   : > { %v915_v35 = vmax.f32 %v801_v27, 0.0 }
 0x127   : > { %v916_v36 = vmax.f32 %v803_v34, 0.0 }
 0x128   : > { %v963_v37 = vpack.c.bf16 %v915_v35, %v913_v26 }
 0x129   : > { %v964_v38 = vpack.c.bf16 %v916_v36, %v914_v33  ;;  %v806_v39 = vpop.f32.mrb[32].mxu0 }
 0x12a   : > { %v807_v40 = vadd.f32 %v806_v39, %v5375_v31  ;;  %v808_v41 = vpop.f32.mrb[33].mxu0 }
 0x12b   : > { %v809_v42 = vadd.f32 %v808_v41, %v5378_v32  ;;  %v810_v43 = vpop.f32.mrb[34].mxu0  ;;  %1287 = vmatprep.mubr.bf16.mxu1 %v964_v38 }
 0x12c   : > { %v917_v44 = vmax.f32 %v807_v40, 0.0  ;;  %v811_v45 = vadd.f32 %v810_v43, %v5375_v31  ;;  %v812_v46 = vpop.f32.mrb[35].mxu0  ;;  %1288 = vmatmul.mubr.bf16.gmra.mrb[28].mxu1 %v963_v37 }
 0x12d   : > { %v918_v47 = vmax.f32 %v809_v42, 0.0  ;;  %v813_v48 = vadd.f32 %v812_v46, %v5378_v32 }
 0x12e   : > { %v919_v49 = vmax.f32 %v811_v45, 0.0 }
 0x12f   : > { %v920_v50 = vmax.f32 %v813_v48, 0.0 }
 0x130   : > { %v965_v51 = vpack.c.bf16 %v919_v49, %v917_v44 }
 0x131   : > { %v966_v52 = vpack.c.bf16 %v920_v50, %v918_v47  ;;  %v816_v53 = vpop.f32.mrb[36].mxu0 }
 0x132   : > { %v817_v54 = vadd.f32 %v816_v53, %v5375_v31  ;;  %v818_v55 = vpop.f32.mrb[37].mxu0 }
 0x133   : > { %v819_v56 = vadd.f32 %v818_v55, %v5378_v32  ;;  %v820_v57 = vpop.f32.mrb[38].mxu0  ;;  %1297 = vmatprep.mubr.bf16.mxu1 %v966_v52 }
 0x134   : > { %v921_v58 = vmax.f32 %v817_v54, 0.0  ;;  %v821_v59 = vadd.f32 %v820_v57, %v5375_v31  ;;  %v822_v60 = vpop.f32.mrb[39].mxu0  ;;  %1298 = vmatmul.mubr.bf16.gmra.mrb[32].mxu1 %v965_v51 }
 0x135   : > { %v922_v61 = vmax.f32 %v819_v56, 0.0  ;;  %v823_v62 = vadd.f32 %v822_v60, %v5378_v32 }
 0x136   : > { %v923_v63 = vmax.f32 %v821_v59, 0.0 }
 0x137   : > { %v924_v0 = vmax.f32 %v823_v62, 0.0 }
 0x138   : > { %v967_v1 = vpack.c.bf16 %v923_v63, %v921_v58 }
 0x139   : > { %v968_v3 = vpack.c.bf16 %v924_v0, %v922_v61  ;;  %v826_v4 = vpop.f32.mrb[40].mxu0 }
 0x13a   : > { %v827_v5 = vadd.f32 %v826_v4, %v5375_v31  ;;  %v828_v6 = vpop.f32.mrb[41].mxu0 }
 0x13b   : > { %v829_v7 = vadd.f32 %v828_v6, %v5378_v32  ;;  %v830_v8 = vpop.f32.mrb[42].mxu0  ;;  %1307 = vmatprep.mubr.bf16.mxu1 %v968_v3  ;;  %v4549_v6 = vld [vmem:[%s6300_s6 + $0x70] sm:$0xff]  }
 0x13c   : > { %v925_v9 = vmax.f32 %v827_v5, 0.0  ;;  %v831_v10 = vadd.f32 %v830_v8, %v5375_v31  ;;  %v832_v11 = vpop.f32.mrb[43].mxu0  ;;  %1308 = vmatmul.mubr.bf16.gmra.mrb[36].mxu1 %v967_v1  ;;  %4239 = vmatprep.subr.bf16.mxu0 %v4549_v6 }
 0x13d   : > { %v926_v12 = vmax.f32 %v829_v7, 0.0  ;;  %v833_v13 = vadd.f32 %v832_v11, %v5378_v32 }
 0x13e   : > { %v927_v14 = vmax.f32 %v831_v10, 0.0  ;;  %v4550_v10 = vld [vmem:[%s6300_s6 + $0x30] sm:$0xff]  }
 0x13f   : > { %v928_v15 = vmax.f32 %v833_v13, 0.0  ;;  %4240 = vmatpush3.bf16.msra.mxu0 %v4550_v10 }
 0x140   : > { %v969_v16 = vpack.c.bf16 %v927_v14, %v925_v9 }
 0x141   : > { %v970_v17 = vpack.c.bf16 %v928_v15, %v926_v12  ;;  %v836_v18 = vpop.f32.mrb[44].mxu0 }
 0x142   : > { %v837_v19 = vadd.f32 %v836_v18, %v5375_v31  ;;  %v838_v20 = vpop.f32.mrb[45].mxu0 }
 0x143   : > { %v839_v21 = vadd.f32 %v838_v20, %v5378_v32  ;;  %v840_v22 = vpop.f32.mrb[46].mxu0  ;;  %1317 = vmatprep.mubr.bf16.mxu1 %v970_v17 }
 0x144   : > { %v929_v23 = vmax.f32 %v837_v19, 0.0  ;;  %v841_v24 = vadd.f32 %v840_v22, %v5375_v31  ;;  %v842_v25 = vpop.f32.mrb[47].mxu0  ;;  %1318 = vmatmul.mubr.bf16.gmra.mrb[40].mxu1 %v969_v16 }
 0x145   : > { %v930_v26 = vmax.f32 %v839_v21, 0.0  ;;  %v843_v27 = vadd.f32 %v842_v25, %v5378_v32 }
 0x146   : > { %v931_v29 = vmax.f32 %v841_v24, 0.0 }
 0x147   : > { %v932_v33 = vmax.f32 %v843_v27, 0.0  ;;  %v4551_v27 = vld [vmem:[%s6300_s6 + $0x78] sm:$0xff]  }
 0x148   : > { %v971_v34 = vpack.c.bf16 %v931_v29, %v929_v23  ;;  %4241 = vmatprep.subr.bf16.mxu0 %v4551_v27 }
 0x149   : > { %v972_v35 = vpack.c.bf16 %v932_v33, %v930_v26  ;;  %v846_v36 = vpop.f32.mrb[48].mxu0  ;;  %v4552_v33 = vld [vmem:[%s6300_s6 + $0x38] sm:$0xff]  }
 0x14a   : > { %v847_v37 = vadd.f32 %v846_v36, %v5375_v31  ;;  %v848_v38 = vpop.f32.mrb[49].mxu0  ;;  %4242 = vmatpush3.bf16.msra.mxu0 %v4552_v33 }
 0x14b   : > { %v849_v39 = vadd.f32 %v848_v38, %v5378_v32  ;;  %v850_v40 = vpop.f32.mrb[50].mxu0  ;;  %1327 = vmatprep.mubr.bf16.mxu1 %v972_v35 }
 0x14c   : > { %v933_v41 = vmax.f32 %v847_v37, 0.0  ;;  %v851_v42 = vadd.f32 %v850_v40, %v5375_v31  ;;  %v852_v43 = vpop.f32.mrb[51].mxu0  ;;  %1328 = vmatmul.mubr.bf16.gmra.mrb[44].mxu1 %v971_v34 }
 0x14d   : > { %v934_v44 = vmax.f32 %v849_v39, 0.0  ;;  %v853_v45 = vadd.f32 %v852_v43, %v5378_v32 }
 0x14e   : > { %v935_v46 = vmax.f32 %v851_v42, 0.0 }
 0x14f   : > { %v936_v47 = vmax.f32 %v853_v45, 0.0 }
 0x150   : > { %v973_v48 = vpack.c.bf16 %v935_v46, %v933_v41 }
 0x151   : > { %v974_v49 = vpack.c.bf16 %v936_v47, %v934_v44  ;;  %v856_v50 = vpop.f32.mrb[52].mxu0 }
 0x152   : > { %v857_v51 = vadd.f32 %v856_v50, %v5375_v31  ;;  %v858_v52 = vpop.f32.mrb[53].mxu0 }
 0x153   : > { %v859_v53 = vadd.f32 %v858_v52, %v5378_v32  ;;  %v860_v54 = vpop.f32.mrb[54].mxu0  ;;  %1337 = vmatprep.mubr.bf16.mxu1 %v974_v49 }
 0x154   : > { %v937_v55 = vmax.f32 %v857_v51, 0.0  ;;  %v861_v56 = vadd.f32 %v860_v54, %v5375_v31  ;;  %v862_v57 = vpop.f32.mrb[55].mxu0  ;;  %1338 = vmatmul.mubr.bf16.gmra.mrb[48].mxu1 %v973_v48 }
 0x155   : > { %v938_v58 = vmax.f32 %v859_v53, 0.0  ;;  %v863_v59 = vadd.f32 %v862_v57, %v5378_v32 }
 0x156   : > { %v939_v60 = vmax.f32 %v861_v56, 0.0 }
 0x157   : > { %v940_v61 = vmax.f32 %v863_v59, 0.0 }
 0x158   : > { %v975_v62 = vpack.c.bf16 %v939_v60, %v937_v55 }
 0x159   : > { %v976_v63 = vpack.c.bf16 %v940_v61, %v938_v58  ;;  %v866_v0 = vpop.f32.mrb[56].mxu0 }
 0x15a   : > { %v867_v1 = vadd.f32 %v866_v0, %v5375_v31  ;;  %v868_v3 = vpop.f32.mrb[57].mxu0 }
 0x15b   : > { %v869_v4 = vadd.f32 %v868_v3, %v5378_v32  ;;  %v870_v5 = vpop.f32.mrb[58].mxu0  ;;  %1347 = vmatprep.mubr.bf16.mxu1 %v976_v63 }
 0x15c   : > { %v941_v7 = vmax.f32 %v867_v1, 0.0  ;;  %v871_v8 = vadd.f32 %v870_v5, %v5375_v31  ;;  %v872_v9 = vpop.f32.mrb[59].mxu0  ;;  %1348 = vmatmul.mubr.bf16.gmra.mrb[52].mxu1 %v975_v62 }
 0x15d   : > { %v942_v11 = vmax.f32 %v869_v4, 0.0  ;;  %v873_v12 = vadd.f32 %v872_v9, %v5378_v32 }
 0x15e   : > { %v943_v13 = vmax.f32 %v871_v8, 0.0 }
 0x15f   : > { %v944_v14 = vmax.f32 %v873_v12, 0.0 }
 0x160   : > { %v977_v15 = vpack.c.bf16 %v943_v13, %v941_v7 }
 0x161   : > { %v978_v16 = vpack.c.bf16 %v944_v14, %v942_v11  ;;  %v876_v17 = vpop.f32.mrb[60].mxu0 }
 0x162   : > { %v877_v18 = vadd.f32 %v876_v17, %v5375_v31  ;;  %v878_v19 = vpop.f32.mrb[61].mxu0 }
 0x163   : > { %v879_v20 = vadd.f32 %v878_v19, %v5378_v32  ;;  %v880_v21 = vpop.f32.mrb[62].mxu0  ;;  %1357 = vmatprep.mubr.bf16.mxu1 %v978_v16 }
 0x164   : > { %v945_v22 = vmax.f32 %v877_v18, 0.0  ;;  %v881_v23 = vadd.f32 %v880_v21, %v5375_v31  ;;  %v882_v24 = vpop.f32.mrb[63].mxu0  ;;  %1358 = vmatmul.mubr.bf16.gmra.mrb[56].mxu1 %v977_v15  ;;  %v1013_v31 = vld [vmem:[%s6299_s5] sm:$0x3] }
 0x165   : > { %v946_v25 = vmax.f32 %v879_v20, 0.0  ;;  %v883_v26 = vadd.f32 %v882_v24, %v5378_v32  ;;  %v5497_v32 = vrot.slane %v1013_v31, %v5367_v28  ;;  %v5500_v37 = vrot.slane %v1013_v31, %v5372_v30 }
 0x166   : > { %v947_v29 = vmax.f32 %v881_v23, 0.0 }
 0x167   : > { %v948_v34 = vmax.f32 %v883_v26, 0.0 }
 0x168   : > { %v979_v35 = vpack.c.bf16 %v947_v29, %v945_v22 }
 0x169   : > { %v980_v36 = vpack.c.bf16 %v948_v34, %v946_v25 }
 0x16b   : > { %1367 = vmatprep.mubr.bf16.mxu1 %v980_v36 }
 0x16c   : > { %1368 = vmatmul.mubr.bf16.gmra.mrb[60].mxu1 %v979_v35 }
 0x16d   : > { %2566 = vmatprep.mubr.bf16.mxu1 %v5085_v2 }
 0x1c7   : > { %v1219_v38 = vpop.f32.mrb[0].mxu1 }
 0x1c8   : > { %v1220_v39 = vadd.f32 %v1219_v38, %v5497_v32  ;;  %v1221_v40 = vpop.f32.mrb[1].mxu1 }
 0x1c9   : > { %v1222_v41 = vadd.f32 %v1221_v40, %v5500_v37  ;;  %v1223_v42 = vpop.f32.mrb[2].mxu1 }
 0x1ca   : > { %v4039_v43 = vmul.f32 -1.442695, %v1220_v39  ;;  %v1224_v44 = vadd.f32 %v1223_v42, %v5497_v32  ;;  %v1225_v45 = vpop.f32.mrb[3].mxu1 }
 0x1cb   : > { %v4040_v46 = vmul.f32 -1.442695, %v1222_v41  ;;  %v1226_v47 = vadd.f32 %v1225_v45, %v5500_v37 }
 0x1cc   : > { %4629 = vpow2.f32 %v4039_v43  ;;  %v4041_v48 = vmul.f32 -1.442695, %v1224_v44 }
 0x1cd   : > { %4631 = vpow2.f32 %v4040_v46  ;;  %v4042_v49 = vmul.f32 -1.442695, %v1226_v47 }
 0x1ce   : > { %4633 = vpow2.f32 %v4041_v48 }
 0x1cf   : > { %4635 = vpow2.f32 %v4042_v49  ;;  %v1229_v50 = vpop.f32.mrb[4].mxu1 }
 0x1d0   : > { %v1230_v51 = vadd.f32 %v1229_v50, %v5497_v32  ;;  %v1231_v52 = vpop.f32.mrb[5].mxu1 }
 0x1d1   : > { %v1232_v53 = vadd.f32 %v1231_v52, %v5500_v37  ;;  %v1233_v54 = vpop.f32.mrb[6].mxu1 }
 0x1d2   : > { %v4043_v55 = vmul.f32 -1.442695, %v1230_v51  ;;  %v1234_v56 = vadd.f32 %v1233_v54, %v5497_v32  ;;  %v1235_v57 = vpop.f32.mrb[7].mxu1 }
 0x1d3   : > { %v4044_v58 = vmul.f32 -1.442695, %v1232_v53  ;;  %v1236_v59 = vadd.f32 %v1235_v57, %v5500_v37 }
 0x1d4   : > { %4637 = vpow2.f32 %v4043_v55  ;;  %v4045_v60 = vmul.f32 -1.442695, %v1234_v56 }
 0x1d5   : > { %4639 = vpow2.f32 %v4044_v58  ;;  %v4046_v61 = vmul.f32 -1.442695, %v1236_v59 }
 0x1d6   : > { %v4630_v62 = vpop.eup %4629  ;;  %4641 = vpow2.f32 %v4045_v60 }
 0x1d7   : > { %v4632_v63 = vpop.eup %4631  ;;  %v1570_v0 = vadd.f32 1.0, %v4630_v62  ;;  %4643 = vpow2.f32 %v4046_v61  ;;  %v1239_v1 = vpop.f32.mrb[8].mxu1 }
 0x1d8   : > { %v4634_v3 = vpop.eup %4633  ;;  %v1571_v4 = vadd.f32 1.0, %v4632_v63  ;;  %v1240_v5 = vadd.f32 %v1239_v1, %v5497_v32  ;;  %v1241_v6 = vpop.f32.mrb[9].mxu1 }
 0x1d9   : > { %v4636_v7 = vpop.eup %4635  ;;  %4645 = vrcp.f32 %v1570_v0  ;;  %v1572_v8 = vadd.f32 1.0, %v4634_v3  ;;  %v1242_v9 = vadd.f32 %v1241_v6, %v5500_v37  ;;  %v1243_v10 = vpop.f32.mrb[10].mxu1 }
 0x1da   : > { %4647 = vrcp.f32 %v1571_v4  ;;  %v1573_v11 = vadd.f32 1.0, %v4636_v7  ;;  %v4047_v12 = vmul.f32 -1.442695, %v1240_v5  ;;  %v1244_v13 = vadd.f32 %v1243_v10, %v5497_v32  ;;  %v1245_v14 = vpop.f32.mrb[11].mxu1 }
 0x1db   : > { %4649 = vrcp.f32 %v1572_v8  ;;  %v4048_v15 = vmul.f32 -1.442695, %v1242_v9  ;;  %v1246_v16 = vadd.f32 %v1245_v14, %v5500_v37 }
 0x1dc   : > { %4651 = vrcp.f32 %v1573_v11  ;;  %v4049_v17 = vmul.f32 -1.442695, %v1244_v13 }
 0x1dd   : > { %4653 = vpow2.f32 %v4047_v12  ;;  %v4050_v18 = vmul.f32 -1.442695, %v1246_v16 }
 0x1de   : > { %v4638_v19 = vpop.eup %4637  ;;  %4655 = vpow2.f32 %v4048_v15 }
 0x1df   : > { %v4640_v20 = vpop.eup %4639  ;;  %v1574_v21 = vadd.f32 1.0, %v4638_v19  ;;  %4657 = vpow2.f32 %v4049_v17  ;;  %v1249_v22 = vpop.f32.mrb[12].mxu1 }
 0x1e0   : > { %v4642_v23 = vpop.eup %4641  ;;  %v1575_v24 = vadd.f32 1.0, %v4640_v20  ;;  %4659 = vpow2.f32 %v4050_v18  ;;  %v1250_v25 = vadd.f32 %v1249_v22, %v5497_v32  ;;  %v1251_v26 = vpop.f32.mrb[13].mxu1 }
 0x1e1   : > { %v4644_v27 = vpop.eup %4643  ;;  %4661 = vrcp.f32 %v1574_v21  ;;  %v1576_v29 = vadd.f32 1.0, %v4642_v23  ;;  %v1252_v33 = vadd.f32 %v1251_v26, %v5500_v37  ;;  %v1253_v34 = vpop.f32.mrb[14].mxu1 }
 0x1e2   : > { %4663 = vrcp.f32 %v1575_v24  ;;  %v1577_v35 = vadd.f32 1.0, %v4644_v27  ;;  %v4051_v36 = vmul.f32 -1.442695, %v1250_v25  ;;  %v1254_v31 = vadd.f32 %v1253_v34, %v5497_v32  ;;  %v1255_v38 = vpop.f32.mrb[15].mxu1 }
 0x1e3   : > { %v4646_v39 = vpop.eup %4645  ;;  %4665 = vrcp.f32 %v1576_v29  ;;  %v4052_v40 = vmul.f32 -1.442695, %v1252_v33  ;;  %v1256_v41 = vadd.f32 %v1255_v38, %v5500_v37 }
 0x1e4   : > { %v4648_v42 = vpop.eup %4647  ;;  %4667 = vrcp.f32 %v1577_v35  ;;  %v4053_v43 = vmul.f32 -1.442695, %v1254_v31 }
 0x1e5   : > { %v4650_v44 = vpop.eup %4649  ;;  %4669 = vpow2.f32 %v4051_v36  ;;  %v4054_v45 = vmul.f32 -1.442695, %v1256_v41 }
 0x1e6   : > { %v4652_v46 = vpop.eup %4651  ;;  %4671 = vpow2.f32 %v4052_v40  ;;  %v1762_v47 = vpack.c.bf16 %v4650_v44, %v4646_v39 }
 0x1e7   : > { %v4654_v48 = vpop.eup %4653  ;;  %4673 = vpow2.f32 %v4053_v43  ;;  %v1259_v49 = vpop.f32.mrb[16].mxu1  ;;  %v1763_v50 = vpack.c.bf16 %v4652_v46, %v4648_v42 }
 0x1e8   : > { %v4656_v51 = vpop.eup %4655  ;;  %v1578_v52 = vadd.f32 1.0, %v4654_v48  ;;  %4675 = vpow2.f32 %v4054_v45  ;;  %v1260_v53 = vadd.f32 %v1259_v49, %v5497_v32  ;;  %v1261_v54 = vpop.f32.mrb[17].mxu1 }
 0x1e9   : > { %v4658_v55 = vpop.eup %4657  ;;  %v1579_v56 = vadd.f32 1.0, %v4656_v51  ;;  %v1262_v57 = vadd.f32 %v1261_v54, %v5500_v37  ;;  %v1263_v58 = vpop.f32.mrb[18].mxu1  ;;  %1961 = vmatprep.mubr.bf16.mxu0 %v1763_v50 }
 0x1ea   : > { %v4660_v59 = vpop.eup %4659  ;;  %4677 = vrcp.f32 %v1578_v52  ;;  %v1580_v60 = vadd.f32 1.0, %v4658_v55  ;;  %v4055_v61 = vmul.f32 -1.442695, %v1260_v53  ;;  %v1264_v62 = vadd.f32 %v1263_v58, %v5497_v32  ;;  %v1265_v63 = vpop.f32.mrb[19].mxu1  ;;  %1962 = vmatmul.mubr.bf16.vlgmr.msra.gmra.mrb[64].mxu0 %v1762_v47 }
 0x1eb   : > { %v4662_v0 = vpop.eup %4661  ;;  %4679 = vrcp.f32 %v1579_v56  ;;  %v1581_v1 = vadd.f32 1.0, %v4660_v59  ;;  %v4056_v3 = vmul.f32 -1.442695, %v1262_v57  ;;  %v1266_v4 = vadd.f32 %v1265_v63, %v5500_v37 }
 0x1ec   : > { %v4664_v5 = vpop.eup %4663  ;;  %4681 = vrcp.f32 %v1580_v60  ;;  %v4057_v6 = vmul.f32 -1.442695, %v1264_v62 }
 0x1ed   : > { %v4666_v7 = vpop.eup %4665  ;;  %4683 = vrcp.f32 %v1581_v1  ;;  %v4058_v8 = vmul.f32 -1.442695, %v1266_v4 }
 0x1ee   : > { %v4668_v9 = vpop.eup %4667  ;;  %4685 = vpow2.f32 %v4055_v61  ;;  %v1764_v10 = vpack.c.bf16 %v4666_v7, %v4662_v0 }
 0x1ef   : > { %v4670_v11 = vpop.eup %4669  ;;  %4687 = vpow2.f32 %v4056_v3  ;;  %v1269_v12 = vpop.f32.mrb[20].mxu1  ;;  %v1765_v13 = vpack.c.bf16 %v4668_v9, %v4664_v5 }
 0x1f0   : > { %v4672_v14 = vpop.eup %4671  ;;  %v1582_v15 = vadd.f32 1.0, %v4670_v11  ;;  %4689 = vpow2.f32 %v4057_v6  ;;  %v1270_v16 = vadd.f32 %v1269_v12, %v5497_v32  ;;  %v1271_v17 = vpop.f32.mrb[21].mxu1 }
 0x1f1   : > { %v4674_v18 = vpop.eup %4673  ;;  %v1583_v19 = vadd.f32 1.0, %v4672_v14  ;;  %4691 = vpow2.f32 %v4058_v8  ;;  %v1272_v20 = vadd.f32 %v1271_v17, %v5500_v37  ;;  %v1273_v21 = vpop.f32.mrb[22].mxu1  ;;  %1969 = vmatprep.mubr.bf16.mxu0 %v1765_v13 }
 0x1f2   : > { %v4676_v22 = vpop.eup %4675  ;;  %4693 = vrcp.f32 %v1582_v15  ;;  %v1584_v23 = vadd.f32 1.0, %v4674_v18  ;;  %v4059_v24 = vmul.f32 -1.442695, %v1270_v16  ;;  %v1274_v25 = vadd.f32 %v1273_v21, %v5497_v32  ;;  %v1275_v26 = vpop.f32.mrb[23].mxu1  ;;  %1970 = vmatmul.mubr.bf16.gmra.mrb[68].mxu0 %v1764_v10 }
 0x1f3   : > { %4695 = vrcp.f32 %v1583_v19  ;;  %v1585_v27 = vadd.f32 1.0, %v4676_v22  ;;  %v4060_v29 = vmul.f32 -1.442695, %v1272_v20  ;;  %v1276_v33 = vadd.f32 %v1275_v26, %v5500_v37 }
 0x1f4   : > { %v4678_v34 = vpop.eup %4677  ;;  %4697 = vrcp.f32 %v1584_v23  ;;  %v4061_v35 = vmul.f32 -1.442695, %v1274_v25 }
 0x1f5   : > { %v4680_v36 = vpop.eup %4679  ;;  %4699 = vrcp.f32 %v1585_v27  ;;  %v4062_v31 = vmul.f32 -1.442695, %v1276_v33 }
 0x1f6   : > { %v4682_v38 = vpop.eup %4681  ;;  %4701 = vpow2.f32 %v4059_v24 }
 0x1f7   : > { %v4684_v39 = vpop.eup %4683  ;;  %4703 = vpow2.f32 %v4060_v29  ;;  %v1279_v40 = vpop.f32.mrb[24].mxu1  ;;  %v1766_v41 = vpack.c.bf16 %v4682_v38, %v4678_v34 }
 0x1f8   : > { %v4686_v42 = vpop.eup %4685  ;;  %4705 = vpow2.f32 %v4061_v35  ;;  %v1280_v43 = vadd.f32 %v1279_v40, %v5497_v32  ;;  %v1281_v44 = vpop.f32.mrb[25].mxu1  ;;  %v1767_v45 = vpack.c.bf16 %v4684_v39, %v4680_v36 }
 0x1f9   : > { %v4688_v46 = vpop.eup %4687  ;;  %v1586_v47 = vadd.f32 1.0, %v4686_v42  ;;  %4707 = vpow2.f32 %v4062_v31  ;;  %v1282_v48 = vadd.f32 %v1281_v44, %v5500_v37  ;;  %v1283_v49 = vpop.f32.mrb[26].mxu1 }
 0x1fa   : > { %v4690_v50 = vpop.eup %4689  ;;  %v1587_v51 = vadd.f32 1.0, %v4688_v46  ;;  %v1284_v52 = vadd.f32 %v1283_v49, %v5497_v32  ;;  %1977 = vmatprep.mubr.bf16.mxu0 %v1767_v45  ;;  %v1285_v53 = vpop.f32.mrb[27].mxu1  ;;  %v4063_v56 = vmul.f32 -1.442695, %v1280_v43 }
 0x1fb   : > { %v4692_v54 = vpop.eup %4691  ;;  %4709 = vrcp.f32 %v1586_v47  ;;  %v1588_v55 = vadd.f32 1.0, %v4690_v50  ;;  %v1286_v57 = vadd.f32 %v1285_v53, %v5500_v37  ;;  %1978 = vmatmul.mubr.bf16.gmra.mrb[72].mxu0 %v1766_v41  ;;  %v4064_v60 = vmul.f32 -1.442695, %v1282_v48 }
 0x1fc   : > { %v4694_v58 = vpop.eup %4693  ;;  %4711 = vrcp.f32 %v1587_v51  ;;  %v1589_v59 = vadd.f32 1.0, %v4692_v54  ;;  %v4065_v62 = vmul.f32 -1.442695, %v1284_v52 }
 0x1fd   : > { %v4696_v61 = vpop.eup %4695  ;;  %4713 = vrcp.f32 %v1588_v55  ;;  %v4066_v0 = vmul.f32 -1.442695, %v1286_v57 }
 0x1fe   : > { %v4698_v63 = vpop.eup %4697  ;;  %4715 = vrcp.f32 %v1589_v59 }
 0x1ff   : > { %v4700_v1 = vpop.eup %4699  ;;  %4717 = vpow2.f32 %v4063_v56  ;;  %v1289_v3 = vpop.f32.mrb[28].mxu1  ;;  %v1768_v4 = vpack.c.bf16 %v4698_v63, %v4694_v58 }
 0x200   : > { %v4702_v5 = vpop.eup %4701  ;;  %4719 = vpow2.f32 %v4064_v60  ;;  %v1290_v6 = vadd.f32 %v1289_v3, %v5497_v32  ;;  %v1291_v7 = vpop.f32.mrb[29].mxu1  ;;  %v1769_v8 = vpack.c.bf16 %v4700_v1, %v4696_v61 }
 0x201   : > { %v4704_v9 = vpop.eup %4703  ;;  %v1590_v10 = vadd.f32 1.0, %v4702_v5  ;;  %4721 = vpow2.f32 %v4065_v62  ;;  %v1292_v11 = vadd.f32 %v1291_v7, %v5500_v37  ;;  %v1293_v12 = vpop.f32.mrb[30].mxu1 }
 0x202   : > { %v4706_v13 = vpop.eup %4705  ;;  %v1591_v14 = vadd.f32 1.0, %v4704_v9  ;;  %4723 = vpow2.f32 %v4066_v0  ;;  %v1294_v15 = vadd.f32 %v1293_v12, %v5497_v32  ;;  %1985 = vmatprep.mubr.bf16.mxu0 %v1769_v8  ;;  %v1295_v16 = vpop.f32.mrb[31].mxu1  ;;  %v4067_v19 = vmul.f32 -1.442695, %v1290_v6 }
 0x203   : > { %v4708_v17 = vpop.eup %4707  ;;  %4725 = vrcp.f32 %v1590_v10  ;;  %v1592_v18 = vadd.f32 1.0, %v4706_v13  ;;  %v1296_v20 = vadd.f32 %v1295_v16, %v5500_v37  ;;  %1986 = vmatmul.mubr.bf16.gmra.mrb[76].mxu0 %v1768_v4  ;;  %v4068_v22 = vmul.f32 -1.442695, %v1292_v11 }
 0x204   : > { %4727 = vrcp.f32 %v1591_v14  ;;  %v1593_v21 = vadd.f32 1.0, %v4708_v17  ;;  %v4069_v24 = vmul.f32 -1.442695, %v1294_v15 }
 0x205   : > { %v4710_v23 = vpop.eup %4709  ;;  %4729 = vrcp.f32 %v1592_v18  ;;  %v4070_v26 = vmul.f32 -1.442695, %v1296_v20 }
 0x206   : > { %v4712_v25 = vpop.eup %4711  ;;  %4731 = vrcp.f32 %v1593_v21 }
 0x207   : > { %v4714_v27 = vpop.eup %4713  ;;  %4733 = vpow2.f32 %v4067_v19  ;;  %v1299_v29 = vpop.f32.mrb[32].mxu1 }
 0x208   : > { %v4716_v33 = vpop.eup %4715  ;;  %4735 = vpow2.f32 %v4068_v22  ;;  %v1300_v34 = vadd.f32 %v1299_v29, %v5497_v32  ;;  %v1301_v35 = vpop.f32.mrb[33].mxu1  ;;  %v1770_v36 = vpack.c.bf16 %v4714_v27, %v4710_v23 }
 0x209   : > { %v4718_v31 = vpop.eup %4717  ;;  %4737 = vpow2.f32 %v4069_v24  ;;  %v1302_v38 = vadd.f32 %v1301_v35, %v5500_v37  ;;  %v1303_v39 = vpop.f32.mrb[34].mxu1  ;;  %v1771_v40 = vpack.c.bf16 %v4716_v33, %v4712_v25 }
 0x20a   : > { %v4720_v41 = vpop.eup %4719  ;;  %v1594_v42 = vadd.f32 1.0, %v4718_v31  ;;  %4739 = vpow2.f32 %v4070_v26  ;;  %v1304_v43 = vadd.f32 %v1303_v39, %v5497_v32  ;;  %v1305_v44 = vpop.f32.mrb[35].mxu1  ;;  %v4071_v50 = vmul.f32 -1.442695, %v1300_v34 }
 0x20b   : > { %v4722_v45 = vpop.eup %4721  ;;  %v1595_v46 = vadd.f32 1.0, %v4720_v41  ;;  %1993 = vmatprep.mubr.bf16.mxu0 %v1771_v40  ;;  %v1306_v47 = vadd.f32 %v1305_v44, %v5500_v37  ;;  %v4072_v53 = vmul.f32 -1.442695, %v1302_v38 }
 0x20c   : > { %v4724_v48 = vpop.eup %4723  ;;  %4741 = vrcp.f32 %v1594_v42  ;;  %v1596_v49 = vadd.f32 1.0, %v4722_v45  ;;  %1994 = vmatmul.mubr.bf16.gmra.mrb[80].mxu0 %v1770_v36  ;;  %v4073_v55 = vmul.f32 -1.442695, %v1304_v43 }
 0x20d   : > { %v4726_v51 = vpop.eup %4725  ;;  %4743 = vrcp.f32 %v1595_v46  ;;  %v1597_v52 = vadd.f32 1.0, %v4724_v48  ;;  %v4074_v57 = vmul.f32 -1.442695, %v1306_v47 }
 0x20e   : > { %v4728_v54 = vpop.eup %4727  ;;  %4745 = vrcp.f32 %v1596_v49 }
 0x20f   : > { %v4730_v56 = vpop.eup %4729  ;;  %4747 = vrcp.f32 %v1597_v52  ;;  %v1309_v58 = vpop.f32.mrb[36].mxu1 }
 0x210   : > { %v4732_v59 = vpop.eup %4731  ;;  %4749 = vpow2.f32 %v4071_v50  ;;  %v1310_v60 = vadd.f32 %v1309_v58, %v5497_v32  ;;  %v1311_v61 = vpop.f32.mrb[37].mxu1  ;;  %v1772_v62 = vpack.c.bf16 %v4730_v56, %v4726_v51 }
 0x211   : > { %v4734_v63 = vpop.eup %4733  ;;  %4751 = vpow2.f32 %v4072_v53  ;;  %v1312_v0 = vadd.f32 %v1311_v61, %v5500_v37  ;;  %v1313_v1 = vpop.f32.mrb[38].mxu1  ;;  %v1773_v3 = vpack.c.bf16 %v4732_v59, %v4728_v54 }
 0x212   : > { %v4736_v4 = vpop.eup %4735  ;;  %v1598_v5 = vadd.f32 1.0, %v4734_v63  ;;  %4753 = vpow2.f32 %v4073_v55  ;;  %v1314_v6 = vadd.f32 %v1313_v1, %v5497_v32  ;;  %v1315_v7 = vpop.f32.mrb[39].mxu1  ;;  %v4075_v13 = vmul.f32 -1.442695, %v1310_v60 }
 0x213   : > { %v4738_v8 = vpop.eup %4737  ;;  %v1599_v9 = vadd.f32 1.0, %v4736_v4  ;;  %4755 = vpow2.f32 %v4074_v57  ;;  %2001 = vmatprep.mubr.bf16.mxu0 %v1773_v3  ;;  %v1316_v10 = vadd.f32 %v1315_v7, %v5500_v37  ;;  %v4076_v15 = vmul.f32 -1.442695, %v1312_v0 }
 0x214   : > { %v4740_v11 = vpop.eup %4739  ;;  %4757 = vrcp.f32 %v1598_v5  ;;  %v1600_v12 = vadd.f32 1.0, %v4738_v8  ;;  %2002 = vmatmul.mubr.bf16.gmra.mrb[84].mxu0 %v1772_v62  ;;  %v4077_v17 = vmul.f32 -1.442695, %v1314_v6 }
 0x215   : > { %4759 = vrcp.f32 %v1599_v9  ;;  %v1601_v14 = vadd.f32 1.0, %v4740_v11  ;;  %v4078_v19 = vmul.f32 -1.442695, %v1316_v10 }
 0x216   : > { %v4742_v16 = vpop.eup %4741  ;;  %4761 = vrcp.f32 %v1600_v12 }
 0x217   : > { %v4744_v18 = vpop.eup %4743  ;;  %4763 = vrcp.f32 %v1601_v14  ;;  %v1319_v20 = vpop.f32.mrb[40].mxu1 }
 0x218   : > { %v4746_v21 = vpop.eup %4745  ;;  %4765 = vpow2.f32 %v4075_v13  ;;  %v1320_v22 = vadd.f32 %v1319_v20, %v5497_v32  ;;  %v1321_v23 = vpop.f32.mrb[41].mxu1 }
 0x219   : > { %v4748_v24 = vpop.eup %4747  ;;  %4767 = vpow2.f32 %v4076_v15  ;;  %v1322_v25 = vadd.f32 %v1321_v23, %v5500_v37  ;;  %v1323_v26 = vpop.f32.mrb[42].mxu1  ;;  %v1774_v27 = vpack.c.bf16 %v4746_v21, %v4742_v16 }
 0x21a   : > { %v4750_v29 = vpop.eup %4749  ;;  %4769 = vpow2.f32 %v4077_v17  ;;  %v4079_v33 = vmul.f32 -1.442695, %v1320_v22  ;;  %v1324_v34 = vadd.f32 %v1323_v26, %v5497_v32  ;;  %v1775_v35 = vpack.c.bf16 %v4748_v24, %v4744_v18  ;;  %v1325_v36 = vpop.f32.mrb[43].mxu1 }
 0x21b   : > { %v4752_v31 = vpop.eup %4751  ;;  %v1602_v38 = vadd.f32 1.0, %v4750_v29  ;;  %4771 = vpow2.f32 %v4078_v19  ;;  %v1326_v39 = vadd.f32 %v1325_v36, %v5500_v37  ;;  %v4080_v44 = vmul.f32 -1.442695, %v1322_v25 }
 0x21c   : > { %v4754_v40 = vpop.eup %4753  ;;  %v1603_v41 = vadd.f32 1.0, %v4752_v31  ;;  %4773 = vpow2.f32 %v4079_v33  ;;  %2009 = vmatprep.mubr.bf16.mxu0 %v1775_v35  ;;  %v4081_v47 = vmul.f32 -1.442695, %v1324_v34 }
 0x21d   : > { %v4756_v42 = vpop.eup %4755  ;;  %4775 = vrcp.f32 %v1602_v38  ;;  %v1604_v43 = vadd.f32 1.0, %v4754_v40  ;;  %2010 = vmatmul.mubr.bf16.gmra.mrb[88].mxu0 %v1774_v27  ;;  %v4082_v49 = vmul.f32 -1.442695, %v1326_v39 }
 0x21e   : > { %v4758_v45 = vpop.eup %4757  ;;  %4777 = vrcp.f32 %v1603_v41  ;;  %v1605_v46 = vadd.f32 1.0, %v4756_v42 }
 0x21f   : > { %v4760_v48 = vpop.eup %4759  ;;  %4779 = vrcp.f32 %v1604_v43  ;;  %v1329_v50 = vpop.f32.mrb[44].mxu1 }
 0x220   : > { %v4762_v51 = vpop.eup %4761  ;;  %4781 = vrcp.f32 %v1605_v46  ;;  %v1330_v52 = vadd.f32 %v1329_v50, %v5497_v32  ;;  %v1331_v53 = vpop.f32.mrb[45].mxu1 }
 0x221   : > { %v4764_v54 = vpop.eup %4763  ;;  %4783 = vpow2.f32 %v4080_v44  ;;  %v1333_v55 = vpop.f32.mrb[46].mxu1  ;;  %v1776_v56 = vpack.c.bf16 %v4762_v51, %v4758_v45  ;;  %v1332_v59 = vadd.f32 %v1331_v53, %v5500_v37 }
 0x222   : > { %v4766_v57 = vpop.eup %4765  ;;  %4785 = vpow2.f32 %v4081_v47  ;;  %v4083_v58 = vmul.f32 -1.442695, %v1330_v52  ;;  %v1777_v60 = vpack.c.bf16 %v4764_v54, %v4760_v48  ;;  %v1335_v61 = vpop.f32.mrb[47].mxu1  ;;  %v1334_v0 = vadd.f32 %v1333_v55, %v5497_v32 }
 0x223   : > { %v4768_v62 = vpop.eup %4767  ;;  %v1606_v63 = vadd.f32 1.0, %v4766_v57  ;;  %4787 = vpow2.f32 %v4082_v49  ;;  %v1336_v4 = vadd.f32 %v1335_v61, %v5500_v37  ;;  %v4084_v9 = vmul.f32 -1.442695, %v1332_v59 }
 0x224   : > { %v4770_v1 = vpop.eup %4769  ;;  %v1607_v3 = vadd.f32 1.0, %v4768_v62  ;;  %4789 = vpow2.f32 %v4083_v58  ;;  %2017 = vmatprep.mubr.bf16.mxu0 %v1777_v60  ;;  %v4085_v12 = vmul.f32 -1.442695, %v1334_v0 }
 0x225   : > { %v4772_v5 = vpop.eup %4771  ;;  %4791 = vrcp.f32 %v1606_v63  ;;  %v1608_v6 = vadd.f32 1.0, %v4770_v1  ;;  %2018 = vmatmul.mubr.bf16.gmra.mrb[92].mxu0 %v1776_v56  ;;  %v4086_v15 = vmul.f32 -1.442695, %v1336_v4 }
 0x226   : > { %v4774_v7 = vpop.eup %4773  ;;  %4793 = vrcp.f32 %v1607_v3  ;;  %v1609_v8 = vadd.f32 1.0, %v4772_v5 }
 0x227   : > { %v4776_v10 = vpop.eup %4775  ;;  %4795 = vrcp.f32 %v1608_v6  ;;  %v1610_v11 = vadd.f32 1.0, %v4774_v7  ;;  %v1339_v13 = vpop.f32.mrb[48].mxu1 }
 0x228   : > { %v4778_v14 = vpop.eup %4777  ;;  %4797 = vrcp.f32 %v1609_v8  ;;  %v1340_v16 = vadd.f32 %v1339_v13, %v5497_v32  ;;  %v1341_v17 = vpop.f32.mrb[49].mxu1 }
 0x229   : > { %v4780_v18 = vpop.eup %4779  ;;  %4799 = vrcp.f32 %v1610_v11  ;;  %v1343_v19 = vpop.f32.mrb[50].mxu1  ;;  %v1342_v22 = vadd.f32 %v1341_v17, %v5500_v37 }
 0x22a   : > { %v4782_v20 = vpop.eup %4781  ;;  %4801 = vpow2.f32 %v4084_v9  ;;  %v4087_v21 = vmul.f32 -1.442695, %v1340_v16  ;;  %v1345_v23 = vpop.f32.mrb[51].mxu1  ;;  %v1778_v24 = vpack.c.bf16 %v4780_v18, %v4776_v10  ;;  %v1344_v26 = vadd.f32 %v1343_v19, %v5497_v32 }
 0x22b   : > { %v4784_v25 = vpop.eup %4783  ;;  %4803 = vpow2.f32 %v4085_v12  ;;  %v1779_v27 = vpack.c.bf16 %v4782_v20, %v4778_v14  ;;  %v1346_v34 = vadd.f32 %v1345_v23, %v5500_v37  ;;  %v4088_v39 = vmul.f32 -1.442695, %v1342_v22 }
 0x22c   : > { %v4786_v29 = vpop.eup %4785  ;;  %v1611_v33 = vadd.f32 1.0, %v4784_v25  ;;  %4805 = vpow2.f32 %v4086_v15  ;;  %v4089_v42 = vmul.f32 -1.442695, %v1344_v26 }
 0x22d   : > { %v4788_v35 = vpop.eup %4787  ;;  %v1612_v36 = vadd.f32 1.0, %v4786_v29  ;;  %4807 = vpow2.f32 %v4087_v21  ;;  %2025 = vmatprep.mubr.bf16.mxu0 %v1779_v27  ;;  %v4090_v45 = vmul.f32 -1.442695, %v1346_v34 }
 0x22e   : > { %v4790_v31 = vpop.eup %4789  ;;  %4809 = vrcp.f32 %v1611_v33  ;;  %v1613_v38 = vadd.f32 1.0, %v4788_v35  ;;  %2026 = vmatmul.mubr.bf16.gmra.mrb[96].mxu0 %v1778_v24 }
 0x22f   : > { %v4792_v40 = vpop.eup %4791  ;;  %4811 = vrcp.f32 %v1612_v36  ;;  %v1614_v41 = vadd.f32 1.0, %v4790_v31  ;;  %v1349_v43 = vpop.f32.mrb[52].mxu1 }
 0x230   : > { %v4794_v44 = vpop.eup %4793  ;;  %4813 = vrcp.f32 %v1613_v38  ;;  %v1350_v46 = vadd.f32 %v1349_v43, %v5497_v32  ;;  %v1351_v47 = vpop.f32.mrb[53].mxu1 }
 0x231   : > { %v4796_v48 = vpop.eup %4795  ;;  %4815 = vrcp.f32 %v1614_v41  ;;  %v1352_v49 = vadd.f32 %v1351_v47, %v5500_v37  ;;  %v1353_v50 = vpop.f32.mrb[54].mxu1 }
 0x232   : > { %v4798_v51 = vpop.eup %4797  ;;  %4817 = vpow2.f32 %v4088_v39  ;;  %v4091_v52 = vmul.f32 -1.442695, %v1350_v46  ;;  %v1355_v53 = vpop.f32.mrb[55].mxu1  ;;  %v1780_v54 = vpack.c.bf16 %v4796_v48, %v4792_v40  ;;  %v1354_v57 = vadd.f32 %v1353_v50, %v5497_v32 }
 0x233   : > { %v4800_v55 = vpop.eup %4799  ;;  %4819 = vpow2.f32 %v4089_v42  ;;  %v4092_v56 = vmul.f32 -1.442695, %v1352_v49  ;;  %v1781_v58 = vpack.c.bf16 %v4798_v51, %v4794_v44  ;;  %v1356_v60 = vadd.f32 %v1355_v53, %v5500_v37 }
 0x234   : > { %v4802_v59 = vpop.eup %4801  ;;  %4821 = vpow2.f32 %v4090_v45  ;;  %v4093_v4 = vmul.f32 -1.442695, %v1354_v57 }
 0x235   : > { %v4804_v61 = vpop.eup %4803  ;;  %v1615_v62 = vadd.f32 1.0, %v4802_v59  ;;  %4823 = vpow2.f32 %v4091_v52  ;;  %2033 = vmatprep.mubr.bf16.mxu0 %v1781_v58  ;;  %v4094_v8 = vmul.f32 -1.442695, %v1356_v60 }
 0x236   : > { %v4806_v63 = vpop.eup %4805  ;;  %v1616_v0 = vadd.f32 1.0, %v4804_v61  ;;  %4825 = vpow2.f32 %v4092_v56  ;;  %2034 = vmatmul.mubr.bf16.gmra.mrb[100].mxu0 %v1780_v54 }
 0x237   : > { %v4808_v1 = vpop.eup %4807  ;;  %4827 = vrcp.f32 %v1615_v62  ;;  %v1617_v3 = vadd.f32 1.0, %v4806_v63  ;;  %v1359_v5 = vpop.f32.mrb[56].mxu1 }
 0x238   : > { %v4810_v6 = vpop.eup %4809  ;;  %4829 = vrcp.f32 %v1616_v0  ;;  %v1618_v7 = vadd.f32 1.0, %v4808_v1  ;;  %v1360_v9 = vadd.f32 %v1359_v5, %v5497_v32  ;;  %v1361_v10 = vpop.f32.mrb[57].mxu1 }
 0x239   : > { %v4812_v11 = vpop.eup %4811  ;;  %4831 = vrcp.f32 %v1617_v3  ;;  %v1362_v12 = vadd.f32 %v1361_v10, %v5500_v37  ;;  %v1363_v13 = vpop.f32.mrb[58].mxu1 }
 0x23a   : > { %v4814_v14 = vpop.eup %4813  ;;  %4833 = vrcp.f32 %v1618_v7  ;;  %v4095_v15 = vmul.f32 -1.442695, %v1360_v9  ;;  %v1365_v16 = vpop.f32.mrb[59].mxu1  ;;  %v1782_v17 = vpack.c.bf16 %v4812_v11, %v4800_v55  ;;  %v1364_v22 = vadd.f32 %v1363_v13, %v5497_v32 }
 0x23b   : > { %v4816_v18 = vpop.eup %4815  ;;  %4835 = vpow2.f32 %v4093_v4  ;;  %v4096_v19 = vmul.f32 -1.442695, %v1362_v12  ;;  %v1783_v20 = vpack.c.bf16 %v4814_v14, %v4810_v6  ;;  %v1366_v25 = vadd.f32 %v1365_v16, %v5500_v37 }
 0x23c   : > { %v4818_v21 = vpop.eup %4817  ;;  %4837 = vpow2.f32 %v4094_v8  ;;  %v4097_v31 = vmul.f32 -1.442695, %v1364_v22 }
 0x23d   : > { %v4820_v23 = vpop.eup %4819  ;;  %v1619_v24 = vadd.f32 1.0, %v4818_v21  ;;  %4839 = vpow2.f32 %v4095_v15  ;;  %2041 = vmatprep.mubr.bf16.mxu0 %v1783_v20  ;;  %v4098_v42 = vmul.f32 -1.442695, %v1366_v25 }
 0x23e   : > { %v4822_v26 = vpop.eup %4821  ;;  %v1620_v27 = vadd.f32 1.0, %v4820_v23  ;;  %4841 = vpow2.f32 %v4096_v19  ;;  %2042 = vmatmul.mubr.bf16.gmra.mrb[104].mxu0 %v1782_v17  ;;  %v4553_v23 = vld [vmem:[%s6302_s8] ss:$8 sps:$4 sm:$0xff]  }
 0x23f   : > { %v4824_v29 = vpop.eup %4823  ;;  %4843 = vrcp.f32 %v1619_v24  ;;  %v1621_v33 = vadd.f32 1.0, %v4822_v26  ;;  %v1369_v34 = vpop.f32.mrb[60].mxu1  ;;  %v4555_v24 = vld [vmem:[%s6302_s8 + $0x4] ss:$8 sps:$4 sm:$0xff]  }
 0x240   : > { %v4826_v35 = vpop.eup %4825  ;;  %4845 = vrcp.f32 %v1620_v27  ;;  %v1622_v36 = vadd.f32 1.0, %v4824_v29  ;;  %v1370_v38 = vadd.f32 %v1369_v34, %v5497_v32  ;;  %v1371_v39 = vpop.f32.mrb[61].mxu1  ;;  %2534 = vmatprep.subr.bf16.mxu1 %v4555_v24 }
 0x241   : > { %v4828_v40 = vpop.eup %4827  ;;  %4847 = vrcp.f32 %v1621_v33  ;;  %v1623_v41 = vadd.f32 1.0, %v4826_v35  ;;  %v1372_v43 = vadd.f32 %v1371_v39, %v5500_v37  ;;  %v1373_v44 = vpop.f32.mrb[62].mxu1  ;;  %2535 = vmatpush1.bf16.msra.mxu1 %v4553_v23 }
 0x242   : > { %v4830_v45 = vpop.eup %4829  ;;  %4849 = vrcp.f32 %v1622_v36  ;;  %v4099_v46 = vmul.f32 -1.442695, %v1370_v38  ;;  %v1375_v47 = vpop.f32.mrb[63].mxu1  ;;  %v1374_v52 = vadd.f32 %v1373_v44, %v5497_v32  ;;  %v4561_v44 = vld [vmem:[%s6302_s8 + $0x24] ss:$8 sps:$4 sm:$0xff]  }
 0x243   : > { %v4832_v48 = vpop.eup %4831  ;;  %4851 = vrcp.f32 %v1623_v41  ;;  %v4100_v49 = vmul.f32 -1.442695, %v1372_v43  ;;  %v1784_v50 = vpack.c.bf16 %v4830_v45, %v4816_v18  ;;  %v1376_v55 = vadd.f32 %v1375_v47, %v5500_v37  ;;  %v4556_v41 = vld [vmem:[%s6302_s8 + $0x10] ss:$8 sps:$4 sm:$0xff]   ;;  %v4559_v43 = vld [vmem:[%s6302_s8 + $0x20] ss:$8 sps:$4 sm:$0xff]  }
 0x244   : > { %v4834_v51 = vpop.eup %4833  ;;  %4853 = vpow2.f32 %v4097_v31  ;;  %v1785_v53 = vpack.c.bf16 %v4832_v48, %v4828_v40  ;;  %v4101_v61 = vmul.f32 -1.442695, %v1374_v52  ;;  %v4564_v47 = vld [vmem:[%s6302_s8 + $0x34] ss:$8 sps:$4 sm:$0xff]   ;;  %v5593_v48 = vld [vmem:[%s6301_s7] ss:$0 sm:$0xff] }
 0x245   : > { %v4836_v54 = vpop.eup %4835  ;;  %4855 = vpow2.f32 %v4098_v42  ;;  %v4102_v63 = vmul.f32 -1.442695, %v1376_v55  ;;  %v4558_v42 = vld [vmem:[%s6302_s8 + $0x14] ss:$8 sps:$4 sm:$0xff]  }
 0x246   : > { %v4838_v56 = vpop.eup %4837  ;;  %v1624_v57 = vadd.f32 1.0, %v4836_v54  ;;  %4857 = vpow2.f32 %v4099_v46  ;;  %2049 = vmatprep.mubr.bf16.mxu0 %v1785_v53  ;;  %2536 = vmatprep.subr.bf16.mxu1 %v4558_v42  ;;  %v4562_v46 = vld [vmem:[%s6302_s8 + $0x30] ss:$8 sps:$4 sm:$0xff]  }
 0x247   : > { %v4840_v58 = vpop.eup %4839  ;;  %v1625_v59 = vadd.f32 1.0, %v4838_v56  ;;  %4859 = vpow2.f32 %v4100_v49  ;;  %2050 = vmatmul.mubr.bf16.gmra.mrb[108].mxu0 %v1784_v50  ;;  %2537 = vmatpush1.bf16.msra.mxu1 %v4556_v41 }
 0x248   : > { %v4842_v60 = vpop.eup %4841  ;;  %4861 = vrcp.f32 %v1624_v57  ;;  %v1626_v1 = vadd.f32 1.0, %v4840_v58  ;;  %2538 = vmatprep.subr.bf16.mxu1 %v4561_v44 }
 0x249   : > { %v4844_v62 = vpop.eup %4843  ;;  %4863 = vrcp.f32 %v1625_v59  ;;  %v1627_v37 = vadd.f32 1.0, %v4842_v60 }
 0x24a   : > { %v4846_v32 = vpop.eup %4845  ;;  %4865 = vpow2.f32 %v4101_v61 }
 0x24b   : > { %v4848_v0 = vpop.eup %4847  ;;  %v1786_v3 = vpack.c.bf16 %v4846_v32, %v4834_v51  ;;  %4867 = vpow2.f32 %v4102_v63  ;;  %2539 = vmatpush1.bf16.msra.mxu1 %v4559_v43 }
 0x24c   : > { %v4850_v4 = vpop.eup %4849  ;;  %v1787_v5 = vpack.c.bf16 %v4848_v0, %v4844_v62  ;;  %4869 = vrcp.f32 %v1626_v1  ;;  %2540 = vmatprep.subr.bf16.mxu1 %v4564_v47 }
 0x24d   : > { %v4852_v6 = vpop.eup %4851  ;;  %4871 = vrcp.f32 %v1627_v37 }
 0x24e   : > { %v4854_v7 = vpop.eup %4853  ;;  %2057 = vmatprep.mubr.bf16.mxu0 %v1787_v5 }
 0x24f   : > { %v4856_v8 = vpop.eup %4855  ;;  %v1628_v9 = vadd.f32 1.0, %v4854_v7  ;;  %2058 = vmatmul.mubr.bf16.gmra.mrb[112].mxu0 %v1786_v3  ;;  %2541 = vmatpush1.bf16.msra.mxu1 %v4562_v46 }
 0x250   : > { %v4858_v10 = vpop.eup %4857  ;;  %v1629_v11 = vadd.f32 1.0, %v4856_v8 }
 0x251   : > { %v4860_v12 = vpop.eup %4859  ;;  %4873 = vrcp.f32 %v1628_v9  ;;  %v1630_v15 = vadd.f32 1.0, %v4858_v10 }
 0x252   : > { %v4862_v13 = vpop.eup %4861  ;;  %4875 = vrcp.f32 %v1629_v11  ;;  %v1631_v17 = vadd.f32 1.0, %v4860_v12 }
 0x253   : > { %v4864_v14 = vpop.eup %4863  ;;  %v1788_v16 = vpack.c.bf16 %v4862_v13, %v4850_v4  ;;  %4877 = vrcp.f32 %v1630_v15 }
 0x254   : > { %v1789_v18 = vpack.c.bf16 %v4864_v14, %v4852_v6  ;;  %v4866_v19 = vpop.eup %4865  ;;  %4879 = vrcp.f32 %v1631_v17 }
 0x255   : > { %v4868_v20 = vpop.eup %4867  ;;  %v1632_v21 = vadd.f32 1.0, %v4866_v19 }
 0x256   : > { %2065 = vmatprep.mubr.bf16.mxu0 %v1789_v18  ;;  %v1633_v22 = vadd.f32 1.0, %v4868_v20  ;;  %v4870_v25 = vpop.eup %4869 }
 0x257   : > { %2066 = vmatmul.mubr.bf16.gmra.mrb[116].mxu0 %v1788_v16  ;;  %4881 = vrcp.f32 %v1632_v21  ;;  %v4872_v26 = vpop.eup %4871 }
 0x258   : > { %4883 = vrcp.f32 %v1633_v22 }
 0x25b   : > { %v4874_v27 = vpop.eup %4873 }
 0x25c   : > { %v4876_v29 = vpop.eup %4875  ;;  %v1790_v33 = vpack.c.bf16 %v4874_v27, %v4870_v25 }
 0x25d   : > { %v1791_v34 = vpack.c.bf16 %v4876_v29, %v4872_v26  ;;  %v4878_v35 = vpop.eup %4877 }
 0x25e   : > { %v4880_v36 = vpop.eup %4879 }
 0x25f   : > { %2073 = vmatprep.mubr.bf16.mxu0 %v1791_v34 }
 0x260   : > { %2074 = vmatmul.mubr.bf16.gmra.mrb[120].mxu0 %v1790_v33 }
 0x261   : > { %v4882_v31 = vpop.eup %4881 }
 0x262   : > { %v4884_v38 = vpop.eup %4883  ;;  %v1792_v39 = vpack.c.bf16 %v4882_v31, %v4878_v35 }
 0x263   : > { %v1793_v40 = vpack.c.bf16 %v4884_v38, %v4880_v36 }
 0x265   : > { %2081 = vmatprep.mubr.bf16.mxu0 %v1793_v40 }
 0x268   : > { %2082 = vmatmul.mubr.bf16.gmra.mrb[124].mxu0 %v1792_v39 }
 0x2bd   : > { %v4243_v45 = vpop.f32.mrb[64].mxu0 }
 0x2be   : > { %v4244_v49 = vpop.f32.mrb[65].mxu0 }
 0x2bf   : > { %v4245_v50 = vadd.f32 %v4244_v49, %v4243_v45  ;;  %v4246_v51 = vpop.f32.mrb[66].mxu0 }
 0x2c0   : > { %v4247_v52 = vpop.f32.mrb[67].mxu0 }
 0x2c1   : > { %v5602_v53 = vadd.f32 %v4245_v50, %v5593_v48  ;;  %v4248_v54 = vadd.f32 %v4247_v52, %v4246_v51 }
 0x2c3   : > { %v2090_v55 = vmul.f32 0.5, %v5602_v53  ;;  %3836 = vst [vmem:[%s5599_s21] sm:$0xff] %v5602_v53  ;;  %v5608_v56 = vadd.f32 %v4248_v54, %v5593_v48 }
 0x2c5   : > { %v2122_v57 = vmul.f32 1.442695, %v2090_v55  ;;  %v2091_v58 = vmul.f32 0.5, %v5608_v56  ;;  %3837 = vst [vmem:[%s5599_s21 + $0x8] sm:$0xff] %v5608_v56  ;;  %v4249_v59 = vpop.f32.mrb[68].mxu0 }
 0x2c6   : > { %v4250_v60 = vpop.f32.mrb[69].mxu0 }
 0x2c7   : > { %4885 = vpow2.f32 %v2122_v57  ;;  %v2124_v61 = vmul.f32 1.442695, %v2091_v58  ;;  %v4251_v62 = vadd.f32 %v4250_v60, %v4249_v59  ;;  %v4252_v63 = vpop.f32.mrb[70].mxu0 }
 0x2c8   : > { %v4253_v32 = vpop.f32.mrb[71].mxu0 }
 0x2c9   : > { %v5614_v0 = vadd.f32 %v4251_v62, %v5593_v48  ;;  %v4254_v1 = vadd.f32 %v4253_v32, %v4252_v63  ;;  %4887 = vpow2.f32 %v2124_v61 }
 0x2cb   : > { %v2092_v3 = vmul.f32 0.5, %v5614_v0  ;;  %3838 = vst [vmem:[%s5599_s21 + $0x10] sm:$0xff] %v5614_v0  ;;  %v5620_v4 = vadd.f32 %v4254_v1, %v5593_v48 }
 0x2cd   : > { %v2126_v37 = vmul.f32 1.442695, %v2092_v3  ;;  %v2093_v5 = vmul.f32 0.5, %v5620_v4  ;;  %3839 = vst [vmem:[%s5599_s21 + $0x18] sm:$0xff] %v5620_v4 }
 0x2ce   : > { %v4255_v6 = vpop.f32.mrb[72].mxu0 }
 0x2cf   : > { %4889 = vpow2.f32 %v2126_v37  ;;  %v2128_v7 = vmul.f32 1.442695, %v2093_v5  ;;  %v4256_v8 = vpop.f32.mrb[73].mxu0 }
 0x2d0   : > { %v4257_v9 = vadd.f32 %v4256_v8, %v4255_v6  ;;  %v4258_v10 = vpop.f32.mrb[74].mxu0 }
 0x2d1   : > { %v4886_v11 = vpop.eup %4885  ;;  %v4259_v12 = vpop.f32.mrb[75].mxu0  ;;  %4891 = vpow2.f32 %v2128_v7 }
 0x2d2   : > { %v5626_v13 = vadd.f32 %v4257_v9, %v5593_v48  ;;  %v4260_v14 = vadd.f32 %v4259_v12, %v4258_v10  ;;  %2250 = vrot.lane.b32.xlu0 %v4886_v11, %s5086_s23 }
 0x2d3   : > { %v4888_v17 = vpop.eup %4887 }
 0x2d4   : > { %v2094_v15 = vmul.f32 0.5, %v5626_v13  ;;  %3840 = vst [vmem:[%s5599_s21 + $0x20] sm:$0xff] %v5626_v13  ;;  %v5633_v16 = vadd.f32 %v4260_v14, %v5593_v48 }
 0x2d6   : > { %v2130_v18 = vmul.f32 1.442695, %v2094_v15  ;;  %v2095_v19 = vmul.f32 0.5, %v5633_v16  ;;  %3841 = vst [vmem:[%s5599_s21 + $0x28] sm:$0xff] %v5633_v16  ;;  %v4261_v20 = vpop.f32.mrb[76].mxu0  ;;  %2252 = vrot.lane.b32.xlu0 %v4888_v17, %s5086_s23 }
 0x2d7   : > { %v4262_v21 = vpop.f32.mrb[77].mxu0 }
 0x2d8   : > { %4893 = vpow2.f32 %v2130_v18  ;;  %v2132_v22 = vmul.f32 1.442695, %v2095_v19  ;;  %v4263_v23 = vadd.f32 %v4262_v21, %v4261_v20  ;;  %v4264_v24 = vpop.f32.mrb[78].mxu0 }
 0x2d9   : > { %v4890_v25 = vpop.eup %4889  ;;  %v4265_v26 = vpop.f32.mrb[79].mxu0 }
 0x2da   : > { %4895 = vpow2.f32 %v2132_v22  ;;  %v5640_v27 = vadd.f32 %v4263_v23, %v5593_v48  ;;  %v4266_v29 = vadd.f32 %v4265_v26, %v4264_v24  ;;  %2254 = vrot.lane.b32.xlu1 %v4890_v25, %s5086_s23 }
 0x2db   : > { %v4892_v35 = vpop.eup %4891 }
 0x2dc   : > { %v2096_v33 = vmul.f32 0.5, %v5640_v27  ;;  %3842 = vst [vmem:[%s5599_s21 + $0x30] sm:$0xff] %v5640_v27  ;;  %v5647_v34 = vadd.f32 %v4266_v29, %v5593_v48 }
 0x2de   : > { %v2134_v36 = vmul.f32 1.442695, %v2096_v33  ;;  %v2097_v31 = vmul.f32 0.5, %v5647_v34  ;;  %3843 = vst [vmem:[%s5599_s21 + $0x38] sm:$0xff] %v5647_v34  ;;  %2256 = vrot.lane.b32.xlu1 %v4892_v35, %s5086_s23 }
 0x2df   : > { %v4267_v38 = vpop.f32.mrb[80].mxu0 }
 0x2e0   : > { %4897 = vpow2.f32 %v2134_v36  ;;  %v2136_v39 = vmul.f32 1.442695, %v2097_v31  ;;  %v4268_v40 = vpop.f32.mrb[81].mxu0 }
 0x2e1   : > { %v4269_v41 = vadd.f32 %v4268_v40, %v4267_v38  ;;  %v4270_v42 = vpop.f32.mrb[82].mxu0 }
 0x2e2   : > { %v4894_v43 = vpop.eup %4893  ;;  %4899 = vpow2.f32 %v2136_v39  ;;  %v4271_v44 = vpop.f32.mrb[83].mxu0 }
 0x2e3   : > { %v5654_v45 = vadd.f32 %v4269_v41, %v5593_v48  ;;  %v4272_v46 = vadd.f32 %v4271_v44, %v4270_v42  ;;  %2258 = vrot.lane.b32.xlu0 %v4894_v43, %s5086_s23 }
 0x2e4   : > { %v4896_v47 = vpop.eup %4895 }
 0x2e5   : > { %v2098_v49 = vmul.f32 0.5, %v5654_v45  ;;  %3844 = vst [vmem:[%s5599_s21 + $0x40] sm:$0xff] %v5654_v45  ;;  %v5661_v50 = vadd.f32 %v4272_v46, %v5593_v48  ;;  %2260 = vrot.lane.b32.xlu1 %v4896_v47, %s5086_s23 }
 0x2e7   : > { %v2138_v51 = vmul.f32 1.442695, %v2098_v49  ;;  %v2099_v52 = vmul.f32 0.5, %v5661_v50  ;;  %3845 = vst [vmem:[%s5599_s21 + $0x48] sm:$0xff] %v5661_v50  ;;  %v4273_v54 = vpop.f32.mrb[84].mxu0 }
 0x2e8   : > { %v4274_v55 = vpop.f32.mrb[85].mxu0 }
 0x2e9   : > { %4901 = vpow2.f32 %v2138_v51  ;;  %v2140_v57 = vmul.f32 1.442695, %v2099_v52  ;;  %v4275_v58 = vadd.f32 %v4274_v55, %v4273_v54  ;;  %v4276_v59 = vpop.f32.mrb[86].mxu0 }
 0x2ea   : > { %v4898_v60 = vpop.eup %4897  ;;  %v4277_v61 = vpop.f32.mrb[87].mxu0 }
 0x2eb   : > { %4903 = vpow2.f32 %v2140_v57  ;;  %v5668_v62 = vadd.f32 %v4275_v58, %v5593_v48  ;;  %v4278_v63 = vadd.f32 %v4277_v61, %v4276_v59  ;;  %2262 = vrot.lane.b32.xlu0 %v4898_v60, %s5086_s23 }
 0x2ec   : > { %v4900_v32 = vpop.eup %4899 }
 0x2ed   : > { %v2100_v1 = vmul.f32 0.5, %v5668_v62  ;;  %3846 = vst [vmem:[%s5599_s21 + $0x50] sm:$0xff] %v5668_v62  ;;  %v5675_v3 = vadd.f32 %v4278_v63, %v5593_v48  ;;  %2264 = vrot.lane.b32.xlu1 %v4900_v32, %s5086_s23 }
 0x2ef   : > { %v2142_v37 = vmul.f32 1.442695, %v2100_v1  ;;  %v2101_v5 = vmul.f32 0.5, %v5675_v3  ;;  %3847 = vst [vmem:[%s5599_s21 + $0x58] sm:$0xff] %v5675_v3 }
 0x2f0   : > { %v4279_v6 = vpop.f32.mrb[88].mxu0 }
 0x2f1   : > { %4905 = vpow2.f32 %v2142_v37  ;;  %v2144_v7 = vmul.f32 1.442695, %v2101_v5  ;;  %v4280_v8 = vpop.f32.mrb[89].mxu0 }
 0x2f2   : > { %v4281_v9 = vadd.f32 %v4280_v8, %v4279_v6  ;;  %v4282_v10 = vpop.f32.mrb[90].mxu0 }
 0x2f3   : > { %v4902_v11 = vpop.eup %4901  ;;  %4907 = vpow2.f32 %v2144_v7  ;;  %v4283_v12 = vpop.f32.mrb[91].mxu0 }
 0x2f4   : > { %v5682_v14 = vadd.f32 %v4281_v9, %v5593_v48  ;;  %v4284_v15 = vadd.f32 %v4283_v12, %v4282_v10  ;;  %2266 = vrot.lane.b32.xlu0 %v4902_v11, %s5086_s23 }
 0x2f5   : > { %v4904_v17 = vpop.eup %4903 }
 0x2f6   : > { %v2102_v18 = vmul.f32 0.5, %v5682_v14  ;;  %3848 = vst [vmem:[%s5599_s21 + $0x60] sm:$0xff] %v5682_v14  ;;  %v5689_v19 = vadd.f32 %v4284_v15, %v5593_v48  ;;  %2268 = vrot.lane.b32.xlu1 %v4904_v17, %s5086_s23 }
 0x2f8   : > { %v2146_v20 = vmul.f32 1.442695, %v2102_v18  ;;  %v2103_v21 = vmul.f32 0.5, %v5689_v19  ;;  %3849 = vst [vmem:[%s5599_s21 + $0x68] sm:$0xff] %v5689_v19  ;;  %v4285_v22 = vpop.f32.mrb[92].mxu0 }
 0x2f9   : > { %v4286_v23 = vpop.f32.mrb[93].mxu0 }
 0x2fa   : > { %4909 = vpow2.f32 %v2146_v20  ;;  %v2148_v24 = vmul.f32 1.442695, %v2103_v21  ;;  %v4287_v25 = vadd.f32 %v4286_v23, %v4285_v22  ;;  %v4288_v26 = vpop.f32.mrb[94].mxu0 }
 0x2fb   : > { %v4906_v29 = vpop.eup %4905  ;;  %v4289_v33 = vpop.f32.mrb[95].mxu0 }
 0x2fc   : > { %4911 = vpow2.f32 %v2148_v24  ;;  %v5696_v35 = vadd.f32 %v4287_v25, %v5593_v48  ;;  %v4290_v36 = vadd.f32 %v4289_v33, %v4288_v26  ;;  %2270 = vrot.lane.b32.xlu0 %v4906_v29, %s5086_s23 }
 0x2fd   : > { %v4908_v31 = vpop.eup %4907 }
 0x2fe   : > { %v2104_v38 = vmul.f32 0.5, %v5696_v35  ;;  %3850 = vst [vmem:[%s5599_s21 + $0x70] sm:$0xff] %v5696_v35  ;;  %v5703_v39 = vadd.f32 %v4290_v36, %v5593_v48  ;;  %2272 = vrot.lane.b32.xlu1 %v4908_v31, %s5086_s23 }
 0x300   : > { %v2150_v40 = vmul.f32 1.442695, %v2104_v38  ;;  %v2105_v41 = vmul.f32 0.5, %v5703_v39  ;;  %3851 = vst [vmem:[%s5599_s21 + $0x78] sm:$0xff] %v5703_v39 }
 0x301   : > { %v4291_v42 = vpop.f32.mrb[96].mxu0 }
 0x302   : > { %4913 = vpow2.f32 %v2150_v40  ;;  %v2152_v43 = vmul.f32 1.442695, %v2105_v41  ;;  %v4292_v44 = vpop.f32.mrb[97].mxu0 }
 0x303   : > { %v4293_v46 = vadd.f32 %v4292_v44, %v4291_v42  ;;  %v4294_v47 = vpop.f32.mrb[98].mxu0 }
 0x304   : > { %v4910_v49 = vpop.eup %4909  ;;  %4915 = vpow2.f32 %v2152_v43  ;;  %v4295_v51 = vpop.f32.mrb[99].mxu0 }
 0x305   : > { %v5710_v52 = vadd.f32 %v4293_v46, %v5593_v48  ;;  %v4296_v54 = vadd.f32 %v4295_v51, %v4294_v47  ;;  %2274 = vrot.lane.b32.xlu0 %v4910_v49, %s5086_s23 }
 0x306   : > { %v4912_v55 = vpop.eup %4911 }
 0x307   : > { %v2106_v57 = vmul.f32 0.5, %v5710_v52  ;;  %3852 = vst [vmem:[%s5599_s21 + $0x80] sm:$0xff] %v5710_v52  ;;  %v5717_v58 = vadd.f32 %v4296_v54, %v5593_v48  ;;  %2276 = vrot.lane.b32.xlu1 %v4912_v55, %s5086_s23 }
 0x309   : > { %v2154_v59 = vmul.f32 1.442695, %v2106_v57  ;;  %v2107_v60 = vmul.f32 0.5, %v5717_v58  ;;  %3853 = vst [vmem:[%s5599_s21 + $0x88] sm:$0xff] %v5717_v58  ;;  %v4297_v61 = vpop.f32.mrb[100].mxu0 }
 0x30a   : > { %v4298_v63 = vpop.f32.mrb[101].mxu0 }
 0x30b   : > { %4917 = vpow2.f32 %v2154_v59  ;;  %v2156_v32 = vmul.f32 1.442695, %v2107_v60  ;;  %v4299_v1 = vadd.f32 %v4298_v63, %v4297_v61  ;;  %v4300_v37 = vpop.f32.mrb[102].mxu0 }
 0x30c   : > { %v4914_v5 = vpop.eup %4913  ;;  %v4301_v6 = vpop.f32.mrb[103].mxu0 }
 0x30d   : > { %4919 = vpow2.f32 %v2156_v32  ;;  %v5724_v7 = vadd.f32 %v4299_v1, %v5593_v48  ;;  %v4302_v8 = vadd.f32 %v4301_v6, %v4300_v37  ;;  %2278 = vrot.lane.b32.xlu0 %v4914_v5, %s5086_s23 }
 0x30e   : > { %v4916_v9 = vpop.eup %4915 }
 0x30f   : > { %v2108_v10 = vmul.f32 0.5, %v5724_v7  ;;  %3854 = vst [vmem:[%s5599_s21 + $0x90] sm:$0xff] %v5724_v7  ;;  %v5731_v11 = vadd.f32 %v4302_v8, %v5593_v48  ;;  %2280 = vrot.lane.b32.xlu1 %v4916_v9, %s5086_s23 }
 0x311   : > { %v2158_v12 = vmul.f32 1.442695, %v2108_v10  ;;  %v2109_v15 = vmul.f32 0.5, %v5731_v11  ;;  %3855 = vst [vmem:[%s5599_s21 + $0x98] sm:$0xff] %v5731_v11  ;;  %v4303_v17 = vpop.f32.mrb[104].mxu0 }
 0x312   : > { %v4304_v18 = vpop.f32.mrb[105].mxu0 }
 0x313   : > { %4921 = vpow2.f32 %v2158_v12  ;;  %v2160_v20 = vmul.f32 1.442695, %v2109_v15  ;;  %v4305_v21 = vadd.f32 %v4304_v18, %v4303_v17  ;;  %v4306_v22 = vpop.f32.mrb[106].mxu0 }
 0x314   : > { %v4307_v23 = vpop.f32.mrb[107].mxu0 }
 0x315   : > { %v4918_v24 = vpop.eup %4917  ;;  %4923 = vpow2.f32 %v2160_v20  ;;  %v5738_v25 = vadd.f32 %v4305_v21, %v5593_v48  ;;  %v4308_v26 = vadd.f32 %v4307_v23, %v4306_v22 }
 0x316   : > { %2282 = vrot.lane.b32.xlu0 %v4918_v24, %s5086_s23 }
 0x317   : > { %v4920_v29 = vpop.eup %4919  ;;  %v2110_v33 = vmul.f32 0.5, %v5738_v25  ;;  %3856 = vst [vmem:[%s5599_s21 + $0xa0] sm:$0xff] %v5738_v25  ;;  %v5745_v36 = vadd.f32 %v4308_v26, %v5593_v48 }
 0x318   : > { %2284 = vrot.lane.b32.xlu1 %v4920_v29, %s5086_s23 }
 0x319   : > { %v2162_v31 = vmul.f32 1.442695, %v2110_v33  ;;  %v2111_v38 = vmul.f32 0.5, %v5745_v36  ;;  %3857 = vst [vmem:[%s5599_s21 + $0xa8] sm:$0xff] %v5745_v36 }
 0x31a   : > { %v4309_v40 = vpop.f32.mrb[108].mxu0 }
 0x31b   : > { %4925 = vpow2.f32 %v2162_v31  ;;  %v2164_v41 = vmul.f32 1.442695, %v2111_v38  ;;  %v4310_v42 = vpop.f32.mrb[109].mxu0 }
 0x31c   : > { %v4311_v43 = vadd.f32 %v4310_v42, %v4309_v40  ;;  %v4312_v44 = vpop.f32.mrb[110].mxu0  ;;  %v4565_v42 = vld [vmem:[%s6304_s10] ss:$8 sps:$4 sm:$0xff]  }
 0x31d   : > { %v4922_v46 = vpop.eup %4921  ;;  %4927 = vpow2.f32 %v2164_v41  ;;  %v4313_v47 = vpop.f32.mrb[111].mxu0 }
 0x31e   : > { %v5752_v49 = vadd.f32 %v4311_v43, %v5593_v48  ;;  %v4314_v51 = vadd.f32 %v4313_v47, %v4312_v44  ;;  %2286 = vrot.lane.b32.xlu0 %v4922_v46, %s5086_s23  ;;  %v4567_v43 = vld [vmem:[%s6304_s10 + $0x4] ss:$8 sps:$4 sm:$0xff]  }
 0x31f   : > { %v4924_v54 = vpop.eup %4923  ;;  %3027 = vmatprep.subr.bf16.mxu0 %v4567_v43  ;;  %v4573_v43 = vld [vmem:[%s6304_s10 + $0x24] ss:$8 sps:$4 sm:$0xff]  }
 0x320   : > { %v2112_v55 = vmul.f32 0.5, %v5752_v49  ;;  %3858 = vst [vmem:[%s5599_s21 + $0xb0] sm:$0xff] %v5752_v49  ;;  %v5759_v57 = vadd.f32 %v4314_v51, %v5593_v48  ;;  %2288 = vrot.lane.b32.xlu1 %v4924_v54, %s5086_s23  ;;  %3028 = vmatpush1.bf16.msra.mxu0 %v4565_v42  ;;  %v4571_v42 = vld [vmem:[%s6304_s10 + $0x20] ss:$8 sps:$4 sm:$0xff]  }
 0x322   : > { %v2166_v59 = vmul.f32 1.442695, %v2112_v55  ;;  %v2113_v60 = vmul.f32 0.5, %v5759_v57  ;;  %3859 = vst [vmem:[%s5599_s21 + $0xb8] sm:$0xff] %v5759_v57  ;;  %v4315_v61 = vpop.f32.mrb[112].mxu0 }
 0x323   : > { %v4316_v63 = vpop.f32.mrb[113].mxu0 }
 0x324   : > { %4929 = vpow2.f32 %v2166_v59  ;;  %v2168_v32 = vmul.f32 1.442695, %v2113_v60  ;;  %v4317_v1 = vadd.f32 %v4316_v63, %v4315_v61  ;;  %v4318_v37 = vpop.f32.mrb[114].mxu0 }
 0x325   : > { %v4926_v5 = vpop.eup %4925  ;;  %v4319_v6 = vpop.f32.mrb[115].mxu0 }
 0x326   : > { %4931 = vpow2.f32 %v2168_v32  ;;  %v5766_v8 = vadd.f32 %v4317_v1, %v5593_v48  ;;  %v4320_v9 = vadd.f32 %v4319_v6, %v4318_v37  ;;  %2290 = vrot.lane.b32.xlu0 %v4926_v5, %s5086_s23  ;;  %v4568_v37 = vld [vmem:[%s6304_s10 + $0x10] ss:$8 sps:$4 sm:$0xff]   ;;  %v4570_v5 = vld [vmem:[%s6304_s10 + $0x14] ss:$8 sps:$4 sm:$0xff]  }
 0x327   : > { %v4928_v10 = vpop.eup %4927  ;;  %3029 = vmatprep.subr.bf16.mxu0 %v4570_v5 }
 0x328   : > { %v2114_v12 = vmul.f32 0.5, %v5766_v8  ;;  %3860 = vst [vmem:[%s5599_s21 + $0xc0] sm:$0xff] %v5766_v8  ;;  %v5773_v15 = vadd.f32 %v4320_v9, %v5593_v48  ;;  %2292 = vrot.lane.b32.xlu1 %v4928_v10, %s5086_s23  ;;  %3030 = vmatpush1.bf16.msra.mxu0 %v4568_v37  ;;  %v4576_v37 = vld [vmem:[%s6304_s10 + $0x34] ss:$8 sps:$4 sm:$0xff]  }
 0x329   : > { %3031 = vmatprep.subr.bf16.mxu0 %v4573_v43 }
 0x32a   : > { %v2170_v17 = vmul.f32 1.442695, %v2114_v12  ;;  %v2115_v18 = vmul.f32 0.5, %v5773_v15  ;;  %3861 = vst [vmem:[%s5599_s21 + $0xc8] sm:$0xff] %v5773_v15  ;;  %v4321_v20 = vpop.f32.mrb[116].mxu0 }
 0x32b   : > { %v4322_v21 = vpop.f32.mrb[117].mxu0 }
 0x32c   : > { %4933 = vpow2.f32 %v2170_v17  ;;  %v2172_v22 = vmul.f32 1.442695, %v2115_v18  ;;  %v4323_v23 = vadd.f32 %v4322_v21, %v4321_v20  ;;  %v4324_v24 = vpop.f32.mrb[118].mxu0  ;;  %3032 = vmatpush1.bf16.msra.mxu0 %v4571_v42 }
 0x32d   : > { %v4325_v26 = vpop.f32.mrb[119].mxu0  ;;  %3033 = vmatprep.subr.bf16.mxu0 %v4576_v37 }
 0x32e   : > { %v4930_v29 = vpop.eup %4929  ;;  %4935 = vpow2.f32 %v2172_v22  ;;  %v5780_v33 = vadd.f32 %v4323_v23, %v5593_v48  ;;  %v4326_v31 = vadd.f32 %v4325_v26, %v4324_v24 }
 0x32f   : > { %2294 = vrot.lane.b32.xlu0 %v4930_v29, %s5086_s23 }
 0x330   : > { %v4932_v38 = vpop.eup %4931  ;;  %v2116_v40 = vmul.f32 0.5, %v5780_v33  ;;  %3862 = vst [vmem:[%s5599_s21 + $0xd0] sm:$0xff] %v5780_v33  ;;  %v5787_v41 = vadd.f32 %v4326_v31, %v5593_v48 }
 0x331   : > { %2296 = vrot.lane.b32.xlu1 %v4932_v38, %s5086_s23 }
 0x332   : > { %v2174_v44 = vmul.f32 1.442695, %v2116_v40  ;;  %v2117_v46 = vmul.f32 0.5, %v5787_v41  ;;  %3863 = vst [vmem:[%s5599_s21 + $0xd8] sm:$0xff] %v5787_v41 }
 0x333   : > { %v4327_v47 = vpop.f32.mrb[120].mxu0 }
 0x334   : > { %4937 = vpow2.f32 %v2174_v44  ;;  %v2176_v51 = vmul.f32 1.442695, %v2117_v46  ;;  %v4328_v54 = vpop.f32.mrb[121].mxu0  ;;  %v2186_v46 = vld [vmem:[%s5834_s20] sm:$0xff] }
 0x335   : > { %v4329_v55 = vadd.f32 %v4328_v54, %v4327_v47  ;;  %v4330_v59 = vpop.f32.mrb[122].mxu0  ;;  %v2187_v54 = vld [vmem:[%s5834_s20 + $0x8] sm:$0xff] }
 0x336   : > { %v4934_v60 = vpop.eup %4933  ;;  %4939 = vpow2.f32 %v2176_v51  ;;  %v4331_v61 = vpop.f32.mrb[123].mxu0 }
 0x337   : > { %v5800_v63 = vadd.f32 %v4329_v55, %v5593_v48  ;;  %v4332_v32 = vadd.f32 %v4331_v61, %v4330_v59  ;;  %2298 = vrot.lane.b32.xlu0 %v4934_v60, %s5086_s23 }
 0x338   : > { %v4936_v1 = vpop.eup %4935 }
 0x339   : > { %v2118_v6 = vmul.f32 0.5, %v5800_v63  ;;  %3864 = vst [vmem:[%s5599_s21 + $0xe0] sm:$0xff] %v5800_v63  ;;  %v5813_v9 = vadd.f32 %v4332_v32, %v5593_v48  ;;  %2300 = vrot.lane.b32.xlu1 %v4936_v1, %s5086_s23  ;;  %v4574_v1 = vld [vmem:[%s6304_s10 + $0x30] ss:$8 sps:$4 sm:$0xff]  }
 0x33a   : > { %3034 = vmatpush1.bf16.msra.mxu0 %v4574_v1  ;;  %v2192_v1 = vld [vmem:[%s5834_s20 + $0x30] sm:$0xff] }
 0x33b   : > { %v2178_v10 = vmul.f32 1.442695, %v2118_v6  ;;  %v2119_v12 = vmul.f32 0.5, %v5813_v9  ;;  %3865 = vst [vmem:[%s5599_s21 + $0xe8] sm:$0xff] %v5813_v9  ;;  %v4333_v17 = vpop.f32.mrb[124].mxu0 }
 0x33c   : > { %v4334_v18 = vpop.f32.mrb[125].mxu0 }
 0x33d   : > { %4941 = vpow2.f32 %v2178_v10  ;;  %v2180_v20 = vmul.f32 1.442695, %v2119_v12  ;;  %v4335_v21 = vadd.f32 %v4334_v18, %v4333_v17  ;;  %v4336_v22 = vpop.f32.mrb[126].mxu0  ;;  %v4579_v10 = vld [vmem:[%s6304_s10 + $0x44] ss:$8 sps:$4 sm:$0xff]   ;;  %v2188_v12 = vld [vmem:[%s5834_s20 + $0x10] sm:$0xff] }
 0x33e   : > { %v4938_v23 = vpop.eup %4937  ;;  %v4337_v24 = vpop.f32.mrb[127].mxu0  ;;  %3035 = vmatprep.subr.bf16.mxu0 %v4579_v10  ;;  %v4589_v10 = vld [vmem:[%s6304_s10 + $0x80] ss:$8 sps:$4 sm:$0xff]  }
 0x33f   : > { %4943 = vpow2.f32 %v2180_v20  ;;  %v5820_v26 = vadd.f32 %v4335_v21, %v5593_v48  ;;  %v4338_v29 = vadd.f32 %v4337_v24, %v4336_v22  ;;  %2302 = vrot.lane.b32.xlu0 %v4938_v23, %s5086_s23  ;;  %v4577_v20 = vld [vmem:[%s6304_s10 + $0x40] ss:$8 sps:$4 sm:$0xff]   ;;  %v2189_v21 = vld [vmem:[%s5834_s20 + $0x18] sm:$0xff] }
 0x340   : > { %v4940_v31 = vpop.eup %4939  ;;  %3036 = vmatpush1.bf16.msra.mxu0 %v4577_v20 }
 0x341   : > { %v2120_v38 = vmul.f32 0.5, %v5820_v26  ;;  %3866 = vst [vmem:[%s5599_s21 + $0xf0] sm:$0xff] %v5820_v26  ;;  %v5827_v40 = vadd.f32 %v4338_v29, %v5593_v48  ;;  %2304 = vrot.lane.b32.xlu1 %v4940_v31, %s5086_s23  ;;  %v4580_v31 = vld [vmem:[%s6304_s10 + $0x50] ss:$8 sps:$4 sm:$0xff]  }
 0x343   : > { %v2182_v44 = vmul.f32 1.442695, %v2120_v38  ;;  %v2121_v48 = vmul.f32 0.5, %v5827_v40  ;;  %3867 = vst [vmem:[%s5599_s21 + $0xf8] sm:$0xff] %v5827_v40  ;;  %v4585_v38 = vld [vmem:[%s6304_s10 + $0x64] ss:$8 sps:$4 sm:$0xff]  }
 0x344   : > { %v2251_v47 = vpop.permute.xlu0 %2250 }
 0x345   : > { %4945 = vpow2.f32 %v2182_v44  ;;  %v2184_v51 = vmul.f32 1.442695, %v2121_v48  ;;  %v2346_v59 = vmul.f32 %v2251_v47, %v2186_v46  ;;  %v2190_v44 = vld [vmem:[%s5834_s20 + $0x20] sm:$0xff]  ;;  %v2191_v47 = vld [vmem:[%s5834_s20 + $0x28] sm:$0xff] }
 0x347   : > { %v4942_v55 = vpop.eup %4941  ;;  %4947 = vpow2.f32 %v2184_v51  ;;  %v2378_v5 = vadd.f32 %v2346_v59, %v5602_v53  ;;  %v4582_v53 = vld [vmem:[%s6304_s10 + $0x54] ss:$8 sps:$4 sm:$0xff]   ;;  %v4583_v51 = vld [vmem:[%s6304_s10 + $0x60] ss:$8 sps:$4 sm:$0xff]   ;;  %v4586_v59 = vld [vmem:[%s6304_s10 + $0x70] ss:$8 sps:$4 sm:$0xff]  }
 0x348   : > { %2306 = vrot.lane.b32.xlu0 %v4942_v55, %s5086_s23  ;;  %v2253_v60 = vpop.permute.xlu0 %2252  ;;  %3037 = vmatprep.subr.bf16.mxu0 %v4582_v53 }
 0x349   : > { %v4944_v61 = vpop.eup %4943  ;;  %v2347_v32 = vmul.f32 %v2253_v60, %v2187_v54  ;;  %3038 = vmatpush1.bf16.msra.mxu0 %v4580_v31  ;;  %v4588_v54 = vld [vmem:[%s6304_s10 + $0x74] ss:$8 sps:$4 sm:$0xff]  }
 0x34a   : > { %2308 = vrot.lane.b32.xlu1 %v4944_v61, %s5086_s23  ;;  %3039 = vmatprep.subr.bf16.mxu0 %v4585_v38  ;;  %v4591_v61 = vld [vmem:[%s6304_s10 + $0x84] ss:$8 sps:$4 sm:$0xff]  }
 0x34b   : > { %v2379_v6 = vadd.f32 %v2347_v32, %v5608_v56 }
 0x34c   : > { %v2255_v17 = vpop.permute.xlu1 %2254 }
 0x34d   : > { %v2410_v18 = vpack.c.bf16 %v2379_v6, %v2378_v5  ;;  %v2348_v22 = vmul.f32 %v2255_v17, %v2188_v12  ;;  %3040 = vmatpush1.bf16.msra.mxu0 %v4583_v51  ;;  %v2193_v6 = vld [vmem:[%s5834_s20 + $0x38] sm:$0xff]  ;;  %v4601_v51 = vld [vmem:[%s6304_s10 + $0xc0] ss:$8 sps:$4 sm:$0xff]  }
 0x34e   : > { %3041 = vmatprep.subr.bf16.mxu0 %v4588_v54 }
 0x34f   : > { %v4946_v56 = vpop.eup %4945  ;;  %4128 = vmatmul.mubr.msk.bf16.vlgmr.msra.gmra.mrb[64].mxu1 %vm643_vm0, %v2410_v18  ;;  %v2380_v42 = vadd.f32 %v2348_v22, %v5614_v0  ;;  %v4592_v18 = vld [vmem:[%s6304_s10 + $0x90] ss:$8 sps:$4 sm:$0xff]  }
 0x350   : > { %2310 = vrot.lane.b32.xlu0 %v4946_v56, %s5086_s23  ;;  %v2257_v23 = vpop.permute.xlu1 %2256  ;;  %2576 = vmatprep.mubr.bf16.mxu1 %v5085_v2  ;;  %v2194_v56 = vld [vmem:[%s5834_s20 + $0x40] sm:$0xff] }
 0x351   : > { %v4948_v24 = vpop.eup %4947  ;;  %v2349_v29 = vmul.f32 %v2257_v23, %v2189_v21  ;;  %3042 = vmatpush1.bf16.msra.mxu0 %v4586_v59  ;;  %v4597_v21 = vld [vmem:[%s6304_s10 + $0xa4] ss:$8 sps:$4 sm:$0xff]   ;;  %v4595_v23 = vld [vmem:[%s6304_s10 + $0xa0] ss:$8 sps:$4 sm:$0xff]   ;;  %v4604_v59 = vld [vmem:[%s6304_s10 + $0xd0] ss:$8 sps:$4 sm:$0xff]  }
 0x352   : > { %2312 = vrot.lane.b32.xlu1 %v4948_v24, %s5086_s23  ;;  %3043 = vmatprep.subr.bf16.mxu0 %v4591_v61 }
 0x353   : > { %v2381_v43 = vadd.f32 %v2349_v29, %v5620_v4  ;;  %v2195_v29 = vld [vmem:[%s5834_s20 + $0x48] sm:$0xff] }
 0x355   : > { %v2411_v48 = vpack.c.bf16 %v2381_v43, %v2380_v42  ;;  %v2259_v46 = vpop.permute.xlu0 %2258  ;;  %3044 = vmatpush1.bf16.msra.mxu0 %v4589_v10  ;;  %v4598_v42 = vld [vmem:[%s6304_s10 + $0xb0] ss:$8 sps:$4 sm:$0xff]   ;;  %v4603_v43 = vld [vmem:[%s6304_s10 + $0xc4] ss:$8 sps:$4 sm:$0xff]  }
 0x356   : > { %v2350_v55 = vmul.f32 %v2259_v46, %v2190_v44  ;;  %v2196_v46 = vld [vmem:[%s5834_s20 + $0x50] sm:$0xff]  ;;  %v2199_v10 = vld [vmem:[%s5834_s20 + $0x68] sm:$0xff] }
 0x357   : > { %v2261_v0 = vpop.permute.xlu1 %2260  ;;  %4129 = vmatmul.mubr.msk.bf16.gmra.mrb[68].mxu1 %vm643_vm0, %v2411_v48 }
 0x358   : > { %v2351_v4 = vmul.f32 %v2261_v0, %v2191_v47  ;;  %2586 = vmatprep.mubr.bf16.mxu1 %v5085_v2  ;;  %v2382_v32 = vadd.f32 %v2350_v55, %v5626_v13  ;;  %v2197_v55 = vld [vmem:[%s5834_s20 + $0x58] sm:$0xff] }
 0x359   : > { %v4606_v0 = vld [vmem:[%s6304_s10 + $0xd4] ss:$8 sps:$4 sm:$0xff]  }
 0x35a   : > { %v2383_v60 = vadd.f32 %v2351_v4, %v5633_v16  ;;  %v4594_v16 = vld [vmem:[%s6304_s10 + $0x94] ss:$8 sps:$4 sm:$0xff]  }
 0x35b   : > { %3045 = vmatprep.subr.bf16.mxu0 %v4594_v16 }
 0x35c   : > { %v2412_v37 = vpack.c.bf16 %v2383_v60, %v2382_v32  ;;  %3046 = vmatpush1.bf16.msra.mxu0 %v4592_v18  ;;  %v4609_v60 = vld [vmem:[%s6304_s10 + $0xe4] ss:$8 sps:$4 sm:$0xff]  }
 0x35d   : > { %v2263_v5 = vpop.permute.xlu0 %2262  ;;  %3047 = vmatprep.subr.bf16.mxu0 %v4597_v21  ;;  %v2201_v21 = vld [vmem:[%s5834_s20 + $0x78] sm:$0xff] }
 0x35e   : > { %v2352_v12 = vmul.f32 %v2263_v5, %v2192_v1  ;;  %v4607_v5 = vld [vmem:[%s6304_s10 + $0xe0] ss:$8 sps:$4 sm:$0xff]  }
 0x35f   : > { %v2265_v17 = vpop.permute.xlu1 %2264  ;;  %4130 = vmatmul.mubr.msk.bf16.gmra.mrb[72].mxu1 %vm643_vm0, %v2412_v37  ;;  %v2198_v37 = vld [vmem:[%s5834_s20 + $0x60] sm:$0xff] }
 0x360   : > { %v2353_v13 = vmul.f32 %v2265_v17, %v2193_v6  ;;  %2596 = vmatprep.mubr.bf16.mxu1 %v5085_v2  ;;  %v2384_v53 = vadd.f32 %v2352_v12, %v5640_v27  ;;  %3048 = vmatpush1.bf16.msra.mxu0 %v4595_v23 }
 0x362   : > { %v2385_v20 = vadd.f32 %v2353_v13, %v5647_v34  ;;  %v4600_v34 = vld [vmem:[%s6304_s10 + $0xb4] ss:$8 sps:$4 sm:$0xff]  }
 0x363   : > { %3049 = vmatprep.subr.bf16.mxu0 %v4600_v34  ;;  %v2200_v13 = vld [vmem:[%s5834_s20 + $0x70] sm:$0xff]  ;;  %v2203_v34 = vld [vmem:[%s5834_s20 + $0x88] sm:$0xff] }
 0x364   : > { %v2413_v22 = vpack.c.bf16 %v2385_v20, %v2384_v53  ;;  %3050 = vmatpush1.bf16.msra.mxu0 %v4598_v42 }
 0x365   : > { %3051 = vmatprep.subr.bf16.mxu0 %v4603_v43  ;;  %v2204_v43 = vld [vmem:[%s5834_s20 + $0x90] sm:$0xff] }
 0x366   : > { %v2267_v24 = vpop.permute.xlu0 %2266 }
 0x367   : > { %v2354_v31 = vmul.f32 %v2267_v24, %v2194_v56  ;;  %4131 = vmatmul.mubr.msk.bf16.gmra.mrb[76].mxu1 %vm643_vm0, %v2413_v22 }
 0x368   : > { %v2269_v27 = vpop.permute.xlu1 %2268  ;;  %2606 = vmatprep.mubr.bf16.mxu1 %v5085_v2  ;;  %3052 = vmatpush1.bf16.msra.mxu0 %v4601_v51 }
 0x369   : > { %v2355_v38 = vmul.f32 %v2269_v27, %v2195_v29  ;;  %v2386_v44 = vadd.f32 %v2354_v31, %v5654_v45  ;;  %3053 = vmatprep.subr.bf16.mxu0 %v4606_v0  ;;  %v2202_v29 = vld [vmem:[%s5834_s20 + $0x80] sm:$0xff] }
 0x36b   : > { %v2387_v48 = vadd.f32 %v2355_v38, %v5661_v50 }
 0x36c   : > { %3054 = vmatpush1.bf16.msra.mxu0 %v4604_v59 }
 0x36d   : > { %v2414_v47 = vpack.c.bf16 %v2387_v48, %v2386_v44  ;;  %3055 = vmatprep.subr.bf16.mxu0 %v4609_v60  ;;  %v2205_v48 = vld [vmem:[%s5834_s20 + $0x98] sm:$0xff] }
 0x36e   : > { %v2271_v54 = vpop.permute.xlu0 %2270 }
 0x36f   : > { %v2356_v4 = vmul.f32 %v2271_v54, %v2196_v46  ;;  %4132 = vmatmul.mubr.msk.bf16.gmra.mrb[80].mxu1 %vm643_vm0, %v2414_v47 }
 0x370   : > { %v2273_v45 = vpop.permute.xlu1 %2272  ;;  %2616 = vmatprep.mubr.bf16.mxu1 %v5085_v2  ;;  %3056 = vmatpush1.bf16.msra.mxu0 %v4607_v5 }
 0x371   : > { %v2357_v50 = vmul.f32 %v2273_v45, %v2197_v55  ;;  %v2388_v61 = vadd.f32 %v2356_v4, %v5668_v62  ;;  %v2206_v55 = vld [vmem:[%s5834_s20 + $0xa0] sm:$0xff]  ;;  %v2207_v4 = vld [vmem:[%s5834_s20 + $0xa8] sm:$0xff] }
 0x373   : > { %v2389_v32 = vadd.f32 %v2357_v50, %v5675_v3 }
 0x375   : > { %v2415_v1 = vpack.c.bf16 %v2389_v32, %v2388_v61  ;;  %v2208_v32 = vld [vmem:[%s5834_s20 + $0xb0] sm:$0xff] }
 0x377   : > { %v2275_v6 = vpop.permute.xlu0 %2274  ;;  %4133 = vmatmul.mubr.msk.bf16.gmra.mrb[84].mxu1 %vm643_vm0, %v2415_v1  ;;  %v2209_v1 = vld [vmem:[%s5834_s20 + $0xb8] sm:$0xff] }
 0x378   : > { %v2358_v16 = vmul.f32 %v2275_v6, %v2198_v37  ;;  %2626 = vmatprep.mubr.bf16.mxu1 %v5085_v2 }
 0x379   : > { %v2277_v62 = vpop.permute.xlu1 %2276 }
 0x37a   : > { %v2359_v3 = vmul.f32 %v2277_v62, %v2199_v10  ;;  %v2390_v12 = vadd.f32 %v2358_v16, %v5682_v14 }
 0x37c   : > { %v2391_v17 = vadd.f32 %v2359_v3, %v5689_v19 }
 0x37e   : > { %v2416_v18 = vpack.c.bf16 %v2391_v17, %v2390_v12  ;;  %v4610_v12 = vld [vmem:[%s6304_s10 + $0xf0] ss:$8 sps:$4 sm:$0xff]   ;;  %v4612_v17 = vld [vmem:[%s6304_s10 + $0xf4] ss:$8 sps:$4 sm:$0xff]  }
 0x37f   : > { %v2279_v20 = vpop.permute.xlu0 %2278  ;;  %3057 = vmatprep.subr.bf16.mxu0 %v4612_v17 }
 0x380   : > { %v2360_v53 = vmul.f32 %v2279_v20, %v2200_v13  ;;  %4134 = vmatmul.mubr.msk.bf16.gmra.mrb[88].mxu1 %vm643_vm0, %v2416_v18  ;;  %3058 = vmatpush1.bf16.msra.mxu0 %v4610_v12 }
 0x381   : > { %v2281_v56 = vpop.permute.xlu1 %2280  ;;  %2636 = vmatprep.mubr.bf16.mxu1 %v5085_v2 }
 0x382   : > { %v2361_v22 = vmul.f32 %v2281_v56, %v2201_v21  ;;  %v2392_v23 = vadd.f32 %v2360_v53, %v5696_v35  ;;  %v2212_v21 = vld [vmem:[%s5834_s20 + $0xd0] sm:$0xff] }
 0x384   : > { %v2393_v14 = vadd.f32 %v2361_v22, %v5703_v39  ;;  %v2213_v22 = vld [vmem:[%s5834_s20 + $0xd8] sm:$0xff] }
 0x386   : > { %v2417_v24 = vpack.c.bf16 %v2393_v14, %v2392_v23 }
 0x388   : > { %v2283_v19 = vpop.permute.xlu0 %2282  ;;  %4135 = vmatmul.mubr.msk.bf16.gmra.mrb[92].mxu1 %vm643_vm0, %v2417_v24 }
 0x389   : > { %v2362_v31 = vmul.f32 %v2283_v19, %v2202_v29  ;;  %2646 = vmatprep.mubr.bf16.mxu1 %v5085_v2 }
 0x38a   : > { %v2285_v27 = vpop.permute.xlu1 %2284 }
 0x38b   : > { %v2363_v38 = vmul.f32 %v2285_v27, %v2203_v34  ;;  %v2394_v42 = vadd.f32 %v2362_v31, %v5710_v52  ;;  %v2214_v34 = vld [vmem:[%s5834_s20 + $0xe0] sm:$0xff]  ;;  %v2215_v31 = vld [vmem:[%s5834_s20 + $0xe8] sm:$0xff] }
 0x38d   : > { %v2395_v35 = vadd.f32 %v2363_v38, %v5717_v58 }
 0x38f   : > { %v2418_v44 = vpack.c.bf16 %v2395_v35, %v2394_v42 }
 0x390   : > { %v2287_v39 = vpop.permute.xlu0 %2286 }
 0x391   : > { %v2364_v46 = vmul.f32 %v2287_v39, %v2204_v43  ;;  %4136 = vmatmul.mubr.msk.bf16.gmra.mrb[96].mxu1 %vm643_vm0, %v2418_v44  ;;  %v2216_v44 = vld [vmem:[%s5834_s20 + $0xf0] sm:$0xff] }
 0x392   : > { %v2289_v47 = vpop.permute.xlu1 %2288  ;;  %2656 = vmatprep.mubr.bf16.mxu1 %v5085_v2 }
 0x393   : > { %v2365_v51 = vmul.f32 %v2289_v47, %v2205_v48  ;;  %v2396_v54 = vadd.f32 %v2364_v46, %v5724_v7  ;;  %v2217_v48 = vld [vmem:[%s5834_s20 + $0xf8] sm:$0xff] }
 0x395   : > { %v2397_v52 = vadd.f32 %v2365_v51, %v5731_v11 }
 0x397   : > { %v2419_v0 = vpack.c.bf16 %v2397_v52, %v2396_v54 }
 0x398   : > { %v2291_v58 = vpop.permute.xlu0 %2290 }
 0x399   : > { %v2366_v45 = vmul.f32 %v2291_v58, %v2206_v55  ;;  %4137 = vmatmul.mubr.msk.bf16.gmra.mrb[100].mxu1 %vm643_vm0, %v2419_v0 }
 0x39a   : > { %v2293_v50 = vpop.permute.xlu1 %2292  ;;  %2666 = vmatprep.mubr.bf16.mxu1 %v5085_v2 }
 0x39b   : > { %v2367_v59 = vmul.f32 %v2293_v50, %v2207_v4  ;;  %v2398_v60 = vadd.f32 %v2366_v45, %v5738_v25  ;;  %v2210_v25 = vld [vmem:[%s5834_s20 + $0xc0] sm:$0xff] }
 0x39d   : > { %v2399_v7 = vadd.f32 %v2367_v59, %v5745_v36  ;;  %v2211_v36 = vld [vmem:[%s5834_s20 + $0xc8] sm:$0xff]  ;;  %v4613_v59 = vld [vmem:[%s6306_s12 + $0x40] sm:$0xff]  }
 0x39e   : > { %4451 = vmatprep.subr.bf16.mxu1 %v4613_v59  ;;  %4339 = vmatprep.subr.bf16.mxu0 %v4613_v59 }
 0x39f   : > { %v2420_v61 = vpack.c.bf16 %v2399_v7, %v2398_v60 }
 0x3a1   : > { %v2295_v11 = vpop.permute.xlu0 %2294  ;;  %4138 = vmatmul.mubr.msk.bf16.gmra.mrb[104].mxu1 %vm643_vm0, %v2420_v61  ;;  %v4614_v61 = vld [vmem:[%s6306_s12] sm:$0xff]  }
 0x3a2   : > { %v2368_v37 = vmul.f32 %v2295_v11, %v2208_v32  ;;  %2676 = vmatprep.mubr.bf16.mxu1 %v5085_v2  ;;  %4459 = vmatpush3.bf16.msra.mxu1 %v4614_v61 }
 0x3a3   : > { %v2297_v5 = vpop.permute.xlu1 %2296 }
 0x3a4   : > { %v2369_v6 = vmul.f32 %v2297_v5, %v2209_v1  ;;  %v2400_v10 = vadd.f32 %v2368_v37, %v5752_v49  ;;  %v4615_v37 = vld [vmem:[%s6306_s12 + $0x48] sm:$0xff]  }
 0x3a5   : > { %4452 = vmatprep.subr.bf16.mxu1 %v4615_v37 }
 0x3a6   : > { %v2401_v16 = vadd.f32 %v2369_v6, %v5759_v57 }
 0x3a8   : > { %v2421_v62 = vpack.c.bf16 %v2401_v16, %v2400_v10 }
 0x3a9   : > { %v2299_v3 = vpop.permute.xlu0 %2298 }
 0x3aa   : > { %v2370_v13 = vmul.f32 %v2299_v3, %v2210_v25  ;;  %4139 = vmatmul.mubr.msk.bf16.gmra.mrb[108].mxu1 %vm643_vm0, %v2421_v62  ;;  %v4616_v25 = vld [vmem:[%s6306_s12 + $0x8] sm:$0xff]  }
 0x3ab   : > { %v2301_v49 = vpop.permute.xlu1 %2300  ;;  %2686 = vmatprep.mubr.bf16.mxu1 %v5085_v2  ;;  %4460 = vmatpush3.bf16.msra.mxu1 %v4616_v25 }
 0x3ac   : > { %v2371_v57 = vmul.f32 %v2301_v49, %v2211_v36  ;;  %v2402_v18 = vadd.f32 %v2370_v13, %v5766_v8  ;;  %v4617_v36 = vld [vmem:[%s6306_s12 + $0x50] sm:$0xff]  }
 0x3ad   : > { %4453 = vmatprep.subr.bf16.mxu1 %v4617_v36 }
 0x3ae   : > { %v2403_v20 = vadd.f32 %v2371_v57, %v5773_v15 }
 0x3b0   : > { %v2422_v53 = vpack.c.bf16 %v2403_v20, %v2402_v18  ;;  %v4618_v18 = vld [vmem:[%s6306_s12 + $0x10] sm:$0xff]  }
 0x3b1   : > { %v2303_v56 = vpop.permute.xlu0 %2302  ;;  %4461 = vmatpush3.bf16.msra.mxu1 %v4618_v18 }
 0x3b2   : > { %v2372_v23 = vmul.f32 %v2303_v56, %v2212_v21  ;;  %4140 = vmatmul.mubr.msk.bf16.gmra.mrb[112].mxu1 %vm643_vm0, %v2422_v53  ;;  %v4619_v53 = vld [vmem:[%s6306_s12 + $0x58] sm:$0xff]  }
 0x3b3   : > { %v2305_v14 = vpop.permute.xlu1 %2304  ;;  %2696 = vmatprep.mubr.bf16.mxu1 %v5085_v2  ;;  %4454 = vmatprep.subr.bf16.mxu1 %v4619_v53 }
 0x3b4   : > { %v2373_v24 = vmul.f32 %v2305_v14, %v2213_v22  ;;  %v2404_v29 = vadd.f32 %v2372_v23, %v5780_v33 }
 0x3b6   : > { %v2405_v8 = vadd.f32 %v2373_v24, %v5787_v41 }
 0x3b8   : > { %v2423_v19 = vpack.c.bf16 %v2405_v8, %v2404_v29  ;;  %v4620_v29 = vld [vmem:[%s6306_s12 + $0x18] sm:$0xff]  }
 0x3b9   : > { %4462 = vmatpush3.bf16.msra.mxu1 %v4620_v29 }
 0x3ba   : > { %v2307_v15 = vpop.permute.xlu0 %2306  ;;  %4141 = vmatmul.mubr.msk.bf16.gmra.mrb[116].mxu1 %vm643_vm0, %v2423_v19 }
 0x3bb   : > { %v2374_v27 = vmul.f32 %v2307_v15, %v2214_v34  ;;  %2706 = vmatprep.mubr.bf16.mxu1 %v5085_v2  ;;  %v4621_v34 = vld [vmem:[%s6306_s12 + $0x60] sm:$0xff]  }
 0x3bc   : > { %v2309_v38 = vpop.permute.xlu1 %2308  ;;  %4455 = vmatprep.subr.bf16.mxu1 %v4621_v34 }
 0x3bd   : > { %v2375_v42 = vmul.f32 %v2309_v38, %v2215_v31  ;;  %v2406_v35 = vadd.f32 %v2374_v27, %v5800_v63  ;;  %v2434_v63 = vld [vmem:[%s6303_s9] sm:$0x3] }
 0x3be   : > { %v6029_v55 = vrot.slane %v2434_v63, %v5372_v30 }
 0x3bf   : > { %v2407_v43 = vadd.f32 %v2375_v42, %v5813_v9  ;;  %v6026_v9 = vrot.slane %v2434_v63, %v5367_v28 }
 0x3c1   : > { %v2424_v33 = vpack.c.bf16 %v2407_v43, %v2406_v35  ;;  %v4622_v35 = vld [vmem:[%s6306_s12 + $0x20] sm:$0xff]  }
 0x3c2   : > { %v2311_v39 = vpop.permute.xlu0 %2310  ;;  %4463 = vmatpush3.bf16.msra.mxu1 %v4622_v35 }
 0x3c3   : > { %v2376_v41 = vmul.f32 %v2311_v39, %v2216_v44  ;;  %4142 = vmatmul.mubr.msk.bf16.gmra.mrb[120].mxu1 %vm643_vm0, %v2424_v33  ;;  %v4623_v33 = vld [vmem:[%s6306_s12 + $0x68] sm:$0xff]  }
 0x3c4   : > { %v2313_v46 = vpop.permute.xlu1 %2312  ;;  %2716 = vmatprep.mubr.bf16.mxu1 %v5085_v2  ;;  %4456 = vmatprep.subr.bf16.mxu1 %v4623_v33 }
 0x3c5   : > { %v2377_v47 = vmul.f32 %v2313_v46, %v2217_v48  ;;  %v2408_v51 = vadd.f32 %v2376_v41, %v5820_v26 }
 0x3c7   : > { %v2409_v54 = vadd.f32 %v2377_v47, %v5827_v40 }
 0x3c9   : > { %v2425_v52 = vpack.c.bf16 %v2409_v54, %v2408_v51  ;;  %v4624_v51 = vld [vmem:[%s6306_s12 + $0x28] sm:$0xff]  }
 0x3ca   : > { %4464 = vmatpush3.bf16.msra.mxu1 %v4624_v51 }
 0x3cb   : > { %4143 = vmatmul.mubr.msk.bf16.gmra.mrb[124].mxu1 %vm643_vm0, %v2425_v52 }
 0x422   : > { %v2568_v0 = vpop.f32.mrb[64].mxu1 }
 0x423   : > { %v2569_v2 = vadd.f32 %v2568_v0, %v6026_v9  ;;  %v2570_v58 = vpop.f32.mrb[65].mxu1 }
 0x424   : > { %v2571_v26 = vadd.f32 %v2570_v58, %v6029_v55  ;;  %v2572_v40 = vpop.f32.mrb[66].mxu1 }
 0x425   : > { %v2573_v4 = vadd.f32 %v2572_v40, %v6026_v9  ;;  %v2574_v45 = vpop.f32.mrb[67].mxu1  ;;  %v2727_v60 = vmax.f32 %v2569_v2, 0.0 }
 0x426   : > { %v2575_v50 = vadd.f32 %v2574_v45, %v6029_v55  ;;  %v2728_v32 = vmax.f32 %v2571_v26, 0.0 }
 0x427   : > { %v2729_v7 = vmax.f32 %v2573_v4, 0.0 }
 0x428   : > { %v2730_v11 = vmax.f32 %v2575_v50, 0.0 }
 0x429   : > { %v2791_v1 = vpack.c.bf16 %v2729_v7, %v2727_v60 }
 0x42a   : > { %v2792_v5 = vpack.c.bf16 %v2730_v11, %v2728_v32  ;;  %v2578_v6 = vpop.f32.mrb[68].mxu1 }
 0x42b   : > { %v2579_v10 = vadd.f32 %v2578_v6, %v6026_v9  ;;  %v2580_v16 = vpop.f32.mrb[69].mxu1 }
 0x42c   : > { %v2581_v62 = vadd.f32 %v2580_v16, %v6029_v55  ;;  %v2582_v3 = vpop.f32.mrb[70].mxu1  ;;  %3059 = vmatprep.mubr.bf16.mxu0 %v2792_v5 }
 0x42d   : > { %v2583_v12 = vadd.f32 %v2582_v3, %v6026_v9  ;;  %v2584_v17 = vpop.f32.mrb[71].mxu1  ;;  %3060 = vmatmul.mubr.bf16.vlgmr.msra.gmra.mrb[128].mxu0 %v2791_v1  ;;  %v2731_v49 = vmax.f32 %v2579_v10, 0.0 }
 0x42e   : > { %v2585_v13 = vadd.f32 %v2584_v17, %v6029_v55  ;;  %4340 = vmatpush3.bf16.msra.mxu0 %v4614_v61  ;;  %v2732_v20 = vmax.f32 %v2581_v62, 0.0 }
 0x42f   : > { %v2733_v57 = vmax.f32 %v2583_v12, 0.0  ;;  %4341 = vmatprep.subr.bf16.mxu0 %v4615_v37 }
 0x430   : > { %v2734_v21 = vmax.f32 %v2585_v13, 0.0 }
 0x431   : > { %v2793_v56 = vpack.c.bf16 %v2733_v57, %v2731_v49 }
 0x432   : > { %v2794_v22 = vpack.c.bf16 %v2734_v21, %v2732_v20  ;;  %v2588_v23 = vpop.f32.mrb[72].mxu1  ;;  %4342 = vmatpush3.bf16.msra.mxu0 %v4616_v25 }
 0x433   : > { %v2589_v14 = vadd.f32 %v2588_v23, %v6026_v9  ;;  %v2590_v24 = vpop.f32.mrb[73].mxu1  ;;  %4343 = vmatprep.subr.bf16.mxu0 %v4617_v36 }
 0x434   : > { %v2591_v8 = vadd.f32 %v2590_v24, %v6029_v55  ;;  %v2592_v19 = vpop.f32.mrb[74].mxu1  ;;  %3069 = vmatprep.mubr.bf16.mxu0 %v2794_v22 }
 0x435   : > { %v2593_v15 = vadd.f32 %v2592_v19, %v6026_v9  ;;  %v2594_v31 = vpop.f32.mrb[75].mxu1  ;;  %3070 = vmatmul.mubr.bf16.gmra.mrb[132].mxu0 %v2793_v56  ;;  %v2735_v38 = vmax.f32 %v2589_v14, 0.0 }
 0x436   : > { %v2595_v27 = vadd.f32 %v2594_v31, %v6029_v55  ;;  %4344 = vmatpush3.bf16.msra.mxu0 %v4618_v18  ;;  %v2736_v43 = vmax.f32 %v2591_v8, 0.0 }
 0x437   : > { %v2737_v42 = vmax.f32 %v2593_v15, 0.0  ;;  %4345 = vmatprep.subr.bf16.mxu0 %v4619_v53 }
 0x438   : > { %v2738_v44 = vmax.f32 %v2595_v27, 0.0 }
 0x439   : > { %v2795_v39 = vpack.c.bf16 %v2737_v42, %v2735_v38 }
 0x43a   : > { %v2796_v48 = vpack.c.bf16 %v2738_v44, %v2736_v43  ;;  %v2598_v41 = vpop.f32.mrb[76].mxu1  ;;  %4346 = vmatpush3.bf16.msra.mxu0 %v4620_v29 }
 0x43b   : > { %v2599_v46 = vadd.f32 %v2598_v41, %v6026_v9  ;;  %v2600_v47 = vpop.f32.mrb[77].mxu1  ;;  %4347 = vmatprep.subr.bf16.mxu0 %v4621_v34 }
 0x43c   : > { %v2601_v54 = vadd.f32 %v2600_v47, %v6029_v55  ;;  %v2602_v52 = vpop.f32.mrb[78].mxu1  ;;  %3079 = vmatprep.mubr.bf16.mxu0 %v2796_v48 }
 0x43d   : > { %v2603_v63 = vadd.f32 %v2602_v52, %v6026_v9  ;;  %v2604_v0 = vpop.f32.mrb[79].mxu1  ;;  %3080 = vmatmul.mubr.bf16.gmra.mrb[136].mxu0 %v2795_v39  ;;  %v2739_v58 = vmax.f32 %v2599_v46, 0.0 }
 0x43e   : > { %v2605_v2 = vadd.f32 %v2604_v0, %v6029_v55  ;;  %4348 = vmatpush3.bf16.msra.mxu0 %v4622_v35  ;;  %v2740_v40 = vmax.f32 %v2601_v54, 0.0 }
 0x43f   : > { %v2741_v26 = vmax.f32 %v2603_v63, 0.0  ;;  %4349 = vmatprep.subr.bf16.mxu0 %v4623_v33 }
 0x440   : > { %v2742_v4 = vmax.f32 %v2605_v2, 0.0 }
 0x441   : > { %v2797_v45 = vpack.c.bf16 %v2741_v26, %v2739_v58 }
 0x442   : > { %v2798_v50 = vpack.c.bf16 %v2742_v4, %v2740_v40  ;;  %v2608_v59 = vpop.f32.mrb[80].mxu1  ;;  %4350 = vmatpush3.bf16.msra.mxu0 %v4624_v51 }
 0x443   : > { %v2609_v60 = vadd.f32 %v2608_v59, %v6026_v9  ;;  %v2610_v7 = vpop.f32.mrb[81].mxu1 }
 0x444   : > { %v2611_v61 = vadd.f32 %v2610_v7, %v6029_v55  ;;  %v2612_v32 = vpop.f32.mrb[82].mxu1  ;;  %3089 = vmatprep.mubr.bf16.mxu0 %v2798_v50 }
 0x445   : > { %v2613_v11 = vadd.f32 %v2612_v32, %v6026_v9  ;;  %v2614_v1 = vpop.f32.mrb[83].mxu1  ;;  %3090 = vmatmul.mubr.bf16.gmra.mrb[140].mxu0 %v2797_v45  ;;  %v2743_v5 = vmax.f32 %v2609_v60, 0.0 }
 0x446   : > { %v2615_v37 = vadd.f32 %v2614_v1, %v6029_v55  ;;  %v2744_v10 = vmax.f32 %v2611_v61, 0.0 }
 0x447   : > { %v2745_v6 = vmax.f32 %v2613_v11, 0.0 }
 0x448   : > { %v2746_v16 = vmax.f32 %v2615_v37, 0.0 }
 0x449   : > { %v2799_v25 = vpack.c.bf16 %v2745_v6, %v2743_v5 }
 0x44a   : > { %v2800_v62 = vpack.c.bf16 %v2746_v16, %v2744_v10  ;;  %v2618_v3 = vpop.f32.mrb[84].mxu1 }
 0x44b   : > { %v2619_v36 = vadd.f32 %v2618_v3, %v6026_v9  ;;  %v2620_v12 = vpop.f32.mrb[85].mxu1 }
 0x44c   : > { %v2621_v17 = vadd.f32 %v2620_v12, %v6029_v55  ;;  %v2622_v13 = vpop.f32.mrb[86].mxu1  ;;  %3099 = vmatprep.mubr.bf16.mxu0 %v2800_v62 }
 0x44d   : > { %v2623_v49 = vadd.f32 %v2622_v13, %v6026_v9  ;;  %v2624_v57 = vpop.f32.mrb[87].mxu1  ;;  %3100 = vmatmul.mubr.bf16.gmra.mrb[144].mxu0 %v2799_v25  ;;  %v2747_v20 = vmax.f32 %v2619_v36, 0.0 }
 0x44e   : > { %v2625_v18 = vadd.f32 %v2624_v57, %v6029_v55  ;;  %v2748_v53 = vmax.f32 %v2621_v17, 0.0 }
 0x44f   : > { %v2749_v21 = vmax.f32 %v2623_v49, 0.0 }
 0x450   : > { %v2750_v56 = vmax.f32 %v2625_v18, 0.0 }
 0x451   : > { %v2801_v22 = vpack.c.bf16 %v2749_v21, %v2747_v20 }
 0x452   : > { %v2802_v23 = vpack.c.bf16 %v2750_v56, %v2748_v53 }
 0x453   : > { %v2628_v14 = vpop.f32.mrb[88].mxu1 }
 0x454   : > { %v2629_v24 = vadd.f32 %v2628_v14, %v6026_v9  ;;  %v2630_v29 = vpop.f32.mrb[89].mxu1  ;;  %3109 = vmatprep.mubr.bf16.mxu0 %v2802_v23 }
 0x455   : > { %v2631_v8 = vadd.f32 %v2630_v29, %v6029_v55  ;;  %v2632_v19 = vpop.f32.mrb[90].mxu1  ;;  %3110 = vmatmul.mubr.bf16.gmra.mrb[148].mxu0 %v2801_v22 }
 0x456   : > { %v2633_v34 = vadd.f32 %v2632_v19, %v6026_v9  ;;  %v2634_v15 = vpop.f32.mrb[91].mxu1  ;;  %v2751_v27 = vmax.f32 %v2629_v24, 0.0 }
 0x457   : > { %v2635_v31 = vadd.f32 %v2634_v15, %v6029_v55  ;;  %v2752_v42 = vmax.f32 %v2631_v8, 0.0 }
 0x458   : > { %v2753_v38 = vmax.f32 %v2633_v34, 0.0 }
 0x459   : > { %v2754_v35 = vmax.f32 %v2635_v31, 0.0 }
 0x45a   : > { %v2803_v43 = vpack.c.bf16 %v2753_v38, %v2751_v27 }
 0x45b   : > { %v2804_v44 = vpack.c.bf16 %v2754_v35, %v2752_v42  ;;  %v2638_v33 = vpop.f32.mrb[92].mxu1 }
 0x45c   : > { %v2639_v39 = vadd.f32 %v2638_v33, %v6026_v9  ;;  %v2640_v48 = vpop.f32.mrb[93].mxu1 }
 0x45d   : > { %v2641_v41 = vadd.f32 %v2640_v48, %v6029_v55  ;;  %v2642_v46 = vpop.f32.mrb[94].mxu1  ;;  %3119 = vmatprep.mubr.bf16.mxu0 %v2804_v44 }
 0x45e   : > { %v2643_v47 = vadd.f32 %v2642_v46, %v6026_v9  ;;  %v2644_v51 = vpop.f32.mrb[95].mxu1  ;;  %3120 = vmatmul.mubr.bf16.gmra.mrb[152].mxu0 %v2803_v43  ;;  %v2755_v52 = vmax.f32 %v2639_v39, 0.0 }
 0x45f   : > { %v2645_v54 = vadd.f32 %v2644_v51, %v6029_v55  ;;  %v2756_v0 = vmax.f32 %v2641_v41, 0.0 }
 0x460   : > { %v2757_v63 = vmax.f32 %v2643_v47, 0.0 }
 0x461   : > { %v2758_v2 = vmax.f32 %v2645_v54, 0.0 }
 0x462   : > { %v2805_v58 = vpack.c.bf16 %v2757_v63, %v2755_v52 }
 0x463   : > { %v2806_v26 = vpack.c.bf16 %v2758_v2, %v2756_v0 }
 0x464   : > { %v2648_v40 = vpop.f32.mrb[96].mxu1 }
 0x465   : > { %v2649_v4 = vadd.f32 %v2648_v40, %v6026_v9  ;;  %v2650_v45 = vpop.f32.mrb[97].mxu1  ;;  %3129 = vmatprep.mubr.bf16.mxu0 %v2806_v26 }
 0x466   : > { %v2651_v50 = vadd.f32 %v2650_v45, %v6029_v55  ;;  %v2652_v59 = vpop.f32.mrb[98].mxu1  ;;  %3130 = vmatmul.mubr.bf16.gmra.mrb[156].mxu0 %v2805_v58 }
 0x467   : > { %v2653_v60 = vadd.f32 %v2652_v59, %v6026_v9  ;;  %v2654_v7 = vpop.f32.mrb[99].mxu1  ;;  %v2759_v32 = vmax.f32 %v2649_v4, 0.0  ;;  %v4625_v4 = vld [vmem:[%s6306_s12 + $0x70] sm:$0xff]  }
 0x468   : > { %v2655_v61 = vadd.f32 %v2654_v7, %v6029_v55  ;;  %v2760_v1 = vmax.f32 %v2651_v50, 0.0  ;;  %v4626_v59 = vld [vmem:[%s6306_s12 + $0x30] sm:$0xff]   ;;  %4457 = vmatprep.subr.bf16.mxu1 %v4625_v4  ;;  %4351 = vmatprep.subr.bf16.mxu0 %v4625_v4 }
 0x469   : > { %v2761_v11 = vmax.f32 %v2653_v60, 0.0  ;;  %v4627_v60 = vld [vmem:[%s6306_s12 + $0x78] sm:$0xff]   ;;  %4465 = vmatpush3.bf16.msra.mxu1 %v4626_v59  ;;  %4352 = vmatpush3.bf16.msra.mxu0 %v4626_v59 }
 0x46a   : > { %v2762_v37 = vmax.f32 %v2655_v61, 0.0  ;;  %4353 = vmatprep.subr.bf16.mxu0 %v4627_v60  ;;  %4458 = vmatprep.subr.bf16.mxu1 %v4627_v60 }
 0x46b   : > { %v2807_v5 = vpack.c.bf16 %v2761_v11, %v2759_v32 }
 0x46c   : > { %v2808_v6 = vpack.c.bf16 %v2762_v37, %v2760_v1  ;;  %v2658_v10 = vpop.f32.mrb[100].mxu1  ;;  %v4628_v37 = vld [vmem:[%s6306_s12 + $0x38] sm:$0xff]  }
 0x46d   : > { %v2659_v16 = vadd.f32 %v2658_v10, %v6026_v9  ;;  %v2660_v25 = vpop.f32.mrb[101].mxu1  ;;  %4354 = vmatpush3.bf16.msra.mxu0 %v4628_v37  ;;  %4466 = vmatpush3.bf16.msra.mxu1 %v4628_v37 }
 0x46e   : > { %v2661_v62 = vadd.f32 %v2660_v25, %v6029_v55  ;;  %v2662_v3 = vpop.f32.mrb[102].mxu1  ;;  %3139 = vmatprep.mubr.bf16.mxu0 %v2808_v6 }
 0x46f   : > { %v2663_v36 = vadd.f32 %v2662_v3, %v6026_v9  ;;  %v2664_v12 = vpop.f32.mrb[103].mxu1  ;;  %3140 = vmatmul.mubr.bf16.gmra.mrb[160].mxu0 %v2807_v5  ;;  %v2763_v13 = vmax.f32 %v2659_v16, 0.0 }
 0x470   : > { %v2665_v17 = vadd.f32 %v2664_v12, %v6029_v55  ;;  %v2764_v57 = vmax.f32 %v2661_v62, 0.0 }
 0x471   : > { %v2765_v49 = vmax.f32 %v2663_v36, 0.0 }
 0x472   : > { %v2766_v18 = vmax.f32 %v2665_v17, 0.0 }
 0x473   : > { %v2809_v20 = vpack.c.bf16 %v2765_v49, %v2763_v13 }
 0x474   : > { %v2810_v21 = vpack.c.bf16 %v2766_v18, %v2764_v57  ;;  %v2668_v53 = vpop.f32.mrb[104].mxu1 }
 0x475   : > { %v2669_v56 = vadd.f32 %v2668_v53, %v6026_v9  ;;  %v2670_v22 = vpop.f32.mrb[105].mxu1 }
 0x476   : > { %v2671_v23 = vadd.f32 %v2670_v22, %v6029_v55  ;;  %v2672_v14 = vpop.f32.mrb[106].mxu1  ;;  %3149 = vmatprep.mubr.bf16.mxu0 %v2810_v21 }
 0x477   : > { %v2673_v24 = vadd.f32 %v2672_v14, %v6026_v9  ;;  %v2674_v29 = vpop.f32.mrb[107].mxu1  ;;  %3150 = vmatmul.mubr.bf16.gmra.mrb[164].mxu0 %v2809_v20  ;;  %v2767_v19 = vmax.f32 %v2669_v56, 0.0 }
 0x478   : > { %v2675_v8 = vadd.f32 %v2674_v29, %v6029_v55  ;;  %v2768_v15 = vmax.f32 %v2671_v23, 0.0 }
 0x479   : > { %v2769_v34 = vmax.f32 %v2673_v24, 0.0 }
 0x47a   : > { %v2770_v31 = vmax.f32 %v2675_v8, 0.0 }
 0x47b   : > { %v2811_v27 = vpack.c.bf16 %v2769_v34, %v2767_v19 }
 0x47c   : > { %v2812_v38 = vpack.c.bf16 %v2770_v31, %v2768_v15 }
 0x47d   : > { %v2678_v42 = vpop.f32.mrb[108].mxu1 }
 0x47e   : > { %v2679_v35 = vadd.f32 %v2678_v42, %v6026_v9  ;;  %v2680_v43 = vpop.f32.mrb[109].mxu1  ;;  %3159 = vmatprep.mubr.bf16.mxu0 %v2812_v38 }
 0x47f   : > { %v2681_v44 = vadd.f32 %v2680_v43, %v6029_v55  ;;  %v2682_v33 = vpop.f32.mrb[110].mxu1  ;;  %3160 = vmatmul.mubr.bf16.gmra.mrb[168].mxu0 %v2811_v27 }
 0x480   : > { %v2683_v39 = vadd.f32 %v2682_v33, %v6026_v9  ;;  %v2684_v48 = vpop.f32.mrb[111].mxu1  ;;  %v2771_v46 = vmax.f32 %v2679_v35, 0.0 }
 0x481   : > { %v2685_v41 = vadd.f32 %v2684_v48, %v6029_v55  ;;  %v2772_v51 = vmax.f32 %v2681_v44, 0.0 }
 0x482   : > { %v2773_v47 = vmax.f32 %v2683_v39, 0.0 }
 0x483   : > { %v2774_v54 = vmax.f32 %v2685_v41, 0.0 }
 0x484   : > { %v2813_v52 = vpack.c.bf16 %v2773_v47, %v2771_v46 }
 0x485   : > { %v2814_v63 = vpack.c.bf16 %v2774_v54, %v2772_v51  ;;  %v2688_v0 = vpop.f32.mrb[112].mxu1 }
 0x486   : > { %v2689_v2 = vadd.f32 %v2688_v0, %v6026_v9  ;;  %v2690_v58 = vpop.f32.mrb[113].mxu1  ;;  %v2855_v0 = vld [vmem:[%s6305_s11] sm:$0x3] }
 0x487   : > { %v2691_v26 = vadd.f32 %v2690_v58, %v6029_v55  ;;  %v2692_v40 = vpop.f32.mrb[114].mxu1  ;;  %3169 = vmatprep.mubr.bf16.mxu0 %v2814_v63 }
 0x488   : > { %v2693_v45 = vadd.f32 %v2692_v40, %v6026_v9  ;;  %v2694_v50 = vpop.f32.mrb[115].mxu1  ;;  %3170 = vmatmul.mubr.bf16.gmra.mrb[172].mxu0 %v2813_v52  ;;  %v2775_v61 = vmax.f32 %v2689_v2, 0.0  ;;  %v6147_v2 = vrot.slane %v2855_v0, %v5367_v28 }
 0x489   : > { %v2695_v7 = vadd.f32 %v2694_v50, %v6029_v55  ;;  %v2776_v11 = vmax.f32 %v2691_v26, 0.0 }
 0x48a   : > { %v2777_v32 = vmax.f32 %v2693_v45, 0.0 }
 0x48b   : > { %v2778_v1 = vmax.f32 %v2695_v7, 0.0 }
 0x48c   : > { %v2815_v5 = vpack.c.bf16 %v2777_v32, %v2775_v61 }
 0x48d   : > { %v2816_v6 = vpack.c.bf16 %v2778_v1, %v2776_v11  ;;  %v2698_v10 = vpop.f32.mrb[116].mxu1 }
 0x48e   : > { %v2699_v16 = vadd.f32 %v2698_v10, %v6026_v9  ;;  %v2700_v25 = vpop.f32.mrb[117].mxu1 }
 0x48f   : > { %v2701_v62 = vadd.f32 %v2700_v25, %v6029_v55  ;;  %v2702_v3 = vpop.f32.mrb[118].mxu1  ;;  %3179 = vmatprep.mubr.bf16.mxu0 %v2816_v6 }
 0x490   : > { %v2703_v36 = vadd.f32 %v2702_v3, %v6026_v9  ;;  %v2704_v12 = vpop.f32.mrb[119].mxu1  ;;  %3180 = vmatmul.mubr.bf16.gmra.mrb[176].mxu0 %v2815_v5  ;;  %v2779_v13 = vmax.f32 %v2699_v16, 0.0 }
 0x491   : > { %v2705_v17 = vadd.f32 %v2704_v12, %v6029_v55  ;;  %v2780_v57 = vmax.f32 %v2701_v62, 0.0 }
 0x492   : > { %v2781_v49 = vmax.f32 %v2703_v36, 0.0 }
 0x493   : > { %v2782_v18 = vmax.f32 %v2705_v17, 0.0 }
 0x494   : > { %v2817_v20 = vpack.c.bf16 %v2781_v49, %v2779_v13 }
 0x495   : > { %v2818_v21 = vpack.c.bf16 %v2782_v18, %v2780_v57 }
 0x496   : > { %v2708_v53 = vpop.f32.mrb[120].mxu1 }
 0x497   : > { %v2709_v56 = vadd.f32 %v2708_v53, %v6026_v9  ;;  %v2710_v22 = vpop.f32.mrb[121].mxu1  ;;  %3189 = vmatprep.mubr.bf16.mxu0 %v2818_v21 }
 0x498   : > { %v2711_v23 = vadd.f32 %v2710_v22, %v6029_v55  ;;  %v2712_v14 = vpop.f32.mrb[122].mxu1  ;;  %3190 = vmatmul.mubr.bf16.gmra.mrb[180].mxu0 %v2817_v20 }
 0x499   : > { %v2713_v24 = vadd.f32 %v2712_v14, %v6026_v9  ;;  %v2714_v29 = vpop.f32.mrb[123].mxu1  ;;  %v2783_v19 = vmax.f32 %v2709_v56, 0.0 }
 0x49a   : > { %v2715_v8 = vadd.f32 %v2714_v29, %v6029_v55  ;;  %v2784_v15 = vmax.f32 %v2711_v23, 0.0 }
 0x49b   : > { %v2785_v34 = vmax.f32 %v2713_v24, 0.0 }
 0x49c   : > { %v2786_v31 = vmax.f32 %v2715_v8, 0.0 }
 0x49d   : > { %v2819_v27 = vpack.c.bf16 %v2785_v34, %v2783_v19 }
 0x49e   : > { %v2820_v38 = vpack.c.bf16 %v2786_v31, %v2784_v15  ;;  %v2718_v42 = vpop.f32.mrb[124].mxu1 }
 0x49f   : > { %v2719_v35 = vadd.f32 %v2718_v42, %v6026_v9  ;;  %v2720_v43 = vpop.f32.mrb[125].mxu1 }
 0x4a0   : > { %v2721_v44 = vadd.f32 %v2720_v43, %v6029_v55  ;;  %v2722_v33 = vpop.f32.mrb[126].mxu1  ;;  %3199 = vmatprep.mubr.bf16.mxu0 %v2820_v38 }
 0x4a1   : > { %v2723_v39 = vadd.f32 %v2722_v33, %v6026_v9  ;;  %v2724_v48 = vpop.f32.mrb[127].mxu1  ;;  %3200 = vmatmul.mubr.bf16.gmra.mrb[184].mxu0 %v2819_v27  ;;  %v2787_v46 = vmax.f32 %v2719_v35, 0.0  ;;  %v6150_v9 = vrot.slane %v2855_v0, %v5372_v30 }
 0x4a2   : > { %v2725_v41 = vadd.f32 %v2724_v48, %v6029_v55  ;;  %v2788_v51 = vmax.f32 %v2721_v44, 0.0 }
 0x4a3   : > { %v2789_v47 = vmax.f32 %v2723_v39, 0.0 }
 0x4a4   : > { %v2790_v54 = vmax.f32 %v2725_v41, 0.0 }
 0x4a5   : > { %v2821_v52 = vpack.c.bf16 %v2789_v47, %v2787_v46 }
 0x4a6   : > { %v2822_v63 = vpack.c.bf16 %v2790_v54, %v2788_v51 }
 0x4a8   : > { %3209 = vmatprep.mubr.bf16.mxu0 %v2822_v63 }
 0x4a9   : > { %3210 = vmatmul.mubr.bf16.gmra.mrb[188].mxu0 %v2821_v52 }
 0x500   : > { %v3061_v58 = vpop.f32.mrb[128].mxu0 }
 0x501   : > { %v3062_v55 = vadd.f32 %v3061_v58, %v6147_v2  ;;  %v3063_v26 = vpop.f32.mrb[129].mxu0 }
 0x502   : > { %v3064_v40 = vadd.f32 %v3063_v26, %v6150_v9  ;;  %v3065_v4 = vpop.f32.mrb[130].mxu0 }
 0x503   : > { %v3066_v45 = vadd.f32 %v3065_v4, %v6147_v2  ;;  %v3067_v50 = vpop.f32.mrb[131].mxu0  ;;  %v3220_v60 = vmax.f32 %v3062_v55, 0.0 }
 0x504   : > { %v3068_v59 = vadd.f32 %v3067_v50, %v6150_v9  ;;  %v3221_v61 = vmax.f32 %v3064_v40, 0.0 }
 0x505   : > { %v3222_v7 = vmax.f32 %v3066_v45, 0.0 }
 0x506   : > { %v3223_v28 = vmax.f32 %v3068_v59, 0.0 }
 0x507   : > { %v3284_v32 = vpack.c.bf16 %v3222_v7, %v3220_v60 }
 0x508   : > { %v3285_v11 = vpack.c.bf16 %v3223_v28, %v3221_v61  ;;  %v3071_v30 = vpop.f32.mrb[132].mxu0 }
 0x509   : > { %v3072_v1 = vadd.f32 %v3071_v30, %v6147_v2  ;;  %v3073_v37 = vpop.f32.mrb[133].mxu0 }
 0x50a   : > { %v3074_v5 = vadd.f32 %v3073_v37, %v6150_v9  ;;  %v3075_v6 = vpop.f32.mrb[134].mxu0  ;;  %3483 = vmatprep.mubr.bf16.mxu0 %v3285_v11 }
 0x50b   : > { %v3076_v10 = vadd.f32 %v3075_v6, %v6147_v2  ;;  %v3077_v16 = vpop.f32.mrb[135].mxu0  ;;  %3484 = vmatmul.mubr.bf16.vlgmr.msra.gmra.mrb[192].mxu0 %v3284_v32  ;;  %v3224_v62 = vmax.f32 %v3072_v1, 0.0 }
 0x50c   : > { %v3078_v25 = vadd.f32 %v3077_v16, %v6150_v9  ;;  %v3225_v36 = vmax.f32 %v3074_v5, 0.0 }
 0x50d   : > { %v3226_v3 = vmax.f32 %v3076_v10, 0.0 }
 0x50e   : > { %v3227_v12 = vmax.f32 %v3078_v25, 0.0 }
 0x50f   : > { %v3286_v17 = vpack.c.bf16 %v3226_v3, %v3224_v62 }
 0x510   : > { %v3287_v13 = vpack.c.bf16 %v3227_v12, %v3225_v36  ;;  %v3081_v49 = vpop.f32.mrb[136].mxu0 }
 0x511   : > { %v3082_v57 = vadd.f32 %v3081_v49, %v6147_v2  ;;  %v3083_v18 = vpop.f32.mrb[137].mxu0 }
 0x512   : > { %v3084_v20 = vadd.f32 %v3083_v18, %v6150_v9  ;;  %v3085_v21 = vpop.f32.mrb[138].mxu0  ;;  %3491 = vmatprep.mubr.bf16.mxu0 %v3287_v13 }
 0x513   : > { %v3086_v53 = vadd.f32 %v3085_v21, %v6147_v2  ;;  %v3087_v56 = vpop.f32.mrb[139].mxu0  ;;  %3492 = vmatmul.mubr.bf16.gmra.mrb[196].mxu0 %v3286_v17  ;;  %v3228_v23 = vmax.f32 %v3082_v57, 0.0 }
 0x514   : > { %v3088_v22 = vadd.f32 %v3087_v56, %v6150_v9  ;;  %v3229_v24 = vmax.f32 %v3084_v20, 0.0 }
 0x515   : > { %v3230_v14 = vmax.f32 %v3086_v53, 0.0 }
 0x516   : > { %v3231_v29 = vmax.f32 %v3088_v22, 0.0 }
 0x517   : > { %v3288_v8 = vpack.c.bf16 %v3230_v14, %v3228_v23 }
 0x518   : > { %v3289_v19 = vpack.c.bf16 %v3231_v29, %v3229_v24  ;;  %v3091_v34 = vpop.f32.mrb[140].mxu0 }
 0x519   : > { %v3092_v15 = vadd.f32 %v3091_v34, %v6147_v2  ;;  %v3093_v31 = vpop.f32.mrb[141].mxu0 }
 0x51a   : > { %v3094_v27 = vadd.f32 %v3093_v31, %v6150_v9  ;;  %v3095_v38 = vpop.f32.mrb[142].mxu0  ;;  %3499 = vmatprep.mubr.bf16.mxu0 %v3289_v19 }
 0x51b   : > { %v3096_v42 = vadd.f32 %v3095_v38, %v6147_v2  ;;  %v3097_v35 = vpop.f32.mrb[143].mxu0  ;;  %3500 = vmatmul.mubr.bf16.gmra.mrb[200].mxu0 %v3288_v8  ;;  %v3232_v44 = vmax.f32 %v3092_v15, 0.0 }
 0x51c   : > { %v3098_v43 = vadd.f32 %v3097_v35, %v6150_v9  ;;  %v3233_v39 = vmax.f32 %v3094_v27, 0.0 }
 0x51d   : > { %v3234_v33 = vmax.f32 %v3096_v42, 0.0 }
 0x51e   : > { %v3235_v48 = vmax.f32 %v3098_v43, 0.0 }
 0x51f   : > { %v3290_v41 = vpack.c.bf16 %v3234_v33, %v3232_v44 }
 0x520   : > { %v3291_v46 = vpack.c.bf16 %v3235_v48, %v3233_v39  ;;  %v3101_v47 = vpop.f32.mrb[144].mxu0 }
 0x521   : > { %v3102_v51 = vadd.f32 %v3101_v47, %v6147_v2  ;;  %v3103_v54 = vpop.f32.mrb[145].mxu0 }
 0x522   : > { %v3104_v52 = vadd.f32 %v3103_v54, %v6150_v9  ;;  %v3105_v63 = vpop.f32.mrb[146].mxu0  ;;  %3507 = vmatprep.mubr.bf16.mxu1 %v3291_v46 }
 0x523   : > { %v3106_v0 = vadd.f32 %v3105_v63, %v6147_v2  ;;  %v3107_v58 = vpop.f32.mrb[147].mxu0  ;;  %3508 = vmatmul.mubr.bf16.vlgmr.msra.gmra.mrb[128].mxu1 %v3290_v41  ;;  %v3236_v26 = vmax.f32 %v3102_v51, 0.0 }
 0x524   : > { %v3108_v55 = vadd.f32 %v3107_v58, %v6150_v9  ;;  %v3237_v4 = vmax.f32 %v3104_v52, 0.0 }
 0x525   : > { %v3238_v40 = vmax.f32 %v3106_v0, 0.0 }
 0x526   : > { %v3239_v45 = vmax.f32 %v3108_v55, 0.0 }
 0x527   : > { %v3292_v50 = vpack.c.bf16 %v3238_v40, %v3236_v26 }
 0x528   : > { %v3293_v59 = vpack.c.bf16 %v3239_v45, %v3237_v4  ;;  %v3111_v60 = vpop.f32.mrb[148].mxu0 }
 0x529   : > { %v3112_v7 = vadd.f32 %v3111_v60, %v6147_v2  ;;  %v3113_v61 = vpop.f32.mrb[149].mxu0 }
 0x52a   : > { %v3114_v28 = vadd.f32 %v3113_v61, %v6150_v9  ;;  %v3115_v32 = vpop.f32.mrb[150].mxu0  ;;  %3515 = vmatprep.mubr.bf16.mxu1 %v3293_v59 }
 0x52b   : > { %v3116_v11 = vadd.f32 %v3115_v32, %v6147_v2  ;;  %v3117_v30 = vpop.f32.mrb[151].mxu0  ;;  %3516 = vmatmul.mubr.bf16.gmra.mrb[132].mxu1 %v3292_v50  ;;  %v3240_v37 = vmax.f32 %v3112_v7, 0.0 }
 0x52c   : > { %v3118_v1 = vadd.f32 %v3117_v30, %v6150_v9  ;;  %v3241_v6 = vmax.f32 %v3114_v28, 0.0 }
 0x52d   : > { %v3242_v5 = vmax.f32 %v3116_v11, 0.0 }
 0x52e   : > { %v3243_v10 = vmax.f32 %v3118_v1, 0.0 }
 0x52f   : > { %v3294_v16 = vpack.c.bf16 %v3242_v5, %v3240_v37 }
 0x530   : > { %v3295_v25 = vpack.c.bf16 %v3243_v10, %v3241_v6 }
 0x531   : > { %v3121_v62 = vpop.f32.mrb[152].mxu0 }
 0x532   : > { %v3122_v3 = vadd.f32 %v3121_v62, %v6147_v2  ;;  %v3123_v36 = vpop.f32.mrb[153].mxu0  ;;  %3523 = vmatprep.mubr.bf16.mxu1 %v3295_v25 }
 0x533   : > { %v3124_v12 = vadd.f32 %v3123_v36, %v6150_v9  ;;  %v3125_v17 = vpop.f32.mrb[154].mxu0  ;;  %3524 = vmatmul.mubr.bf16.gmra.mrb[136].mxu1 %v3294_v16 }
 0x534   : > { %v3126_v13 = vadd.f32 %v3125_v17, %v6147_v2  ;;  %v3127_v49 = vpop.f32.mrb[155].mxu0  ;;  %v3244_v18 = vmax.f32 %v3122_v3, 0.0 }
 0x535   : > { %v3128_v57 = vadd.f32 %v3127_v49, %v6150_v9  ;;  %v3245_v21 = vmax.f32 %v3124_v12, 0.0 }
 0x536   : > { %v3246_v20 = vmax.f32 %v3126_v13, 0.0 }
 0x537   : > { %v3247_v53 = vmax.f32 %v3128_v57, 0.0 }
 0x538   : > { %v3296_v56 = vpack.c.bf16 %v3246_v20, %v3244_v18 }
 0x539   : > { %v3297_v22 = vpack.c.bf16 %v3247_v53, %v3245_v21  ;;  %v3131_v23 = vpop.f32.mrb[156].mxu0 }
 0x53a   : > { %v3132_v14 = vadd.f32 %v3131_v23, %v6147_v2  ;;  %v3133_v24 = vpop.f32.mrb[157].mxu0 }
 0x53b   : > { %v3134_v29 = vadd.f32 %v3133_v24, %v6150_v9  ;;  %v3135_v8 = vpop.f32.mrb[158].mxu0  ;;  %3531 = vmatprep.mubr.bf16.mxu1 %v3297_v22 }
 0x53c   : > { %v3136_v19 = vadd.f32 %v3135_v8, %v6147_v2  ;;  %v3137_v34 = vpop.f32.mrb[159].mxu0  ;;  %3532 = vmatmul.mubr.bf16.gmra.mrb[140].mxu1 %v3296_v56  ;;  %v3248_v31 = vmax.f32 %v3132_v14, 0.0 }
 0x53d   : > { %v3138_v15 = vadd.f32 %v3137_v34, %v6150_v9  ;;  %v3249_v38 = vmax.f32 %v3134_v29, 0.0 }
 0x53e   : > { %v3250_v27 = vmax.f32 %v3136_v19, 0.0 }
 0x53f   : > { %v3251_v42 = vmax.f32 %v3138_v15, 0.0 }
 0x540   : > { %v3298_v35 = vpack.c.bf16 %v3250_v27, %v3248_v31 }
 0x541   : > { %v3299_v43 = vpack.c.bf16 %v3251_v42, %v3249_v38 }
 0x542   : > { %v3141_v44 = vpop.f32.mrb[160].mxu0 }
 0x543   : > { %v3142_v33 = vadd.f32 %v3141_v44, %v6147_v2  ;;  %v3143_v39 = vpop.f32.mrb[161].mxu0  ;;  %3539 = vmatprep.mubr.bf16.mxu1 %v3299_v43 }
 0x544   : > { %v3144_v48 = vadd.f32 %v3143_v39, %v6150_v9  ;;  %v3145_v41 = vpop.f32.mrb[162].mxu0  ;;  %3540 = vmatmul.mubr.bf16.gmra.mrb[144].mxu1 %v3298_v35 }
 0x545   : > { %v3146_v46 = vadd.f32 %v3145_v41, %v6147_v2  ;;  %v3147_v47 = vpop.f32.mrb[163].mxu0  ;;  %v3252_v54 = vmax.f32 %v3142_v33, 0.0 }
 0x546   : > { %v3148_v51 = vadd.f32 %v3147_v47, %v6150_v9  ;;  %v3253_v63 = vmax.f32 %v3144_v48, 0.0 }
 0x547   : > { %v3254_v52 = vmax.f32 %v3146_v46, 0.0 }
 0x548   : > { %v3255_v0 = vmax.f32 %v3148_v51, 0.0 }
 0x549   : > { %v3300_v58 = vpack.c.bf16 %v3254_v52, %v3252_v54 }
 0x54a   : > { %v3301_v55 = vpack.c.bf16 %v3255_v0, %v3253_v63  ;;  %v3151_v26 = vpop.f32.mrb[164].mxu0 }
 0x54b   : > { %v3152_v40 = vadd.f32 %v3151_v26, %v6147_v2  ;;  %v3153_v4 = vpop.f32.mrb[165].mxu0 }
 0x54c   : > { %v3154_v45 = vadd.f32 %v3153_v4, %v6150_v9  ;;  %v3155_v50 = vpop.f32.mrb[166].mxu0  ;;  %3547 = vmatprep.mubr.bf16.mxu1 %v3301_v55 }
 0x54d   : > { %v3156_v59 = vadd.f32 %v3155_v50, %v6147_v2  ;;  %v3157_v60 = vpop.f32.mrb[167].mxu0  ;;  %3548 = vmatmul.mubr.bf16.gmra.mrb[148].mxu1 %v3300_v58  ;;  %v3256_v61 = vmax.f32 %v3152_v40, 0.0 }
 0x54e   : > { %v3158_v7 = vadd.f32 %v3157_v60, %v6150_v9  ;;  %v3257_v32 = vmax.f32 %v3154_v45, 0.0 }
 0x54f   : > { %v3258_v28 = vmax.f32 %v3156_v59, 0.0 }
 0x550   : > { %v3259_v11 = vmax.f32 %v3158_v7, 0.0 }
 0x551   : > { %v3302_v30 = vpack.c.bf16 %v3258_v28, %v3256_v61 }
 0x552   : > { %v3303_v1 = vpack.c.bf16 %v3259_v11, %v3257_v32  ;;  %v3161_v37 = vpop.f32.mrb[168].mxu0 }
 0x553   : > { %v3162_v5 = vadd.f32 %v3161_v37, %v6147_v2  ;;  %v3163_v6 = vpop.f32.mrb[169].mxu0 }
 0x554   : > { %v3164_v10 = vadd.f32 %v3163_v6, %v6150_v9  ;;  %v3165_v16 = vpop.f32.mrb[170].mxu0  ;;  %3555 = vmatprep.mubr.bf16.mxu1 %v3303_v1 }
 0x555   : > { %v3166_v25 = vadd.f32 %v3165_v16, %v6147_v2  ;;  %v3167_v62 = vpop.f32.mrb[171].mxu0  ;;  %3556 = vmatmul.mubr.bf16.gmra.mrb[152].mxu1 %v3302_v30  ;;  %v3260_v36 = vmax.f32 %v3162_v5, 0.0 }
 0x556   : > { %v3168_v3 = vadd.f32 %v3167_v62, %v6150_v9  ;;  %v3261_v17 = vmax.f32 %v3164_v10, 0.0 }
 0x557   : > { %v3262_v12 = vmax.f32 %v3166_v25, 0.0 }
 0x558   : > { %v3263_v13 = vmax.f32 %v3168_v3, 0.0 }
 0x559   : > { %v3304_v49 = vpack.c.bf16 %v3262_v12, %v3260_v36 }
 0x55a   : > { %v3305_v57 = vpack.c.bf16 %v3263_v13, %v3261_v17 }
 0x55b   : > { %v3171_v18 = vpop.f32.mrb[172].mxu0 }
 0x55c   : > { %v3172_v20 = vadd.f32 %v3171_v18, %v6147_v2  ;;  %v3173_v21 = vpop.f32.mrb[173].mxu0  ;;  %3563 = vmatprep.mubr.bf16.mxu1 %v3305_v57 }
 0x55d   : > { %v3174_v53 = vadd.f32 %v3173_v21, %v6150_v9  ;;  %v3175_v56 = vpop.f32.mrb[174].mxu0  ;;  %3564 = vmatmul.mubr.bf16.gmra.mrb[156].mxu1 %v3304_v49 }
 0x55e   : > { %v3176_v22 = vadd.f32 %v3175_v56, %v6147_v2  ;;  %v3177_v23 = vpop.f32.mrb[175].mxu0  ;;  %v3264_v24 = vmax.f32 %v3172_v20, 0.0 }
 0x55f   : > { %v3178_v14 = vadd.f32 %v3177_v23, %v6150_v9  ;;  %v3265_v8 = vmax.f32 %v3174_v53, 0.0 }
 0x560   : > { %v3266_v29 = vmax.f32 %v3176_v22, 0.0 }
 0x561   : > { %v3267_v19 = vmax.f32 %v3178_v14, 0.0 }
 0x562   : > { %v3306_v34 = vpack.c.bf16 %v3266_v29, %v3264_v24  ;;  %v6219_v29 = vld [vmem:[%s6307_s13] ss:$0 sm:$0xff] }
 0x563   : > { %v3307_v15 = vpack.c.bf16 %v3267_v19, %v3265_v8  ;;  %v3181_v31 = vpop.f32.mrb[176].mxu0 }
 0x564   : > { %v3182_v27 = vadd.f32 %v3181_v31, %v6147_v2  ;;  %v3183_v38 = vpop.f32.mrb[177].mxu0 }
 0x565   : > { %v3184_v42 = vadd.f32 %v3183_v38, %v6150_v9  ;;  %v3185_v35 = vpop.f32.mrb[178].mxu0  ;;  %3571 = vmatprep.mubr.bf16.mxu1 %v3307_v15 }
 0x566   : > { %v3186_v43 = vadd.f32 %v3185_v35, %v6147_v2  ;;  %v3187_v44 = vpop.f32.mrb[179].mxu0  ;;  %3572 = vmatmul.mubr.bf16.gmra.mrb[160].mxu1 %v3306_v34  ;;  %v3268_v39 = vmax.f32 %v3182_v27, 0.0 }
 0x567   : > { %v3188_v33 = vadd.f32 %v3187_v44, %v6150_v9  ;;  %v3269_v41 = vmax.f32 %v3184_v42, 0.0 }
 0x568   : > { %v3270_v48 = vmax.f32 %v3186_v43, 0.0 }
 0x569   : > { %v3271_v46 = vmax.f32 %v3188_v33, 0.0 }
 0x56a   : > { %v3308_v47 = vpack.c.bf16 %v3270_v48, %v3268_v39 }
 0x56b   : > { %v3309_v51 = vpack.c.bf16 %v3271_v46, %v3269_v41  ;;  %v3191_v54 = vpop.f32.mrb[180].mxu0 }
 0x56c   : > { %v3192_v52 = vadd.f32 %v3191_v54, %v6147_v2  ;;  %v3193_v63 = vpop.f32.mrb[181].mxu0 }
 0x56d   : > { %v3194_v0 = vadd.f32 %v3193_v63, %v6150_v9  ;;  %v3195_v58 = vpop.f32.mrb[182].mxu0  ;;  %3579 = vmatprep.mubr.bf16.mxu1 %v3309_v51 }
 0x56e   : > { %v3196_v55 = vadd.f32 %v3195_v58, %v6147_v2  ;;  %v3197_v26 = vpop.f32.mrb[183].mxu0  ;;  %3580 = vmatmul.mubr.bf16.gmra.mrb[164].mxu1 %v3308_v47  ;;  %v3272_v4 = vmax.f32 %v3192_v52, 0.0 }
 0x56f   : > { %v3198_v40 = vadd.f32 %v3197_v26, %v6150_v9  ;;  %v3273_v50 = vmax.f32 %v3194_v0, 0.0 }
 0x570   : > { %v3274_v45 = vmax.f32 %v3196_v55, 0.0 }
 0x571   : > { %v3275_v59 = vmax.f32 %v3198_v40, 0.0 }
 0x572   : > { %v3310_v60 = vpack.c.bf16 %v3274_v45, %v3272_v4 }
 0x573   : > { %v3311_v7 = vpack.c.bf16 %v3275_v59, %v3273_v50 }
 0x574   : > { %v3201_v61 = vpop.f32.mrb[184].mxu0 }
 0x575   : > { %v3202_v28 = vadd.f32 %v3201_v61, %v6147_v2  ;;  %v3203_v32 = vpop.f32.mrb[185].mxu0  ;;  %3587 = vmatprep.mubr.bf16.mxu1 %v3311_v7 }
 0x576   : > { %v3204_v11 = vadd.f32 %v3203_v32, %v6150_v9  ;;  %v3205_v30 = vpop.f32.mrb[186].mxu0  ;;  %3588 = vmatmul.mubr.bf16.gmra.mrb[168].mxu1 %v3310_v60 }
 0x577   : > { %v3206_v1 = vadd.f32 %v3205_v30, %v6147_v2  ;;  %v3207_v37 = vpop.f32.mrb[187].mxu0  ;;  %v3276_v6 = vmax.f32 %v3202_v28, 0.0 }
 0x578   : > { %v3208_v5 = vadd.f32 %v3207_v37, %v6150_v9  ;;  %v3277_v16 = vmax.f32 %v3204_v11, 0.0 }
 0x579   : > { %v3278_v10 = vmax.f32 %v3206_v1, 0.0 }
 0x57a   : > { %v3279_v25 = vmax.f32 %v3208_v5, 0.0 }
 0x57b   : > { %v3312_v62 = vpack.c.bf16 %v3278_v10, %v3276_v6 }
 0x57c   : > { %v3313_v3 = vpack.c.bf16 %v3279_v25, %v3277_v16  ;;  %v3211_v36 = vpop.f32.mrb[188].mxu0 }
 0x57d   : > { %v3212_v12 = vadd.f32 %v3211_v36, %v6147_v2  ;;  %v3213_v17 = vpop.f32.mrb[189].mxu0 }
 0x57e   : > { %v3214_v13 = vadd.f32 %v3213_v17, %v6150_v9  ;;  %v3215_v49 = vpop.f32.mrb[190].mxu0  ;;  %3595 = vmatprep.mubr.bf16.mxu1 %v3313_v3 }
 0x57f   : > { %v3216_v57 = vadd.f32 %v3215_v49, %v6147_v2  ;;  %v3217_v18 = vpop.f32.mrb[191].mxu0  ;;  %3596 = vmatmul.mubr.bf16.gmra.mrb[172].mxu1 %v3312_v62  ;;  %v3280_v21 = vmax.f32 %v3212_v12, 0.0 }
 0x580   : > { %v3218_v20 = vadd.f32 %v3217_v18, %v6150_v9  ;;  %v3281_v56 = vmax.f32 %v3214_v13, 0.0 }
 0x581   : > { %v3282_v53 = vmax.f32 %v3216_v57, 0.0 }
 0x582   : > { %v3283_v22 = vmax.f32 %v3218_v20, 0.0 }
 0x583   : > { %v3314_v23 = vpack.c.bf16 %v3282_v53, %v3280_v21 }
 0x584   : > { %v3315_v14 = vpack.c.bf16 %v3283_v22, %v3281_v56 }
 0x586   : > { %3603 = vmatprep.mubr.bf16.mxu1 %v3315_v14 }
 0x587   : > { %3604 = vmatmul.mubr.bf16.gmra.mrb[176].mxu1 %v3314_v23 }
 0x5de   : > { %v4355_v24 = vpop.f32.mrb[192].mxu0 }
 0x5df   : > { %v4356_v8 = vpop.f32.mrb[193].mxu0 }
 0x5e0   : > { %v4357_v2 = vadd.f32 %v4356_v8, %v4355_v24  ;;  %v4358_v19 = vpop.f32.mrb[194].mxu0 }
 0x5e1   : > { %v4359_v34 = vpop.f32.mrb[195].mxu0 }
 0x5e2   : > { %v3486_v9 = vadd.f32 %v4357_v2, %v6219_v29  ;;  %v4360_v15 = vadd.f32 %v4359_v34, %v4358_v19 }
 0x5e4   : > { %v4193_v31 = vmul.f32 -1.442695, %v3486_v9  ;;  %v3489_v27 = vadd.f32 %v4360_v15, %v6219_v29 }
 0x5e6   : > { %4949 = vpow2.f32 %v4193_v31  ;;  %v4194_v38 = vmul.f32 -1.442695, %v3489_v27  ;;  %v4361_v42 = vpop.f32.mrb[196].mxu0 }
 0x5e7   : > { %v4362_v35 = vpop.f32.mrb[197].mxu0 }
 0x5e8   : > { %4951 = vpow2.f32 %v4194_v38  ;;  %v4363_v43 = vadd.f32 %v4362_v35, %v4361_v42  ;;  %v4364_v44 = vpop.f32.mrb[198].mxu0 }
 0x5e9   : > { %v4365_v33 = vpop.f32.mrb[199].mxu0 }
 0x5ea   : > { %v3494_v39 = vadd.f32 %v4363_v43, %v6219_v29  ;;  %v4366_v48 = vadd.f32 %v4365_v33, %v4364_v44 }
 0x5ec   : > { %v4195_v41 = vmul.f32 -1.442695, %v3494_v39  ;;  %v3497_v46 = vadd.f32 %v4366_v48, %v6219_v29 }
 0x5ee   : > { %4953 = vpow2.f32 %v4195_v41  ;;  %v4196_v47 = vmul.f32 -1.442695, %v3497_v46  ;;  %v4367_v51 = vpop.f32.mrb[200].mxu0 }
 0x5ef   : > { %v4368_v54 = vpop.f32.mrb[201].mxu0 }
 0x5f0   : > { %v4950_v52 = vpop.eup %4949  ;;  %4955 = vpow2.f32 %v4196_v47  ;;  %v4369_v63 = vadd.f32 %v4368_v54, %v4367_v51  ;;  %v4370_v0 = vpop.f32.mrb[202].mxu0 }
 0x5f1   : > { %v3708_v58 = vadd.f32 1.0, %v4950_v52  ;;  %v4371_v55 = vpop.f32.mrb[203].mxu0 }
 0x5f2   : > { %v4952_v26 = vpop.eup %4951  ;;  %v3502_v40 = vadd.f32 %v4369_v63, %v6219_v29  ;;  %v4372_v4 = vadd.f32 %v4371_v55, %v4370_v0 }
 0x5f3   : > { %4957 = vrcp.f32 %v3708_v58  ;;  %v3709_v45 = vadd.f32 1.0, %v4952_v26 }
 0x5f4   : > { %v4197_v50 = vmul.f32 -1.442695, %v3502_v40  ;;  %v3505_v59 = vadd.f32 %v4372_v4, %v6219_v29 }
 0x5f5   : > { %4959 = vrcp.f32 %v3709_v45 }
 0x5f6   : > { %4961 = vpow2.f32 %v4197_v50  ;;  %v4198_v60 = vmul.f32 -1.442695, %v3505_v59  ;;  %v4373_v7 = vpop.f32.mrb[128].mxu1 }
 0x5f7   : > { %v4374_v61 = vpop.f32.mrb[129].mxu1 }
 0x5f8   : > { %v4954_v28 = vpop.eup %4953  ;;  %4963 = vpow2.f32 %v4198_v60  ;;  %v4375_v32 = vadd.f32 %v4374_v61, %v4373_v7  ;;  %v4376_v11 = vpop.f32.mrb[130].mxu1 }
 0x5f9   : > { %v3710_v30 = vadd.f32 1.0, %v4954_v28  ;;  %v4377_v1 = vpop.f32.mrb[131].mxu1 }
 0x5fa   : > { %v4956_v37 = vpop.eup %4955  ;;  %v3510_v5 = vadd.f32 %v4375_v32, %v6219_v29  ;;  %v4378_v6 = vadd.f32 %v4377_v1, %v4376_v11 }
 0x5fb   : > { %4965 = vrcp.f32 %v3710_v30  ;;  %v3711_v10 = vadd.f32 1.0, %v4956_v37 }
 0x5fc   : > { %v4199_v16 = vmul.f32 -1.442695, %v3510_v5  ;;  %v3513_v25 = vadd.f32 %v4378_v6, %v6219_v29 }
 0x5fd   : > { %v4958_v62 = vpop.eup %4957  ;;  %4967 = vrcp.f32 %v3711_v10 }
 0x5fe   : > { %3804 = vst [vmem:[%s6232_s19] sm:$0xff] %v4958_v62  ;;  %4969 = vpow2.f32 %v4199_v16  ;;  %v4200_v3 = vmul.f32 -1.442695, %v3513_v25  ;;  %v4379_v36 = vpop.f32.mrb[132].mxu1 }
 0x5ff   : > { %v4960_v12 = vpop.eup %4959  ;;  %v4380_v17 = vpop.f32.mrb[133].mxu1 }
 0x600   : > { %v4962_v13 = vpop.eup %4961  ;;  %3805 = vst [vmem:[%s6232_s19 + $0x8] sm:$0xff] %v4960_v12  ;;  %4971 = vpow2.f32 %v4200_v3  ;;  %v4381_v49 = vadd.f32 %v4380_v17, %v4379_v36  ;;  %v4382_v57 = vpop.f32.mrb[134].mxu1 }
 0x601   : > { %v3712_v18 = vadd.f32 1.0, %v4962_v13  ;;  %v4383_v20 = vpop.f32.mrb[135].mxu1 }
 0x602   : > { %v4964_v21 = vpop.eup %4963  ;;  %v3518_v53 = vadd.f32 %v4381_v49, %v6219_v29  ;;  %v4384_v56 = vadd.f32 %v4383_v20, %v4382_v57 }
 0x603   : > { %4973 = vrcp.f32 %v3712_v18  ;;  %v3713_v22 = vadd.f32 1.0, %v4964_v21 }
 0x604   : > { %v4201_v23 = vmul.f32 -1.442695, %v3518_v53  ;;  %v3521_v14 = vadd.f32 %v4384_v56, %v6219_v29 }
 0x605   : > { %v4966_v24 = vpop.eup %4965  ;;  %4975 = vrcp.f32 %v3713_v22 }
 0x606   : > { %3806 = vst [vmem:[%s6232_s19 + $0x10] sm:$0xff] %v4966_v24  ;;  %4977 = vpow2.f32 %v4201_v23  ;;  %v4202_v8 = vmul.f32 -1.442695, %v3521_v14  ;;  %v4385_v2 = vpop.f32.mrb[136].mxu1 }
 0x607   : > { %v4968_v19 = vpop.eup %4967  ;;  %v4386_v34 = vpop.f32.mrb[137].mxu1 }
 0x608   : > { %v4970_v9 = vpop.eup %4969  ;;  %3807 = vst [vmem:[%s6232_s19 + $0x18] sm:$0xff] %v4968_v19  ;;  %4979 = vpow2.f32 %v4202_v8  ;;  %v4387_v15 = vadd.f32 %v4386_v34, %v4385_v2  ;;  %v4388_v31 = vpop.f32.mrb[138].mxu1 }
 0x609   : > { %v3714_v27 = vadd.f32 1.0, %v4970_v9  ;;  %v4389_v38 = vpop.f32.mrb[139].mxu1 }
 0x60a   : > { %v4972_v42 = vpop.eup %4971  ;;  %v3526_v35 = vadd.f32 %v4387_v15, %v6219_v29  ;;  %v4390_v43 = vadd.f32 %v4389_v38, %v4388_v31 }
 0x60b   : > { %4981 = vrcp.f32 %v3714_v27  ;;  %v3715_v44 = vadd.f32 1.0, %v4972_v42 }
 0x60c   : > { %v4203_v33 = vmul.f32 -1.442695, %v3526_v35  ;;  %v3529_v39 = vadd.f32 %v4390_v43, %v6219_v29 }
 0x60d   : > { %v4974_v48 = vpop.eup %4973  ;;  %4983 = vrcp.f32 %v3715_v44 }
 0x60e   : > { %3808 = vst [vmem:[%s6232_s19 + $0x20] sm:$0xff] %v4974_v48  ;;  %4985 = vpow2.f32 %v4203_v33  ;;  %v4204_v41 = vmul.f32 -1.442695, %v3529_v39 }
 0x60f   : > { %v4976_v46 = vpop.eup %4975  ;;  %v4391_v47 = vpop.f32.mrb[140].mxu1 }
 0x610   : > { %v4978_v51 = vpop.eup %4977  ;;  %3809 = vst [vmem:[%s6232_s19 + $0x28] sm:$0xff] %v4976_v46  ;;  %4987 = vpow2.f32 %v4204_v41  ;;  %v4392_v54 = vpop.f32.mrb[141].mxu1 }
 0x611   : > { %v3716_v52 = vadd.f32 1.0, %v4978_v51  ;;  %v4393_v63 = vadd.f32 %v4392_v54, %v4391_v47  ;;  %v4394_v0 = vpop.f32.mrb[142].mxu1 }
 0x612   : > { %v4980_v58 = vpop.eup %4979  ;;  %v4395_v55 = vpop.f32.mrb[143].mxu1 }
 0x613   : > { %4989 = vrcp.f32 %v3716_v52  ;;  %v3717_v26 = vadd.f32 1.0, %v4980_v58  ;;  %v3534_v40 = vadd.f32 %v4393_v63, %v6219_v29  ;;  %v4396_v4 = vadd.f32 %v4395_v55, %v4394_v0 }
 0x615   : > { %v4982_v45 = vpop.eup %4981  ;;  %4991 = vrcp.f32 %v3717_v26  ;;  %v4205_v50 = vmul.f32 -1.442695, %v3534_v40  ;;  %v3537_v59 = vadd.f32 %v4396_v4, %v6219_v29 }
 0x616   : > { %3810 = vst [vmem:[%s6232_s19 + $0x30] sm:$0xff] %v4982_v45 }
 0x617   : > { %v4984_v60 = vpop.eup %4983  ;;  %4993 = vpow2.f32 %v4205_v50  ;;  %v4206_v7 = vmul.f32 -1.442695, %v3537_v59  ;;  %v4397_v61 = vpop.f32.mrb[144].mxu1 }
 0x618   : > { %v4986_v28 = vpop.eup %4985  ;;  %3811 = vst [vmem:[%s6232_s19 + $0x38] sm:$0xff] %v4984_v60  ;;  %v4398_v32 = vpop.f32.mrb[145].mxu1 }
 0x619   : > { %v3718_v11 = vadd.f32 1.0, %v4986_v28  ;;  %4995 = vpow2.f32 %v4206_v7  ;;  %v4399_v30 = vadd.f32 %v4398_v32, %v4397_v61  ;;  %v4400_v1 = vpop.f32.mrb[146].mxu1 }
 0x61a   : > { %v4988_v37 = vpop.eup %4987  ;;  %v4401_v5 = vpop.f32.mrb[147].mxu1 }
 0x61b   : > { %4997 = vrcp.f32 %v3718_v11  ;;  %v3719_v6 = vadd.f32 1.0, %v4988_v37  ;;  %v3542_v10 = vadd.f32 %v4399_v30, %v6219_v29  ;;  %v4402_v16 = vadd.f32 %v4401_v5, %v4400_v1 }
 0x61d   : > { %v4990_v25 = vpop.eup %4989  ;;  %4999 = vrcp.f32 %v3719_v6  ;;  %v4207_v62 = vmul.f32 -1.442695, %v3542_v10  ;;  %v3545_v3 = vadd.f32 %v4402_v16, %v6219_v29 }
 0x61e   : > { %3812 = vst [vmem:[%s6232_s19 + $0x40] sm:$0xff] %v4990_v25 }
 0x61f   : > { %v4992_v36 = vpop.eup %4991  ;;  %5001 = vpow2.f32 %v4207_v62  ;;  %v4208_v12 = vmul.f32 -1.442695, %v3545_v3 }
 0x620   : > { %3813 = vst [vmem:[%s6232_s19 + $0x48] sm:$0xff] %v4992_v36  ;;  %v4403_v17 = vpop.f32.mrb[148].mxu1 }
 0x621   : > { %v4994_v13 = vpop.eup %4993  ;;  %5003 = vpow2.f32 %v4208_v12  ;;  %v4404_v49 = vpop.f32.mrb[149].mxu1 }
 0x622   : > { %v3720_v57 = vadd.f32 1.0, %v4994_v13  ;;  %v4405_v18 = vadd.f32 %v4404_v49, %v4403_v17  ;;  %v4406_v20 = vpop.f32.mrb[150].mxu1 }
 0x623   : > { %v4996_v21 = vpop.eup %4995  ;;  %v4407_v53 = vpop.f32.mrb[151].mxu1 }
 0x624   : > { %5005 = vrcp.f32 %v3720_v57  ;;  %v3721_v56 = vadd.f32 1.0, %v4996_v21  ;;  %v3550_v22 = vadd.f32 %v4405_v18, %v6219_v29  ;;  %v4408_v23 = vadd.f32 %v4407_v53, %v4406_v20 }
 0x625   : > { %v4998_v14 = vpop.eup %4997 }
 0x626   : > { %3814 = vst [vmem:[%s6232_s19 + $0x50] sm:$0xff] %v4998_v14  ;;  %5007 = vrcp.f32 %v3721_v56  ;;  %v4209_v24 = vmul.f32 -1.442695, %v3550_v22  ;;  %v3553_v8 = vadd.f32 %v4408_v23, %v6219_v29 }
 0x627   : > { %v5000_v2 = vpop.eup %4999 }
 0x628   : > { %3815 = vst [vmem:[%s6232_s19 + $0x58] sm:$0xff] %v5000_v2  ;;  %5009 = vpow2.f32 %v4209_v24  ;;  %v4210_v19 = vmul.f32 -1.442695, %v3553_v8  ;;  %v4409_v34 = vpop.f32.mrb[152].mxu1 }
 0x629   : > { %v5002_v9 = vpop.eup %5001  ;;  %v4410_v15 = vpop.f32.mrb[153].mxu1 }
 0x62a   : > { %v3722_v31 = vadd.f32 1.0, %v5002_v9  ;;  %5011 = vpow2.f32 %v4210_v19  ;;  %v4411_v27 = vadd.f32 %v4410_v15, %v4409_v34  ;;  %v4412_v38 = vpop.f32.mrb[154].mxu1 }
 0x62b   : > { %v5004_v42 = vpop.eup %5003  ;;  %v4413_v35 = vpop.f32.mrb[155].mxu1 }
 0x62c   : > { %5013 = vrcp.f32 %v3722_v31  ;;  %v3723_v43 = vadd.f32 1.0, %v5004_v42  ;;  %v3558_v44 = vadd.f32 %v4411_v27, %v6219_v29  ;;  %v4414_v33 = vadd.f32 %v4413_v35, %v4412_v38 }
 0x62e   : > { %v5006_v39 = vpop.eup %5005  ;;  %5015 = vrcp.f32 %v3723_v43  ;;  %v4211_v48 = vmul.f32 -1.442695, %v3558_v44  ;;  %v3561_v41 = vadd.f32 %v4414_v33, %v6219_v29 }
 0x62f   : > { %3816 = vst [vmem:[%s6232_s19 + $0x60] sm:$0xff] %v5006_v39 }
 0x630   : > { %v5008_v46 = vpop.eup %5007  ;;  %5017 = vpow2.f32 %v4211_v48  ;;  %v4212_v47 = vmul.f32 -1.442695, %v3561_v41  ;;  %v4415_v51 = vpop.f32.mrb[156].mxu1 }
 0x631   : > { %3817 = vst [vmem:[%s6232_s19 + $0x68] sm:$0xff] %v5008_v46  ;;  %v4416_v54 = vpop.f32.mrb[157].mxu1 }
 0x632   : > { %v5010_v52 = vpop.eup %5009  ;;  %5019 = vpow2.f32 %v4212_v47  ;;  %v4417_v63 = vadd.f32 %v4416_v54, %v4415_v51  ;;  %v4418_v0 = vpop.f32.mrb[158].mxu1 }
 0x633   : > { %v3724_v58 = vadd.f32 1.0, %v5010_v52  ;;  %v4419_v55 = vpop.f32.mrb[159].mxu1 }
 0x634   : > { %v5012_v26 = vpop.eup %5011  ;;  %v3566_v40 = vadd.f32 %v4417_v63, %v6219_v29  ;;  %v4420_v4 = vadd.f32 %v4419_v55, %v4418_v0 }
 0x635   : > { %5021 = vrcp.f32 %v3724_v58  ;;  %v3725_v45 = vadd.f32 1.0, %v5012_v26 }
 0x636   : > { %v5014_v50 = vpop.eup %5013  ;;  %v4213_v59 = vmul.f32 -1.442695, %v3566_v40  ;;  %v3569_v60 = vadd.f32 %v4420_v4, %v6219_v29 }
 0x637   : > { %3818 = vst [vmem:[%s6232_s19 + $0x70] sm:$0xff] %v5014_v50  ;;  %5023 = vrcp.f32 %v3725_v45 }
 0x638   : > { %v5016_v7 = vpop.eup %5015  ;;  %5025 = vpow2.f32 %v4213_v59  ;;  %v4214_v61 = vmul.f32 -1.442695, %v3569_v60 }
 0x639   : > { %3819 = vst [vmem:[%s6232_s19 + $0x78] sm:$0xff] %v5016_v7  ;;  %v4421_v28 = vpop.f32.mrb[160].mxu1 }
 0x63a   : > { %v5018_v32 = vpop.eup %5017  ;;  %5027 = vpow2.f32 %v4214_v61  ;;  %v4422_v11 = vpop.f32.mrb[161].mxu1 }
 0x63b   : > { %v3726_v30 = vadd.f32 1.0, %v5018_v32  ;;  %v4423_v1 = vadd.f32 %v4422_v11, %v4421_v28  ;;  %v4424_v37 = vpop.f32.mrb[162].mxu1 }
 0x63c   : > { %v5020_v5 = vpop.eup %5019  ;;  %v4425_v6 = vpop.f32.mrb[163].mxu1 }
 0x63d   : > { %5029 = vrcp.f32 %v3726_v30  ;;  %v3727_v10 = vadd.f32 1.0, %v5020_v5  ;;  %v3574_v16 = vadd.f32 %v4423_v1, %v6219_v29  ;;  %v4426_v25 = vadd.f32 %v4425_v6, %v4424_v37 }
 0x63f   : > { %v5022_v62 = vpop.eup %5021  ;;  %5031 = vrcp.f32 %v3727_v10  ;;  %v4215_v3 = vmul.f32 -1.442695, %v3574_v16  ;;  %v3577_v36 = vadd.f32 %v4426_v25, %v6219_v29 }
 0x640   : > { %3820 = vst [vmem:[%s6232_s19 + $0x80] sm:$0xff] %v5022_v62 }
 0x641   : > { %v5024_v12 = vpop.eup %5023  ;;  %5033 = vpow2.f32 %v4215_v3  ;;  %v4216_v17 = vmul.f32 -1.442695, %v3577_v36  ;;  %v4427_v13 = vpop.f32.mrb[164].mxu1 }
 0x642   : > { %v5026_v49 = vpop.eup %5025  ;;  %3821 = vst [vmem:[%s6232_s19 + $0x88] sm:$0xff] %v5024_v12  ;;  %v4428_v57 = vpop.f32.mrb[165].mxu1 }
 0x643   : > { %v3728_v18 = vadd.f32 1.0, %v5026_v49  ;;  %5035 = vpow2.f32 %v4216_v17  ;;  %v4429_v20 = vadd.f32 %v4428_v57, %v4427_v13  ;;  %v4430_v21 = vpop.f32.mrb[166].mxu1 }
 0x644   : > { %v5028_v53 = vpop.eup %5027  ;;  %v4431_v56 = vpop.f32.mrb[167].mxu1 }
 0x645   : > { %5037 = vrcp.f32 %v3728_v18  ;;  %v3729_v22 = vadd.f32 1.0, %v5028_v53  ;;  %v3582_v23 = vadd.f32 %v4429_v20, %v6219_v29  ;;  %v4432_v14 = vadd.f32 %v4431_v56, %v4430_v21 }
 0x647   : > { %v5030_v24 = vpop.eup %5029  ;;  %5039 = vrcp.f32 %v3729_v22  ;;  %v4217_v8 = vmul.f32 -1.442695, %v3582_v23  ;;  %v3585_v2 = vadd.f32 %v4432_v14, %v6219_v29 }
 0x648   : > { %3822 = vst [vmem:[%s6232_s19 + $0x90] sm:$0xff] %v5030_v24 }
 0x649   : > { %v5032_v19 = vpop.eup %5031  ;;  %5041 = vpow2.f32 %v4217_v8  ;;  %v4218_v34 = vmul.f32 -1.442695, %v3585_v2  ;;  %v4433_v9 = vpop.f32.mrb[168].mxu1 }
 0x64a   : > { %3823 = vst [vmem:[%s6232_s19 + $0x98] sm:$0xff] %v5032_v19  ;;  %v4434_v15 = vpop.f32.mrb[169].mxu1 }
 0x64b   : > { %v5034_v31 = vpop.eup %5033  ;;  %5043 = vpow2.f32 %v4218_v34  ;;  %v4435_v27 = vadd.f32 %v4434_v15, %v4433_v9  ;;  %v4436_v38 = vpop.f32.mrb[170].mxu1 }
 0x64c   : > { %v3730_v42 = vadd.f32 1.0, %v5034_v31  ;;  %v4437_v35 = vpop.f32.mrb[171].mxu1 }
 0x64d   : > { %v5036_v43 = vpop.eup %5035  ;;  %v3590_v44 = vadd.f32 %v4435_v27, %v6219_v29  ;;  %v4438_v33 = vadd.f32 %v4437_v35, %v4436_v38 }
 0x64e   : > { %5045 = vrcp.f32 %v3730_v42  ;;  %v3731_v39 = vadd.f32 1.0, %v5036_v43 }
 0x64f   : > { %v5038_v48 = vpop.eup %5037  ;;  %v4219_v41 = vmul.f32 -1.442695, %v3590_v44  ;;  %v3593_v46 = vadd.f32 %v4438_v33, %v6219_v29 }
 0x650   : > { %3824 = vst [vmem:[%s6232_s19 + $0xa0] sm:$0xff] %v5038_v48  ;;  %5047 = vrcp.f32 %v3731_v39 }
 0x651   : > { %v5040_v47 = vpop.eup %5039  ;;  %5049 = vpow2.f32 %v4219_v41  ;;  %v4220_v51 = vmul.f32 -1.442695, %v3593_v46 }
 0x652   : > { %3825 = vst [vmem:[%s6232_s19 + $0xa8] sm:$0xff] %v5040_v47  ;;  %v4439_v54 = vpop.f32.mrb[172].mxu1 }
 0x653   : > { %v5042_v52 = vpop.eup %5041  ;;  %5051 = vpow2.f32 %v4220_v51  ;;  %v4440_v63 = vpop.f32.mrb[173].mxu1 }
 0x654   : > { %v3732_v0 = vadd.f32 1.0, %v5042_v52  ;;  %v4441_v58 = vadd.f32 %v4440_v63, %v4439_v54  ;;  %v4442_v55 = vpop.f32.mrb[174].mxu1 }
 0x655   : > { %v5044_v26 = vpop.eup %5043  ;;  %v4443_v40 = vpop.f32.mrb[175].mxu1 }
 0x656   : > { %5053 = vrcp.f32 %v3732_v0  ;;  %v3733_v4 = vadd.f32 1.0, %v5044_v26  ;;  %v3598_v45 = vadd.f32 %v4441_v58, %v6219_v29  ;;  %v4444_v50 = vadd.f32 %v4443_v40, %v4442_v55 }
 0x658   : > { %v5046_v59 = vpop.eup %5045  ;;  %5055 = vrcp.f32 %v3733_v4  ;;  %v4221_v60 = vmul.f32 -1.442695, %v3598_v45  ;;  %v3601_v7 = vadd.f32 %v4444_v50, %v6219_v29 }
 0x659   : > { %3826 = vst [vmem:[%s6232_s19 + $0xb0] sm:$0xff] %v5046_v59 }
 0x65a   : > { %v5048_v61 = vpop.eup %5047  ;;  %5057 = vpow2.f32 %v4221_v60  ;;  %v4222_v28 = vmul.f32 -1.442695, %v3601_v7  ;;  %v4445_v32 = vpop.f32.mrb[176].mxu1 }
 0x65b   : > { %v5050_v11 = vpop.eup %5049  ;;  %3827 = vst [vmem:[%s6232_s19 + $0xb8] sm:$0xff] %v5048_v61  ;;  %v4446_v30 = vpop.f32.mrb[177].mxu1 }
 0x65c   : > { %v3734_v1 = vadd.f32 1.0, %v5050_v11  ;;  %5059 = vpow2.f32 %v4222_v28  ;;  %v4447_v37 = vadd.f32 %v4446_v30, %v4445_v32  ;;  %v4448_v5 = vpop.f32.mrb[178].mxu1 }
 0x65d   : > { %v5052_v6 = vpop.eup %5051  ;;  %v4449_v10 = vpop.f32.mrb[179].mxu1 }
 0x65e   : > { %5061 = vrcp.f32 %v3734_v1  ;;  %v3735_v16 = vadd.f32 1.0, %v5052_v6  ;;  %v3606_v25 = vadd.f32 %v4447_v37, %v6219_v29  ;;  %v4450_v62 = vadd.f32 %v4449_v10, %v4448_v5 }
 0x660   : > { %v5054_v3 = vpop.eup %5053  ;;  %5063 = vrcp.f32 %v3735_v16  ;;  %v4223_v36 = vmul.f32 -1.442695, %v3606_v25  ;;  %v3609_v12 = vadd.f32 %v4450_v62, %v6219_v29 }
 0x661   : > { %3828 = vst [vmem:[%s6232_s19 + $0xc0] sm:$0xff] %v5054_v3 }
 0x662   : > { %v5056_v17 = vpop.eup %5055  ;;  %5065 = vpow2.f32 %v4223_v36  ;;  %v4224_v13 = vmul.f32 -1.442695, %v3609_v12 }
 0x663   : > { %3829 = vst [vmem:[%s6232_s19 + $0xc8] sm:$0xff] %v5056_v17 }
 0x664   : > { %v5058_v49 = vpop.eup %5057  ;;  %5067 = vpow2.f32 %v4224_v13 }
 0x665   : > { %v3736_v57 = vadd.f32 1.0, %v5058_v49 }
 0x666   : > { %v5060_v18 = vpop.eup %5059 }
 0x667   : > { %5069 = vrcp.f32 %v3736_v57  ;;  %v3737_v20 = vadd.f32 1.0, %v5060_v18 }
 0x668   : > { %v5062_v21 = vpop.eup %5061 }
 0x669   : > { %3830 = vst [vmem:[%s6232_s19 + $0xd0] sm:$0xff] %v5062_v21  ;;  %5071 = vrcp.f32 %v3737_v20 }
 0x66a   : > { %v5064_v29 = vpop.eup %5063 }
 0x66b   : > { %3831 = vst [vmem:[%s6232_s19 + $0xd8] sm:$0xff] %v5064_v29 }
 0x66c   : > { %v5066_v53 = vpop.eup %5065 }
 0x66d   : > { %v3738_v56 = vadd.f32 1.0, %v5066_v53 }
 0x66e   : > { %v5068_v22 = vpop.eup %5067 }
 0x66f   : > { %5073 = vrcp.f32 %v3738_v56  ;;  %v3739_v23 = vadd.f32 1.0, %v5068_v22 }
 0x671   : > { %v5070_v14 = vpop.eup %5069  ;;  %5075 = vrcp.f32 %v3739_v23 }
 0x672   : > { %3832 = vst [vmem:[%s6232_s19 + $0xe0] sm:$0xff] %v5070_v14 }
 0x673   : > { %v5072_v24 = vpop.eup %5071 }
 0x674   : > { %3833 = vst [vmem:[%s6232_s19 + $0xe8] sm:$0xff] %v5072_v24 }
 0x679   : > { %v5074_v8 = vpop.eup %5073 }
 0x67a   : > { %3834 = vst [vmem:[%s6232_s19 + $0xf0] sm:$0xff] %v5074_v8 }
 0x67b   : > { %v5076_v2 = vpop.eup %5075 }
 0x67c   : > { %3835 = vst [vmem:[%s6232_s19 + $0xf8] sm:$0xff] %v5076_v2 }
 0x67d PF: > { %s26_s18 = sadd.s32 1, %s5083_s18  }
 0x67e   : > { %p23_p4 = scmp.ge.s32.totalorder %s26_s18, 4  }
 0x680   :  { %25 = sbr.rel (!%p23_p4) target bundleno = 1 (0x1), region = 121 }

</bundles_post_ra>
